<compile_context>
chip_gen: v6e
topology: v6e:2x2x1
jax: 0.10.0
libtpu: 0.0.40
codegen_flags: <defaults>
</compile_context>

<pallas_src>
from functools import partial

import jax
import jax.numpy as jnp
from jax.experimental import pallas as pl
from jax.experimental.pallas import tpu as pltpu

EPS = 1e-5            # InstanceNorm3d eps
NEG_SLOPE = 0.01      # LeakyReLU negative_slope (nnUNet default)


# ----------------------------------------------------------------------------
# Epilogue: conv bias + InstanceNorm3d (single-pass stats over the lane/voxel
# axis) + LeakyReLU.  acc is (Cout, DHW) f32; b/g/bt are (Cout, 1) f32.
# ----------------------------------------------------------------------------
def _in_lrelu(acc, b, g, bt, inv_n):
    acc = acc + b
    mean = jnp.sum(acc, axis=1, keepdims=True) * inv_n
    ex2 = jnp.sum(acc * acc, axis=1, keepdims=True) * inv_n
    var = jnp.maximum(ex2 - mean * mean, 0.0)
    scale = g * jax.lax.rsqrt(var + EPS)
    y = (acc - mean) * scale + bt
    return jnp.where(y >= 0.0, y, NEG_SLOPE * y)


def _shifted(x_bf, s, rows, L):
    """x shifted by +s along the flattened voxel (lane) axis, zero filled."""
    if s == 0:
        return x_bf
    z = jnp.zeros((rows, abs(s)), jnp.bfloat16)
    if s > 0:
        return jnp.concatenate([x_bf[:, s:], z], axis=1)
    return jnp.concatenate([z, x_bf[:, :L + s]], axis=1)


def _im2col(x_bf, masks_ref, col_ref, *, rows, D, H, W, K):
    """Fill col_ref[0:K^3*rows, :] with mask-zeroed shifted copies of x_bf.

    Every store is a full DHW-lane store; the {0,1} tap masks replicate the
    'same' zero padding (no halo scratch, no zero-fill needed)."""
    L = D * H * W
    pad = (K - 1) // 2
    t = 0
    for kd in range(K):
        for kh in range(K):
            for kw in range(K):
                s = (kd - pad) * H * W + (kh - pad) * W + (kw - pad)
                m = masks_ref[t:t + 1, :]                         # (1, L) bf16
                col_ref[t * rows:(t + 1) * rows, :] = _shifted(x_bf, s, rows, L) * m
                t += 1


# ----------------------------------------------------------------------------
# Fused per-sample kernel: conv1 -> concat_1 -> conv2 -> concat_2 -> conv3
# -> maxpool.  Everything is channels-first (C, DHW); DHW sits on lanes.
# ----------------------------------------------------------------------------
def _dense_block_kernel(x_ref, masks_ref, w1_ref, w2_ref, w3_ref,
                        b1_ref, g1_ref, bt1_ref,
                        b2_ref, g2_ref, bt2_ref,
                        b3_ref, g3_ref, bt3_ref,
                        o_cat1, o_cat2, o_res, o_pool,
                        col_ref, *, C, D, H, W, K):
    L = D * H * W
    K3 = K * K * K
    C2 = 2 * C
    inv_n = 1.0 / float(L)

    x_f32 = x_ref[0]                                  # (C, L) f32, lane-dense
    x_bf = x_f32.astype(jnp.bfloat16)

    # ---- conv1 (3x3x3, 'same') + IN + LeakyReLU -----------------------------
    _im2col(x_bf, masks_ref, col_ref, rows=C, D=D, H=H, W=W, K=K)
    acc1 = jnp.dot(w1_ref[...], col_ref[0:K3 * C, :],
                   preferred_element_type=jnp.float32)            # (C, L)
    out1 = _in_lrelu(acc1, b1_ref[...], g1_ref[...], bt1_ref[...], inv_n)

    cat1 = jnp.concatenate([out1, x_f32], axis=0)                 # (2C, L) f32
    o_cat1[0] = cat1                                              # concat_1

    # ---- conv2 (3x3x3, 'same') over concat_1 --------------------------------
    _im2col(cat1.astype(jnp.bfloat16), masks_ref, col_ref,
            rows=C2, D=D, H=H, W=W, K=K)
    acc2 = jnp.dot(w2_ref[...], col_ref[...],
                   preferred_element_type=jnp.float32)            # (2C, L)
    out2 = _in_lrelu(acc2, b2_ref[...], g2_ref[...], bt2_ref[...], inv_n)

    cat2 = jnp.concatenate([out2, x_f32, out1], axis=0)           # (4C, L) f32
    o_cat2[0] = cat2                                              # concat_2

    # ---- conv3 (1x1x1) over concat_2 -----------------------------------------
    acc3 = jnp.dot(w3_ref[...], cat2.astype(jnp.bfloat16),
                   preferred_element_type=jnp.float32)            # (2C, L)
    y3 = _in_lrelu(acc3, b3_ref[...], g3_ref[...], bt3_ref[...], inv_n)
    o_res[0] = y3                                                 # residual_out

    # ---- fused MaxPool3d(2, stride=2) ----------------------------------------
    D2, H2, W2 = D // 2, H // 2, W // 2
    y_cl = y3.T.reshape(D, H, W, C2)              # leading-dim split; minor = C2
    t5 = y_cl.reshape(D2, 2, H, W, C2)
    v = jnp.maximum(t5[:, 0], t5[:, 1])           # pool D (leading dims only)
    t5 = v.reshape(D2, H2, 2, W, C2)
    v = jnp.maximum(t5[:, :, 0], t5[:, :, 1])     # pool H (leading dims only)
    cols = [jnp.maximum(v[:, :, 2 * ow:2 * ow + 1, :],
                        v[:, :, 2 * ow + 1:2 * ow + 2, :])
            for ow in range(W2)]                  # pool W via 1-wide slices
    vp = jnp.concatenate(cols, axis=2)            # (D2, H2, W2, 2C)
    o_pool[0] = vp.reshape(D2 * H2 * W2, C2).T    # (2C, D2*H2*W2) single store


# ----------------------------------------------------------------------------
# Host-side helpers
# ----------------------------------------------------------------------------
def _make_tap_masks(D, H, W, K):
    """(K^3, D*H*W) {0,1} validity masks replicating 'same' zero padding."""
    pad = (K - 1) // 2
    d = jnp.arange(D).reshape(D, 1, 1)
    h = jnp.arange(H).reshape(1, H, 1)
    w = jnp.arange(W).reshape(1, 1, W)
    rows = []
    for kd in range(K):
        for kh in range(K):
            for kw in range(K):
                od, oh, ow = kd - pad, kh - pad, kw - pad
                ok = ((d + od >= 0) & (d + od < D) &
                      (h + oh >= 0) & (h + oh < H) &
                      (w + ow >= 0) & (w + ow < W))
                rows.append(jnp.broadcast_to(ok, (D, H, W)).reshape(D * H * W))
    return jnp.stack(rows, axis=0).astype(jnp.bfloat16)


def _vmem_limit_bytes(C, D, H, W, K):
    L = D * H * W
    K3 = K * K * K
    C2, C4 = 2 * C, 4 * C
    L2 = L // 8
    f32, bf16 = 4, 2
    blocks = (C * L * f32 + K3 * L * bf16
              + (C * K3 * C + C2 * K3 * C2 + C2 * C4) * bf16
              + (3 * C + 6 * C2) * f32
              + (C2 * L + C4 * L + C2 * L + C2 * L2) * f32)
    scratch = K3 * C2 * L * bf16
    est = 2 * blocks + scratch + (8 << 20)          # double-buffering + headroom
    return int(min(max(est, 16 << 20), 64 << 20))   # keep under v7x VMEM


# ----------------------------------------------------------------------------
# Module forward: DenseDownBlock_2
# ----------------------------------------------------------------------------
def dense_down_block_2_forward(x_ncdhw, params):
    N, C, D, H, W = x_ncdhw.shape
    assert D % 2 == 0 and H % 2 == 0 and W % 2 == 0, "MaxPool3d(2,2) needs even dims"
    K = int(params["w1"].shape[0])
    K3 = K * K * K
    L = D * H * W
    C2, C4 = 2 * C, 4 * C
    D2, H2, W2 = D // 2, H // 2, W // 2
    L2 = D2 * H2 * W2

    x2 = x_ncdhw.reshape(N, C, L)                   # channels-first, free reshape

    masks = _make_tap_masks(D, H, W, K)
    w1t = params["w1"].reshape(K3 * C, C).T.astype(jnp.bfloat16)    # (C,  K3*C)
    w2t = params["w2"].reshape(K3 * C2, C2).T.astype(jnp.bfloat16)  # (2C, K3*2C)
    w3t = params["w3"].reshape(C4, C2).T.astype(jnp.bfloat16)       # (2C, 4C)

    in_specs = [
        pl.BlockSpec((1, C, L), lambda n: (n, 0, 0)),
        pl.BlockSpec((K3, L), lambda n: (0, 0)),
        pl.BlockSpec((C, K3 * C), lambda n: (0, 0)),
        pl.BlockSpec((C2, K3 * C2), lambda n: (0, 0)),
        pl.BlockSpec((C2, C4), lambda n: (0, 0)),
    ] + [pl.BlockSpec((c, 1), lambda n: (0, 0))
         for c in (C, C, C, C2, C2, C2, C2, C2, C2)]

    out_shape = (
        jax.ShapeDtypeStruct((N, C2, L), jnp.float32),    # concat_1
        jax.ShapeDtypeStruct((N, C4, L), jnp.float32),    # concat_2
        jax.ShapeDtypeStruct((N, C2, L), jnp.float32),    # residual_out
        jax.ShapeDtypeStruct((N, C2, L2), jnp.float32),   # pooled out
    )
    out_specs = [
        pl.BlockSpec((1, C2, L), lambda n: (n, 0, 0)),
        pl.BlockSpec((1, C4, L), lambda n: (n, 0, 0)),
        pl.BlockSpec((1, C2, L), lambda n: (n, 0, 0)),
        pl.BlockSpec((1, C2, L2), lambda n: (n, 0, 0)),
    ]

    kernel = partial(_dense_block_kernel, C=C, D=D, H=H, W=W, K=K)
    cat1, cat2, res, pooled = pl.pallas_call(
        kernel,
        out_shape=out_shape,
        grid_spec=pltpu.PrefetchScalarGridSpec(
            num_scalar_prefetch=0,
            grid=(N,),
            in_specs=in_specs,
            out_specs=out_specs,
            scratch_shapes=[pltpu.VMEM((K3 * C2, L), jnp.bfloat16)],  # im2col (bf16)
        ),
        compiler_params=pltpu.CompilerParams(
            dimension_semantics=("parallel",),
            vmem_limit_bytes=_vmem_limit_bytes(C, D, H, W, K)),
    )(x2, masks, w1t, w2t, w3t,
      params["b1"], params["g1"], params["beta1"],
      params["b2"], params["g2"], params["beta2"],
      params["b3"], params["g3"], params["beta3"])

    # Kernel outputs are already NC(DHW): only free reshapes here, no transposes.
    out_pooled = pooled.reshape(N, C2, D2, H2, W2)
    residual_out = res.reshape(N, C2, D, H, W)
    concat_1 = cat1.reshape(N, C2, D, H, W)
    concat_2 = cat2.reshape(N, C4, D, H, W)
    return (out_pooled, residual_out, x_ncdhw, concat_1, concat_2)


# ----------------------------------------------------------------------------
# Pure-JAX f32 reference of the same forward pass (tolerance check).
# ----------------------------------------------------------------------------
def _ref_conv_block(x, w, b, g, bt):
    K = w.shape[0]
    pad = (K - 1) // 2
    out = jax.lax.conv_general_dilated(
        x, w, window_strides=(1, 1, 1), padding=[(pad, pad)] * 3,
        dimension_numbers=("NDHWC", "DHWIO", "NDHWC"))
    out = out + b.reshape(1, 1, 1, 1, -1)
    mean = out.mean(axis=(1, 2, 3), keepdims=True)
    var = jnp.square(out - mean).mean(axis=(1, 2, 3), keepdims=True)
    y = (out - mean) * jax.lax.rsqrt(var + EPS)
    y = y * g.reshape(1, 1, 1, 1, -1) + bt.reshape(1, 1, 1, 1, -1)
    return jnp.where(y >= 0.0, y, NEG_SLOPE * y)


def _ref_forward(x_ncdhw, params):
    x = jnp.transpose(x_ncdhw, (0, 2, 3, 4, 1))
    out1 = _ref_conv_block(x, params["w1"], params["b1"], params["g1"], params["beta1"])
    cat1 = jnp.concatenate([out1, x], axis=-1)
    out2 = _ref_conv_block(cat1, params["w2"], params["b2"], params["g2"], params["beta2"])
    cat2 = jnp.concatenate([out2, x, out1], axis=-1)
    res = _ref_conv_block(cat2, params["w3"], params["b3"], params["g3"], params["beta3"])
    pooled = jax.lax.reduce_window(res, -jnp.inf, jax.lax.max,
                                   (1, 2, 2, 2, 1), (1, 2, 2, 2, 1), "VALID")
    to_ncdhw = lambda t: jnp.transpose(t, (0, 4, 1, 2, 3))
    return (to_ncdhw(pooled), to_ncdhw(res), to_ncdhw(x), to_ncdhw(cat1), to_ncdhw(cat2))


# ----------------------------------------------------------------------------
# Deterministic synthetic parameters (shapes follow DenseDownBlock_2.__init__)
# ----------------------------------------------------------------------------
def init_params(key, in_planes):
    keys = jax.random.split(key, 12)

    def conv_w(k, K, cin, cout):
        fan_in = cin * K * K * K
        return jax.random.normal(k, (K, K, K, cin, cout), jnp.float32) / jnp.sqrt(float(fan_in))

    def vec(k, c, scale):
        return scale * jax.random.normal(k, (c, 1), jnp.float32)

    c2 = 2 * in_planes
    c3_in, c3_out = 4 * in_planes, 2 * in_planes
    return {
        "w1": conv_w(keys[0], 3, in_planes, in_planes),
        "b1": vec(keys[1], in_planes, 0.01),
        "g1": 1.0 + vec(keys[2], in_planes, 0.1),
        "beta1": vec(keys[3], in_planes, 0.1),
        "w2": conv_w(keys[4], 3, c2, c2),
        "b2": vec(keys[5], c2, 0.01),
        "g2": 1.0 + vec(keys[6], c2, 0.1),
        "beta2": vec(keys[7], c2, 0.1),
        "w3": conv_w(keys[8], 1, c3_in, c3_out),
        "b3": vec(keys[9], c3_out, 0.01),
        "g3": 1.0 + vec(keys[10], c3_out, 0.1),
        "beta3": vec(keys[11], c3_out, 0.1),
    }


if __name__ == "__main__":
    key = jax.random.PRNGKey(0)
    N, C, D, H, W = 2, 4, 8, 8, 8            # small NCDHW volume (in_planes = 4)
    in_planes = C
    k_x, k_p = jax.random.split(key)
    x = jax.random.normal(k_x, (N, C, D, H, W), jnp.float32)
    params = init_params(k_p, in_planes)

    outs = jax.block_until_ready(dense_down_block_2_forward(x, params))

    expected = [
        (N, 2 * in_planes, D // 2, H // 2, W // 2),   # pooled output
        (N, 2 * in_planes, D, H, W),                  # residual_out
        (N, in_planes, D, H, W),                      # residual_1
        (N, 2 * in_planes, D, H, W),                  # concat_1
        (N, 4 * in_planes, D, H, W),                  # concat_2
    ]
    assert all(o.shape == e for o, e in zip(outs, expected)), [o.shape for o in outs]
    assert all(bool(jnp.all(jnp.isfinite(o))) for o in outs)

    # Tolerance check vs. an f32 pure-JAX reference (kernel uses bf16 matmul operands
    # with f32 accumulation, so allow a few-percent relative deviation).
    refs = jax.block_until_ready(_ref_forward(x, params))
    for o, r in zip(outs, refs):
        scale = float(jnp.max(jnp.abs(r))) + 1e-6
        err = float(jnp.max(jnp.abs(o - r)))
        assert err <= 0.05 * scale + 1e-2, (err, scale)

    print("KERNEL_OK")
</pallas_src>

<mosaic_0001>
module attributes {stable_mosaic.version = 11 : i64} {
  func.func @_dense_block_kernel(%arg0: i32, %arg1: memref<1x4x512xf32, #tpu.memory_space<vmem>>, %arg2: memref<27x512xbf16, #tpu.memory_space<vmem>>, %arg3: memref<4x108xbf16, #tpu.memory_space<vmem>>, %arg4: memref<8x216xbf16, #tpu.memory_space<vmem>>, %arg5: memref<8x16xbf16, #tpu.memory_space<vmem>>, %arg6: memref<4x1xf32, #tpu.memory_space<vmem>>, %arg7: memref<4x1xf32, #tpu.memory_space<vmem>>, %arg8: memref<4x1xf32, #tpu.memory_space<vmem>>, %arg9: memref<8x1xf32, #tpu.memory_space<vmem>>, %arg10: memref<8x1xf32, #tpu.memory_space<vmem>>, %arg11: memref<8x1xf32, #tpu.memory_space<vmem>>, %arg12: memref<8x1xf32, #tpu.memory_space<vmem>>, %arg13: memref<8x1xf32, #tpu.memory_space<vmem>>, %arg14: memref<8x1xf32, #tpu.memory_space<vmem>>, %arg15: memref<1x8x512xf32, #tpu.memory_space<vmem>>, %arg16: memref<1x16x512xf32, #tpu.memory_space<vmem>>, %arg17: memref<1x8x512xf32, #tpu.memory_space<vmem>>, %arg18: memref<1x8x64xf32, #tpu.memory_space<vmem>>, %arg19: memref<216x512xbf16, #tpu.memory_space<vmem>>) attributes {dimension_semantics = [#tpu.dimension_semantics<parallel>], iteration_bounds = array<i64: 2>, scalar_prefetch = 0 : i64, scratch_operands = 1 : i64, tpu.core_type = #tpu.core_type<tc>, window_params = [{transform_indices = @transform_0, window_bounds = array<i64: 1, 4, 512>}, {pipeline_mode = #tpu.pipeline_mode<synchronous>, transform_indices = @transform_1, window_bounds = array<i64: 27, 512>}, {pipeline_mode = #tpu.pipeline_mode<synchronous>, transform_indices = @transform_2, window_bounds = array<i64: 4, 108>}, {pipeline_mode = #tpu.pipeline_mode<synchronous>, transform_indices = @transform_3, window_bounds = array<i64: 8, 216>}, {pipeline_mode = #tpu.pipeline_mode<synchronous>, transform_indices = @transform_4, window_bounds = array<i64: 8, 16>}, {pipeline_mode = #tpu.pipeline_mode<synchronous>, transform_indices = @transform_5, window_bounds = array<i64: 4, 1>}, {pipeline_mode = #tpu.pipeline_mode<synchronous>, transform_indices = @transform_6, window_bounds = array<i64: 4, 1>}, {pipeline_mode = #tpu.pipeline_mode<synchronous>, transform_indices = @transform_7, window_bounds = array<i64: 4, 1>}, {pipeline_mode = #tpu.pipeline_mode<synchronous>, transform_indices = @transform_8, window_bounds = array<i64: 8, 1>}, {pipeline_mode = #tpu.pipeline_mode<synchronous>, transform_indices = @transform_9, window_bounds = array<i64: 8, 1>}, {pipeline_mode = #tpu.pipeline_mode<synchronous>, transform_indices = @transform_10, window_bounds = array<i64: 8, 1>}, {pipeline_mode = #tpu.pipeline_mode<synchronous>, transform_indices = @transform_11, window_bounds = array<i64: 8, 1>}, {pipeline_mode = #tpu.pipeline_mode<synchronous>, transform_indices = @transform_12, window_bounds = array<i64: 8, 1>}, {pipeline_mode = #tpu.pipeline_mode<synchronous>, transform_indices = @transform_13, window_bounds = array<i64: 8, 1>}, {transform_indices = @transform_14, window_bounds = array<i64: 1, 8, 512>}, {transform_indices = @transform_15, window_bounds = array<i64: 1, 16, 512>}, {transform_indices = @transform_16, window_bounds = array<i64: 1, 8, 512>}, {transform_indices = @transform_17, window_bounds = array<i64: 1, 8, 64>}]} {
    %c0 = arith.constant 0 : index
    %c0_0 = arith.constant 0 : index
    %c0_1 = arith.constant 0 : index
    %0 = vector.load %arg1[%c0, %c0_0, %c0_1] : memref<1x4x512xf32, #tpu.memory_space<vmem>>, vector<1x4x512xf32>
    %1 = vector.shape_cast %0 : vector<1x4x512xf32> to vector<4x512xf32>
    %2 = arith.truncf %1 : vector<4x512xf32> to vector<4x512xbf16>
    %c0_2 = arith.constant 0 : index
    %c0_3 = arith.constant 0 : index
    %3 = vector.load %arg2[%c0_2, %c0_3] : memref<27x512xbf16, #tpu.memory_space<vmem>>, vector<1x512xbf16>
    %cst = arith.constant 0.000000e+00 : bf16
    %4 = vector.broadcast %cst : bf16 to vector<4x73xbf16>
    %5 = vector.extract_strided_slice %2 {offsets = [0, 0], sizes = [4, 439], strides = [1, 1]} : vector<4x512xbf16> to vector<4x439xbf16>
    %6 = tpu.concatenate %4, %5 in 1 : vector<4x73xbf16>, vector<4x439xbf16> -> vector<4x512xbf16>
    %7 = vector.broadcast %3 : vector<1x512xbf16> to vector<4x512xbf16>
    %8 = arith.mulf %6, %7 : vector<4x512xbf16>
    %c0_4 = arith.constant 0 : index
    %c0_5 = arith.constant 0 : index
    %9 = vector.load %arg19[%c0_4, %c0_5] : memref<216x512xbf16, #tpu.memory_space<vmem>>, vector<4x512xbf16>
    tpu.vector_store %arg19[%c0_4, %c0_5], %8 {strides = array<i32>} : memref<216x512xbf16, #tpu.memory_space<vmem>>, vector<4x512xbf16>,
    %c1 = arith.constant 1 : index
    %c0_6 = arith.constant 0 : index
    %10 = vector.load %arg2[%c1, %c0_6] : memref<27x512xbf16, #tpu.memory_space<vmem>>, vector<1x512xbf16>
    %cst_7 = arith.constant 0.000000e+00 : bf16
    %11 = vector.broadcast %cst_7 : bf16 to vector<4x72xbf16>
    %12 = vector.extract_strided_slice %2 {offsets = [0, 0], sizes = [4, 440], strides = [1, 1]} : vector<4x512xbf16> to vector<4x440xbf16>
    %13 = tpu.concatenate %11, %12 in 1 : vector<4x72xbf16>, vector<4x440xbf16> -> vector<4x512xbf16>
    %14 = vector.broadcast %10 : vector<1x512xbf16> to vector<4x512xbf16>
    %15 = arith.mulf %13, %14 : vector<4x512xbf16>
    %c4 = arith.constant 4 : index
    %c0_8 = arith.constant 0 : index
    %16 = vector.load %arg19[%c4, %c0_8] : memref<216x512xbf16, #tpu.memory_space<vmem>>, vector<4x512xbf16>
    tpu.vector_store %arg19[%c4, %c0_8], %15 {strides = array<i32>} : memref<216x512xbf16, #tpu.memory_space<vmem>>, vector<4x512xbf16>,
    %c2 = arith.constant 2 : index
    %c0_9 = arith.constant 0 : index
    %17 = vector.load %arg2[%c2, %c0_9] : memref<27x512xbf16, #tpu.memory_space<vmem>>, vector<1x512xbf16>
    %cst_10 = arith.constant 0.000000e+00 : bf16
    %18 = vector.broadcast %cst_10 : bf16 to vector<4x71xbf16>
    %19 = vector.extract_strided_slice %2 {offsets = [0, 0], sizes = [4, 441], strides = [1, 1]} : vector<4x512xbf16> to vector<4x441xbf16>
    %20 = tpu.concatenate %18, %19 in 1 : vector<4x71xbf16>, vector<4x441xbf16> -> vector<4x512xbf16>
    %21 = vector.broadcast %17 : vector<1x512xbf16> to vector<4x512xbf16>
    %22 = arith.mulf %20, %21 : vector<4x512xbf16>
    %c8 = arith.constant 8 : index
    %c0_11 = arith.constant 0 : index
    %23 = vector.load %arg19[%c8, %c0_11] : memref<216x512xbf16, #tpu.memory_space<vmem>>, vector<4x512xbf16>
    tpu.vector_store %arg19[%c8, %c0_11], %22 {strides = array<i32>} : memref<216x512xbf16, #tpu.memory_space<vmem>>, vector<4x512xbf16>,
    %c3 = arith.constant 3 : index
    %c0_12 = arith.constant 0 : index
    %24 = vector.load %arg2[%c3, %c0_12] : memref<27x512xbf16, #tpu.memory_space<vmem>>, vector<1x512xbf16>
    %cst_13 = arith.constant 0.000000e+00 : bf16
    %25 = vector.broadcast %cst_13 : bf16 to vector<4x65xbf16>
    %26 = vector.extract_strided_slice %2 {offsets = [0, 0], sizes = [4, 447], strides = [1, 1]} : vector<4x512xbf16> to vector<4x447xbf16>
    %27 = tpu.concatenate %25, %26 in 1 : vector<4x65xbf16>, vector<4x447xbf16> -> vector<4x512xbf16>
    %28 = vector.broadcast %24 : vector<1x512xbf16> to vector<4x512xbf16>
    %29 = arith.mulf %27, %28 : vector<4x512xbf16>
    %c12 = arith.constant 12 : index
    %c0_14 = arith.constant 0 : index
    %30 = vector.load %arg19[%c12, %c0_14] : memref<216x512xbf16, #tpu.memory_space<vmem>>, vector<4x512xbf16>
    tpu.vector_store %arg19[%c12, %c0_14], %29 {strides = array<i32>} : memref<216x512xbf16, #tpu.memory_space<vmem>>, vector<4x512xbf16>,
    %c4_15 = arith.constant 4 : index
    %c0_16 = arith.constant 0 : index
    %31 = vector.load %arg2[%c4_15, %c0_16] : memref<27x512xbf16, #tpu.memory_space<vmem>>, vector<1x512xbf16>
    %cst_17 = arith.constant 0.000000e+00 : bf16
    %32 = vector.broadcast %cst_17 : bf16 to vector<4x64xbf16>
    %33 = vector.extract_strided_slice %2 {offsets = [0, 0], sizes = [4, 448], strides = [1, 1]} : vector<4x512xbf16> to vector<4x448xbf16>
    %34 = tpu.concatenate %32, %33 in 1 : vector<4x64xbf16>, vector<4x448xbf16> -> vector<4x512xbf16>
    %35 = vector.broadcast %31 : vector<1x512xbf16> to vector<4x512xbf16>
    %36 = arith.mulf %34, %35 : vector<4x512xbf16>
    %c16 = arith.constant 16 : index
    %c0_18 = arith.constant 0 : index
    %37 = vector.load %arg19[%c16, %c0_18] : memref<216x512xbf16, #tpu.memory_space<vmem>>, vector<4x512xbf16>
    tpu.vector_store %arg19[%c16, %c0_18], %36 {strides = array<i32>} : memref<216x512xbf16, #tpu.memory_space<vmem>>, vector<4x512xbf16>,
    %c5 = arith.constant 5 : index
    %c0_19 = arith.constant 0 : index
    %38 = vector.load %arg2[%c5, %c0_19] : memref<27x512xbf16, #tpu.memory_space<vmem>>, vector<1x512xbf16>
    %cst_20 = arith.constant 0.000000e+00 : bf16
    %39 = vector.broadcast %cst_20 : bf16 to vector<4x63xbf16>
    %40 = vector.extract_strided_slice %2 {offsets = [0, 0], sizes = [4, 449], strides = [1, 1]} : vector<4x512xbf16> to vector<4x449xbf16>
    %41 = tpu.concatenate %39, %40 in 1 : vector<4x63xbf16>, vector<4x449xbf16> -> vector<4x512xbf16>
    %42 = vector.broadcast %38 : vector<1x512xbf16> to vector<4x512xbf16>
    %43 = arith.mulf %41, %42 : vector<4x512xbf16>
    %c20 = arith.constant 20 : index
    %c0_21 = arith.constant 0 : index
    %44 = vector.load %arg19[%c20, %c0_21] : memref<216x512xbf16, #tpu.memory_space<vmem>>, vector<4x512xbf16>
    tpu.vector_store %arg19[%c20, %c0_21], %43 {strides = array<i32>} : memref<216x512xbf16, #tpu.memory_space<vmem>>, vector<4x512xbf16>,
    %c6 = arith.constant 6 : index
    %c0_22 = arith.constant 0 : index
    %45 = vector.load %arg2[%c6, %c0_22] : memref<27x512xbf16, #tpu.memory_space<vmem>>, vector<1x512xbf16>
    %cst_23 = arith.constant 0.000000e+00 : bf16
    %46 = vector.broadcast %cst_23 : bf16 to vector<4x57xbf16>
    %47 = vector.extract_strided_slice %2 {offsets = [0, 0], sizes = [4, 455], strides = [1, 1]} : vector<4x512xbf16> to vector<4x455xbf16>
    %48 = tpu.concatenate %46, %47 in 1 : vector<4x57xbf16>, vector<4x455xbf16> -> vector<4x512xbf16>
    %49 = vector.broadcast %45 : vector<1x512xbf16> to vector<4x512xbf16>
    %50 = arith.mulf %48, %49 : vector<4x512xbf16>
    %c24 = arith.constant 24 : index
    %c0_24 = arith.constant 0 : index
    %51 = vector.load %arg19[%c24, %c0_24] : memref<216x512xbf16, #tpu.memory_space<vmem>>, vector<4x512xbf16>
    tpu.vector_store %arg19[%c24, %c0_24], %50 {strides = array<i32>} : memref<216x512xbf16, #tpu.memory_space<vmem>>, vector<4x512xbf16>,
    %c7 = arith.constant 7 : index
    %c0_25 = arith.constant 0 : index
    %52 = vector.load %arg2[%c7, %c0_25] : memref<27x512xbf16, #tpu.memory_space<vmem>>, vector<1x512xbf16>
    %cst_26 = arith.constant 0.000000e+00 : bf16
    %53 = vector.broadcast %cst_26 : bf16 to vector<4x56xbf16>
    %54 = vector.extract_strided_slice %2 {offsets = [0, 0], sizes = [4, 456], strides = [1, 1]} : vector<4x512xbf16> to vector<4x456xbf16>
    %55 = tpu.concatenate %53, %54 in 1 : vector<4x56xbf16>, vector<4x456xbf16> -> vector<4x512xbf16>
    %56 = vector.broadcast %52 : vector<1x512xbf16> to vector<4x512xbf16>
    %57 = arith.mulf %55, %56 : vector<4x512xbf16>
    %c28 = arith.constant 28 : index
    %c0_27 = arith.constant 0 : index
    %58 = vector.load %arg19[%c28, %c0_27] : memref<216x512xbf16, #tpu.memory_space<vmem>>, vector<4x512xbf16>
    tpu.vector_store %arg19[%c28, %c0_27], %57 {strides = array<i32>} : memref<216x512xbf16, #tpu.memory_space<vmem>>, vector<4x512xbf16>,
    %c8_28 = arith.constant 8 : index
    %c0_29 = arith.constant 0 : index
    %59 = vector.load %arg2[%c8_28, %c0_29] : memref<27x512xbf16, #tpu.memory_space<vmem>>, vector<1x512xbf16>
    %cst_30 = arith.constant 0.000000e+00 : bf16
    %60 = vector.broadcast %cst_30 : bf16 to vector<4x55xbf16>
    %61 = vector.extract_strided_slice %2 {offsets = [0, 0], sizes = [4, 457], strides = [1, 1]} : vector<4x512xbf16> to vector<4x457xbf16>
    %62 = tpu.concatenate %60, %61 in 1 : vector<4x55xbf16>, vector<4x457xbf16> -> vector<4x512xbf16>
    %63 = vector.broadcast %59 : vector<1x512xbf16> to vector<4x512xbf16>
    %64 = arith.mulf %62, %63 : vector<4x512xbf16>
    %c32 = arith.constant 32 : index
    %c0_31 = arith.constant 0 : index
    %65 = vector.load %arg19[%c32, %c0_31] : memref<216x512xbf16, #tpu.memory_space<vmem>>, vector<4x512xbf16>
    tpu.vector_store %arg19[%c32, %c0_31], %64 {strides = array<i32>} : memref<216x512xbf16, #tpu.memory_space<vmem>>, vector<4x512xbf16>,
    %c9 = arith.constant 9 : index
    %c0_32 = arith.constant 0 : index
    %66 = vector.load %arg2[%c9, %c0_32] : memref<27x512xbf16, #tpu.memory_space<vmem>>, vector<1x512xbf16>
    %cst_33 = arith.constant 0.000000e+00 : bf16
    %67 = vector.broadcast %cst_33 : bf16 to vector<4x9xbf16>
    %68 = vector.extract_strided_slice %2 {offsets = [0, 0], sizes = [4, 503], strides = [1, 1]} : vector<4x512xbf16> to vector<4x503xbf16>
    %69 = tpu.concatenate %67, %68 in 1 : vector<4x9xbf16>, vector<4x503xbf16> -> vector<4x512xbf16>
    %70 = vector.broadcast %66 : vector<1x512xbf16> to vector<4x512xbf16>
    %71 = arith.mulf %69, %70 : vector<4x512xbf16>
    %c36 = arith.constant 36 : index
    %c0_34 = arith.constant 0 : index
    %72 = vector.load %arg19[%c36, %c0_34] : memref<216x512xbf16, #tpu.memory_space<vmem>>, vector<4x512xbf16>
    tpu.vector_store %arg19[%c36, %c0_34], %71 {strides = array<i32>} : memref<216x512xbf16, #tpu.memory_space<vmem>>, vector<4x512xbf16>,
    %c10 = arith.constant 10 : index
    %c0_35 = arith.constant 0 : index
    %73 = vector.load %arg2[%c10, %c0_35] : memref<27x512xbf16, #tpu.memory_space<vmem>>, vector<1x512xbf16>
    %cst_36 = arith.constant 0.000000e+00 : bf16
    %74 = vector.broadcast %cst_36 : bf16 to vector<4x8xbf16>
    %75 = vector.extract_strided_slice %2 {offsets = [0, 0], sizes = [4, 504], strides = [1, 1]} : vector<4x512xbf16> to vector<4x504xbf16>
    %76 = tpu.concatenate %74, %75 in 1 : vector<4x8xbf16>, vector<4x504xbf16> -> vector<4x512xbf16>
    %77 = vector.broadcast %73 : vector<1x512xbf16> to vector<4x512xbf16>
    %78 = arith.mulf %76, %77 : vector<4x512xbf16>
    %c40 = arith.constant 40 : index
    %c0_37 = arith.constant 0 : index
    %79 = vector.load %arg19[%c40, %c0_37] : memref<216x512xbf16, #tpu.memory_space<vmem>>, vector<4x512xbf16>
    tpu.vector_store %arg19[%c40, %c0_37], %78 {strides = array<i32>} : memref<216x512xbf16, #tpu.memory_space<vmem>>, vector<4x512xbf16>,
    %c11 = arith.constant 11 : index
    %c0_38 = arith.constant 0 : index
    %80 = vector.load %arg2[%c11, %c0_38] : memref<27x512xbf16, #tpu.memory_space<vmem>>, vector<1x512xbf16>
    %cst_39 = arith.constant 0.000000e+00 : bf16
    %81 = vector.broadcast %cst_39 : bf16 to vector<4x7xbf16>
    %82 = vector.extract_strided_slice %2 {offsets = [0, 0], sizes = [4, 505], strides = [1, 1]} : vector<4x512xbf16> to vector<4x505xbf16>
    %83 = tpu.concatenate %81, %82 in 1 : vector<4x7xbf16>, vector<4x505xbf16> -> vector<4x512xbf16>
    %84 = vector.broadcast %80 : vector<1x512xbf16> to vector<4x512xbf16>
    %85 = arith.mulf %83, %84 : vector<4x512xbf16>
    %c44 = arith.constant 44 : index
    %c0_40 = arith.constant 0 : index
    %86 = vector.load %arg19[%c44, %c0_40] : memref<216x512xbf16, #tpu.memory_space<vmem>>, vector<4x512xbf16>
    tpu.vector_store %arg19[%c44, %c0_40], %85 {strides = array<i32>} : memref<216x512xbf16, #tpu.memory_space<vmem>>, vector<4x512xbf16>,
    %c12_41 = arith.constant 12 : index
    %c0_42 = arith.constant 0 : index
    %87 = vector.load %arg2[%c12_41, %c0_42] : memref<27x512xbf16, #tpu.memory_space<vmem>>, vector<1x512xbf16>
    %cst_43 = arith.constant 0.000000e+00 : bf16
    %88 = vector.broadcast %cst_43 : bf16 to vector<4x1xbf16>
    %89 = vector.extract_strided_slice %2 {offsets = [0, 0], sizes = [4, 511], strides = [1, 1]} : vector<4x512xbf16> to vector<4x511xbf16>
    %90 = tpu.concatenate %88, %89 in 1 : vector<4x1xbf16>, vector<4x511xbf16> -> vector<4x512xbf16>
    %91 = vector.broadcast %87 : vector<1x512xbf16> to vector<4x512xbf16>
    %92 = arith.mulf %90, %91 : vector<4x512xbf16>
    %c48 = arith.constant 48 : index
    %c0_44 = arith.constant 0 : index
    %93 = vector.load %arg19[%c48, %c0_44] : memref<216x512xbf16, #tpu.memory_space<vmem>>, vector<4x512xbf16>
    tpu.vector_store %arg19[%c48, %c0_44], %92 {strides = array<i32>} : memref<216x512xbf16, #tpu.memory_space<vmem>>, vector<4x512xbf16>,
    %c13 = arith.constant 13 : index
    %c0_45 = arith.constant 0 : index
    %94 = vector.load %arg2[%c13, %c0_45] : memref<27x512xbf16, #tpu.memory_space<vmem>>, vector<1x512xbf16>
    %95 = vector.broadcast %94 : vector<1x512xbf16> to vector<4x512xbf16>
    %96 = arith.mulf %2, %95 : vector<4x512xbf16>
    %c52 = arith.constant 52 : index
    %c0_46 = arith.constant 0 : index
    %97 = vector.load %arg19[%c52, %c0_46] : memref<216x512xbf16, #tpu.memory_space<vmem>>, vector<4x512xbf16>
    tpu.vector_store %arg19[%c52, %c0_46], %96 {strides = array<i32>} : memref<216x512xbf16, #tpu.memory_space<vmem>>, vector<4x512xbf16>,
    %c14 = arith.constant 14 : index
    %c0_47 = arith.constant 0 : index
    %98 = vector.load %arg2[%c14, %c0_47] : memref<27x512xbf16, #tpu.memory_space<vmem>>, vector<1x512xbf16>
    %cst_48 = arith.constant 0.000000e+00 : bf16
    %99 = vector.broadcast %cst_48 : bf16 to vector<4x1xbf16>
    %100 = vector.extract_strided_slice %2 {offsets = [0, 1], sizes = [4, 511], strides = [1, 1]} : vector<4x512xbf16> to vector<4x511xbf16>
    %101 = tpu.concatenate %100, %99 in 1 : vector<4x511xbf16>, vector<4x1xbf16> -> vector<4x512xbf16>
    %102 = vector.broadcast %98 : vector<1x512xbf16> to vector<4x512xbf16>
    %103 = arith.mulf %101, %102 : vector<4x512xbf16>
    %c56 = arith.constant 56 : index
    %c0_49 = arith.constant 0 : index
    %104 = vector.load %arg19[%c56, %c0_49] : memref<216x512xbf16, #tpu.memory_space<vmem>>, vector<4x512xbf16>
    tpu.vector_store %arg19[%c56, %c0_49], %103 {strides = array<i32>} : memref<216x512xbf16, #tpu.memory_space<vmem>>, vector<4x512xbf16>,
    %c15 = arith.constant 15 : index
    %c0_50 = arith.constant 0 : index
    %105 = vector.load %arg2[%c15, %c0_50] : memref<27x512xbf16, #tpu.memory_space<vmem>>, vector<1x512xbf16>
    %cst_51 = arith.constant 0.000000e+00 : bf16
    %106 = vector.broadcast %cst_51 : bf16 to vector<4x7xbf16>
    %107 = vector.extract_strided_slice %2 {offsets = [0, 7], sizes = [4, 505], strides = [1, 1]} : vector<4x512xbf16> to vector<4x505xbf16>
    %108 = tpu.concatenate %107, %106 in 1 : vector<4x505xbf16>, vector<4x7xbf16> -> vector<4x512xbf16>
    %109 = vector.broadcast %105 : vector<1x512xbf16> to vector<4x512xbf16>
    %110 = arith.mulf %108, %109 : vector<4x512xbf16>
    %c60 = arith.constant 60 : index
    %c0_52 = arith.constant 0 : index
    %111 = vector.load %arg19[%c60, %c0_52] : memref<216x512xbf16, #tpu.memory_space<vmem>>, vector<4x512xbf16>
    tpu.vector_store %arg19[%c60, %c0_52], %110 {strides = array<i32>} : memref<216x512xbf16, #tpu.memory_space<vmem>>, vector<4x512xbf16>,
    %c16_53 = arith.constant 16 : index
    %c0_54 = arith.constant 0 : index
    %112 = vector.load %arg2[%c16_53, %c0_54] : memref<27x512xbf16, #tpu.memory_space<vmem>>, vector<1x512xbf16>
    %cst_55 = arith.constant 0.000000e+00 : bf16
    %113 = vector.broadcast %cst_55 : bf16 to vector<4x8xbf16>
    %114 = vector.extract_strided_slice %2 {offsets = [0, 8], sizes = [4, 504], strides = [1, 1]} : vector<4x512xbf16> to vector<4x504xbf16>
    %115 = tpu.concatenate %114, %113 in 1 : vector<4x504xbf16>, vector<4x8xbf16> -> vector<4x512xbf16>
    %116 = vector.broadcast %112 : vector<1x512xbf16> to vector<4x512xbf16>
    %117 = arith.mulf %115, %116 : vector<4x512xbf16>
    %c64 = arith.constant 64 : index
    %c0_56 = arith.constant 0 : index
    %118 = vector.load %arg19[%c64, %c0_56] : memref<216x512xbf16, #tpu.memory_space<vmem>>, vector<4x512xbf16>
    tpu.vector_store %arg19[%c64, %c0_56], %117 {strides = array<i32>} : memref<216x512xbf16, #tpu.memory_space<vmem>>, vector<4x512xbf16>,
    %c17 = arith.constant 17 : index
    %c0_57 = arith.constant 0 : index
    %119 = vector.load %arg2[%c17, %c0_57] : memref<27x512xbf16, #tpu.memory_space<vmem>>, vector<1x512xbf16>
    %cst_58 = arith.constant 0.000000e+00 : bf16
    %120 = vector.broadcast %cst_58 : bf16 to vector<4x9xbf16>
    %121 = vector.extract_strided_slice %2 {offsets = [0, 9], sizes = [4, 503], strides = [1, 1]} : vector<4x512xbf16> to vector<4x503xbf16>
    %122 = tpu.concatenate %121, %120 in 1 : vector<4x503xbf16>, vector<4x9xbf16> -> vector<4x512xbf16>
    %123 = vector.broadcast %119 : vector<1x512xbf16> to vector<4x512xbf16>
    %124 = arith.mulf %122, %123 : vector<4x512xbf16>
    %c68 = arith.constant 68 : index
    %c0_59 = arith.constant 0 : index
    %125 = vector.load %arg19[%c68, %c0_59] : memref<216x512xbf16, #tpu.memory_space<vmem>>, vector<4x512xbf16>
    tpu.vector_store %arg19[%c68, %c0_59], %124 {strides = array<i32>} : memref<216x512xbf16, #tpu.memory_space<vmem>>, vector<4x512xbf16>,
    %c18 = arith.constant 18 : index
    %c0_60 = arith.constant 0 : index
    %126 = vector.load %arg2[%c18, %c0_60] : memref<27x512xbf16, #tpu.memory_space<vmem>>, vector<1x512xbf16>
    %cst_61 = arith.constant 0.000000e+00 : bf16
    %127 = vector.broadcast %cst_61 : bf16 to vector<4x55xbf16>
    %128 = vector.extract_strided_slice %2 {offsets = [0, 55], sizes = [4, 457], strides = [1, 1]} : vector<4x512xbf16> to vector<4x457xbf16>
    %129 = tpu.concatenate %128, %127 in 1 : vector<4x457xbf16>, vector<4x55xbf16> -> vector<4x512xbf16>
    %130 = vector.broadcast %126 : vector<1x512xbf16> to vector<4x512xbf16>
    %131 = arith.mulf %129, %130 : vector<4x512xbf16>
    %c72 = arith.constant 72 : index
    %c0_62 = arith.constant 0 : index
    %132 = vector.load %arg19[%c72, %c0_62] : memref<216x512xbf16, #tpu.memory_space<vmem>>, vector<4x512xbf16>
    tpu.vector_store %arg19[%c72, %c0_62], %131 {strides = array<i32>} : memref<216x512xbf16, #tpu.memory_space<vmem>>, vector<4x512xbf16>,
    %c19 = arith.constant 19 : index
    %c0_63 = arith.constant 0 : index
    %133 = vector.load %arg2[%c19, %c0_63] : memref<27x512xbf16, #tpu.memory_space<vmem>>, vector<1x512xbf16>
    %cst_64 = arith.constant 0.000000e+00 : bf16
    %134 = vector.broadcast %cst_64 : bf16 to vector<4x56xbf16>
    %135 = vector.extract_strided_slice %2 {offsets = [0, 56], sizes = [4, 456], strides = [1, 1]} : vector<4x512xbf16> to vector<4x456xbf16>
    %136 = tpu.concatenate %135, %134 in 1 : vector<4x456xbf16>, vector<4x56xbf16> -> vector<4x512xbf16>
    %137 = vector.broadcast %133 : vector<1x512xbf16> to vector<4x512xbf16>
    %138 = arith.mulf %136, %137 : vector<4x512xbf16>
    %c76 = arith.constant 76 : index
    %c0_65 = arith.constant 0 : index
    %139 = vector.load %arg19[%c76, %c0_65] : memref<216x512xbf16, #tpu.memory_space<vmem>>, vector<4x512xbf16>
    tpu.vector_store %arg19[%c76, %c0_65], %138 {strides = array<i32>} : memref<216x512xbf16, #tpu.memory_space<vmem>>, vector<4x512xbf16>,
    %c20_66 = arith.constant 20 : index
    %c0_67 = arith.constant 0 : index
    %140 = vector.load %arg2[%c20_66, %c0_67] : memref<27x512xbf16, #tpu.memory_space<vmem>>, vector<1x512xbf16>
    %cst_68 = arith.constant 0.000000e+00 : bf16
    %141 = vector.broadcast %cst_68 : bf16 to vector<4x57xbf16>
    %142 = vector.extract_strided_slice %2 {offsets = [0, 57], sizes = [4, 455], strides = [1, 1]} : vector<4x512xbf16> to vector<4x455xbf16>
    %143 = tpu.concatenate %142, %141 in 1 : vector<4x455xbf16>, vector<4x57xbf16> -> vector<4x512xbf16>
    %144 = vector.broadcast %140 : vector<1x512xbf16> to vector<4x512xbf16>
    %145 = arith.mulf %143, %144 : vector<4x512xbf16>
    %c80 = arith.constant 80 : index
    %c0_69 = arith.constant 0 : index
    %146 = vector.load %arg19[%c80, %c0_69] : memref<216x512xbf16, #tpu.memory_space<vmem>>, vector<4x512xbf16>
    tpu.vector_store %arg19[%c80, %c0_69], %145 {strides = array<i32>} : memref<216x512xbf16, #tpu.memory_space<vmem>>, vector<4x512xbf16>,
    %c21 = arith.constant 21 : index
    %c0_70 = arith.constant 0 : index
    %147 = vector.load %arg2[%c21, %c0_70] : memref<27x512xbf16, #tpu.memory_space<vmem>>, vector<1x512xbf16>
    %cst_71 = arith.constant 0.000000e+00 : bf16
    %148 = vector.broadcast %cst_71 : bf16 to vector<4x63xbf16>
    %149 = vector.extract_strided_slice %2 {offsets = [0, 63], sizes = [4, 449], strides = [1, 1]} : vector<4x512xbf16> to vector<4x449xbf16>
    %150 = tpu.concatenate %149, %148 in 1 : vector<4x449xbf16>, vector<4x63xbf16> -> vector<4x512xbf16>
    %151 = vector.broadcast %147 : vector<1x512xbf16> to vector<4x512xbf16>
    %152 = arith.mulf %150, %151 : vector<4x512xbf16>
    %c84 = arith.constant 84 : index
    %c0_72 = arith.constant 0 : index
    %153 = vector.load %arg19[%c84, %c0_72] : memref<216x512xbf16, #tpu.memory_space<vmem>>, vector<4x512xbf16>
    tpu.vector_store %arg19[%c84, %c0_72], %152 {strides = array<i32>} : memref<216x512xbf16, #tpu.memory_space<vmem>>, vector<4x512xbf16>,
    %c22 = arith.constant 22 : index
    %c0_73 = arith.constant 0 : index
    %154 = vector.load %arg2[%c22, %c0_73] : memref<27x512xbf16, #tpu.memory_space<vmem>>, vector<1x512xbf16>
    %cst_74 = arith.constant 0.000000e+00 : bf16
    %155 = vector.broadcast %cst_74 : bf16 to vector<4x64xbf16>
    %156 = vector.extract_strided_slice %2 {offsets = [0, 64], sizes = [4, 448], strides = [1, 1]} : vector<4x512xbf16> to vector<4x448xbf16>
    %157 = tpu.concatenate %156, %155 in 1 : vector<4x448xbf16>, vector<4x64xbf16> -> vector<4x512xbf16>
    %158 = vector.broadcast %154 : vector<1x512xbf16> to vector<4x512xbf16>
    %159 = arith.mulf %157, %158 : vector<4x512xbf16>
    %c88 = arith.constant 88 : index
    %c0_75 = arith.constant 0 : index
    %160 = vector.load %arg19[%c88, %c0_75] : memref<216x512xbf16, #tpu.memory_space<vmem>>, vector<4x512xbf16>
    tpu.vector_store %arg19[%c88, %c0_75], %159 {strides = array<i32>} : memref<216x512xbf16, #tpu.memory_space<vmem>>, vector<4x512xbf16>,
    %c23 = arith.constant 23 : index
    %c0_76 = arith.constant 0 : index
    %161 = vector.load %arg2[%c23, %c0_76] : memref<27x512xbf16, #tpu.memory_space<vmem>>, vector<1x512xbf16>
    %cst_77 = arith.constant 0.000000e+00 : bf16
    %162 = vector.broadcast %cst_77 : bf16 to vector<4x65xbf16>
    %163 = vector.extract_strided_slice %2 {offsets = [0, 65], sizes = [4, 447], strides = [1, 1]} : vector<4x512xbf16> to vector<4x447xbf16>
    %164 = tpu.concatenate %163, %162 in 1 : vector<4x447xbf16>, vector<4x65xbf16> -> vector<4x512xbf16>
    %165 = vector.broadcast %161 : vector<1x512xbf16> to vector<4x512xbf16>
    %166 = arith.mulf %164, %165 : vector<4x512xbf16>
    %c92 = arith.constant 92 : index
    %c0_78 = arith.constant 0 : index
    %167 = vector.load %arg19[%c92, %c0_78] : memref<216x512xbf16, #tpu.memory_space<vmem>>, vector<4x512xbf16>
    tpu.vector_store %arg19[%c92, %c0_78], %166 {strides = array<i32>} : memref<216x512xbf16, #tpu.memory_space<vmem>>, vector<4x512xbf16>,
    %c24_79 = arith.constant 24 : index
    %c0_80 = arith.constant 0 : index
    %168 = vector.load %arg2[%c24_79, %c0_80] : memref<27x512xbf16, #tpu.memory_space<vmem>>, vector<1x512xbf16>
    %cst_81 = arith.constant 0.000000e+00 : bf16
    %169 = vector.broadcast %cst_81 : bf16 to vector<4x71xbf16>
    %170 = vector.extract_strided_slice %2 {offsets = [0, 71], sizes = [4, 441], strides = [1, 1]} : vector<4x512xbf16> to vector<4x441xbf16>
    %171 = tpu.concatenate %170, %169 in 1 : vector<4x441xbf16>, vector<4x71xbf16> -> vector<4x512xbf16>
    %172 = vector.broadcast %168 : vector<1x512xbf16> to vector<4x512xbf16>
    %173 = arith.mulf %171, %172 : vector<4x512xbf16>
    %c96 = arith.constant 96 : index
    %c0_82 = arith.constant 0 : index
    %174 = vector.load %arg19[%c96, %c0_82] : memref<216x512xbf16, #tpu.memory_space<vmem>>, vector<4x512xbf16>
    tpu.vector_store %arg19[%c96, %c0_82], %173 {strides = array<i32>} : memref<216x512xbf16, #tpu.memory_space<vmem>>, vector<4x512xbf16>,
    %c25 = arith.constant 25 : index
    %c0_83 = arith.constant 0 : index
    %175 = vector.load %arg2[%c25, %c0_83] : memref<27x512xbf16, #tpu.memory_space<vmem>>, vector<1x512xbf16>
    %cst_84 = arith.constant 0.000000e+00 : bf16
    %176 = vector.broadcast %cst_84 : bf16 to vector<4x72xbf16>
    %177 = vector.extract_strided_slice %2 {offsets = [0, 72], sizes = [4, 440], strides = [1, 1]} : vector<4x512xbf16> to vector<4x440xbf16>
    %178 = tpu.concatenate %177, %176 in 1 : vector<4x440xbf16>, vector<4x72xbf16> -> vector<4x512xbf16>
    %179 = vector.broadcast %175 : vector<1x512xbf16> to vector<4x512xbf16>
    %180 = arith.mulf %178, %179 : vector<4x512xbf16>
    %c100 = arith.constant 100 : index
    %c0_85 = arith.constant 0 : index
    %181 = vector.load %arg19[%c100, %c0_85] : memref<216x512xbf16, #tpu.memory_space<vmem>>, vector<4x512xbf16>
    tpu.vector_store %arg19[%c100, %c0_85], %180 {strides = array<i32>} : memref<216x512xbf16, #tpu.memory_space<vmem>>, vector<4x512xbf16>,
    %c26 = arith.constant 26 : index
    %c0_86 = arith.constant 0 : index
    %182 = vector.load %arg2[%c26, %c0_86] : memref<27x512xbf16, #tpu.memory_space<vmem>>, vector<1x512xbf16>
    %cst_87 = arith.constant 0.000000e+00 : bf16
    %183 = vector.broadcast %cst_87 : bf16 to vector<4x73xbf16>
    %184 = vector.extract_strided_slice %2 {offsets = [0, 73], sizes = [4, 439], strides = [1, 1]} : vector<4x512xbf16> to vector<4x439xbf16>
    %185 = tpu.concatenate %184, %183 in 1 : vector<4x439xbf16>, vector<4x73xbf16> -> vector<4x512xbf16>
    %186 = vector.broadcast %182 : vector<1x512xbf16> to vector<4x512xbf16>
    %187 = arith.mulf %185, %186 : vector<4x512xbf16>
    %c104 = arith.constant 104 : index
    %c0_88 = arith.constant 0 : index
    %188 = vector.load %arg19[%c104, %c0_88] : memref<216x512xbf16, #tpu.memory_space<vmem>>, vector<4x512xbf16>
    tpu.vector_store %arg19[%c104, %c0_88], %187 {strides = array<i32>} : memref<216x512xbf16, #tpu.memory_space<vmem>>, vector<4x512xbf16>,
    %c0_89 = arith.constant 0 : index
    %c0_90 = arith.constant 0 : index
    %189 = vector.load %arg3[%c0_89, %c0_90] : memref<4x108xbf16, #tpu.memory_space<vmem>>, vector<4x108xbf16>
    %c0_91 = arith.constant 0 : index
    %c0_92 = arith.constant 0 : index
    %190 = vector.load %arg19[%c0_91, %c0_92] : memref<216x512xbf16, #tpu.memory_space<vmem>>, vector<108x512xbf16>
    %cst_93 = arith.constant dense<0.000000e+00> : vector<4x512xf32>
    %191 = tpu.matmul %189, %190, %cst_93 {dimension_numbers = #tpu.dot_dimension_numbers<[1], [0], [0], [1], [0, 0, 1, 1], [], []>} : vector<4x108xbf16>, vector<108x512xbf16>, vector<4x512xf32> -> vector<4x512xf32>
    %c0_94 = arith.constant 0 : index
    %c0_95 = arith.constant 0 : index
    %192 = vector.load %arg6[%c0_94, %c0_95] : memref<4x1xf32, #tpu.memory_space<vmem>>, vector<4x1xf32>
    %c0_96 = arith.constant 0 : index
    %c0_97 = arith.constant 0 : index
    %193 = vector.load %arg7[%c0_96, %c0_97] : memref<4x1xf32, #tpu.memory_space<vmem>>, vector<4x1xf32>
    %c0_98 = arith.constant 0 : index
    %c0_99 = arith.constant 0 : index
    %194 = vector.load %arg8[%c0_98, %c0_99] : memref<4x1xf32, #tpu.memory_space<vmem>>, vector<4x1xf32>
    %195 = vector.broadcast %192 : vector<4x1xf32> to vector<4x512xf32>
    %196 = arith.addf %191, %195 : vector<4x512xf32>
    %cst_100 = arith.constant dense<0.000000e+00> : vector<4xf32>
    %197 = vector.multi_reduction <add>, %196, %cst_100 [1] : vector<4x512xf32> to vector<4xf32>
    %198 = vector.shape_cast %197 : vector<4xf32> to vector<4x1xf32>
    %cst_101 = arith.constant 0.001953125 : f32
    %199 = vector.broadcast %cst_101 : f32 to vector<4x1xf32>
    %200 = arith.mulf %198, %199 : vector<4x1xf32>
    %201 = arith.mulf %196, %196 : vector<4x512xf32>
    %cst_102 = arith.constant dense<0.000000e+00> : vector<4xf32>
    %202 = vector.multi_reduction <add>, %201, %cst_102 [1] : vector<4x512xf32> to vector<4xf32>
    %203 = vector.shape_cast %202 : vector<4xf32> to vector<4x1xf32>
    %cst_103 = arith.constant 0.001953125 : f32
    %204 = vector.broadcast %cst_103 : f32 to vector<4x1xf32>
    %205 = arith.mulf %203, %204 : vector<4x1xf32>
    %206 = arith.mulf %200, %200 : vector<4x1xf32>
    %207 = arith.subf %205, %206 : vector<4x1xf32>
    %cst_104 = arith.constant 0.000000e+00 : f32
    %208 = vector.broadcast %cst_104 : f32 to vector<4x1xf32>
    %209 = arith.maximumf %207, %208 : vector<4x1xf32>
    %cst_105 = arith.constant 9.99999974E-6 : f32
    %210 = vector.broadcast %cst_105 : f32 to vector<4x1xf32>
    %211 = arith.addf %209, %210 : vector<4x1xf32>
    %212 = math.rsqrt %211 : vector<4x1xf32>
    %213 = arith.mulf %193, %212 : vector<4x1xf32>
    %214 = vector.broadcast %200 : vector<4x1xf32> to vector<4x512xf32>
    %215 = arith.subf %196, %214 : vector<4x512xf32>
    %216 = vector.broadcast %213 : vector<4x1xf32> to vector<4x512xf32>
    %217 = arith.mulf %215, %216 : vector<4x512xf32>
    %218 = vector.broadcast %194 : vector<4x1xf32> to vector<4x512xf32>
    %219 = arith.addf %217, %218 : vector<4x512xf32>
    %cst_106 = arith.constant 0.000000e+00 : f32
    %220 = vector.broadcast %cst_106 : f32 to vector<4x512xf32>
    %221 = arith.cmpf oge, %219, %220 : vector<4x512xf32>
    %cst_107 = arith.constant 0.00999999977 : f32
    %222 = vector.broadcast %cst_107 : f32 to vector<4x512xf32>
    %223 = arith.mulf %222, %219 : vector<4x512xf32>
    %224 = arith.select %221, %219, %223 : vector<4x512xi1>, vector<4x512xf32>
    %225 = tpu.concatenate %224, %1 in 0 : vector<4x512xf32>, vector<4x512xf32> -> vector<8x512xf32>
    %c0_108 = arith.constant 0 : index
    %c0_109 = arith.constant 0 : index
    %c0_110 = arith.constant 0 : index
    %226 = vector.load %arg15[%c0_108, %c0_109, %c0_110] : memref<1x8x512xf32, #tpu.memory_space<vmem>>, vector<1x8x512xf32>
    %227 = vector.shape_cast %226 : vector<1x8x512xf32> to vector<8x512xf32>
    %228 = vector.shape_cast %225 : vector<8x512xf32> to vector<1x8x512xf32>
    tpu.vector_store %arg15[%c0_108, %c0_109, %c0_110], %228 {strides = array<i32>} : memref<1x8x512xf32, #tpu.memory_space<vmem>>, vector<1x8x512xf32>,
    %229 = arith.truncf %225 : vector<8x512xf32> to vector<8x512xbf16>
    %c0_111 = arith.constant 0 : index
    %c0_112 = arith.constant 0 : index
    %230 = vector.load %arg2[%c0_111, %c0_112] : memref<27x512xbf16, #tpu.memory_space<vmem>>, vector<1x512xbf16>
    %cst_113 = arith.constant 0.000000e+00 : bf16
    %231 = vector.broadcast %cst_113 : bf16 to vector<8x73xbf16>
    %232 = vector.extract_strided_slice %229 {offsets = [0, 0], sizes = [8, 439], strides = [1, 1]} : vector<8x512xbf16> to vector<8x439xbf16>
    %233 = tpu.concatenate %231, %232 in 1 : vector<8x73xbf16>, vector<8x439xbf16> -> vector<8x512xbf16>
    %234 = vector.broadcast %230 : vector<1x512xbf16> to vector<8x512xbf16>
    %235 = arith.mulf %233, %234 : vector<8x512xbf16>
    %c0_114 = arith.constant 0 : index
    %c0_115 = arith.constant 0 : index
    %236 = vector.load %arg19[%c0_114, %c0_115] : memref<216x512xbf16, #tpu.memory_space<vmem>>, vector<8x512xbf16>
    tpu.vector_store %arg19[%c0_114, %c0_115], %235 {strides = array<i32>} : memref<216x512xbf16, #tpu.memory_space<vmem>>, vector<8x512xbf16>,
    %c1_116 = arith.constant 1 : index
    %c0_117 = arith.constant 0 : index
    %237 = vector.load %arg2[%c1_116, %c0_117] : memref<27x512xbf16, #tpu.memory_space<vmem>>, vector<1x512xbf16>
    %cst_118 = arith.constant 0.000000e+00 : bf16
    %238 = vector.broadcast %cst_118 : bf16 to vector<8x72xbf16>
    %239 = vector.extract_strided_slice %229 {offsets = [0, 0], sizes = [8, 440], strides = [1, 1]} : vector<8x512xbf16> to vector<8x440xbf16>
    %240 = tpu.concatenate %238, %239 in 1 : vector<8x72xbf16>, vector<8x440xbf16> -> vector<8x512xbf16>
    %241 = vector.broadcast %237 : vector<1x512xbf16> to vector<8x512xbf16>
    %242 = arith.mulf %240, %241 : vector<8x512xbf16>
    %c8_119 = arith.constant 8 : index
    %c0_120 = arith.constant 0 : index
    %243 = vector.load %arg19[%c8_119, %c0_120] : memref<216x512xbf16, #tpu.memory_space<vmem>>, vector<8x512xbf16>
    tpu.vector_store %arg19[%c8_119, %c0_120], %242 {strides = array<i32>} : memref<216x512xbf16, #tpu.memory_space<vmem>>, vector<8x512xbf16>,
    %c2_121 = arith.constant 2 : index
    %c0_122 = arith.constant 0 : index
    %244 = vector.load %arg2[%c2_121, %c0_122] : memref<27x512xbf16, #tpu.memory_space<vmem>>, vector<1x512xbf16>
    %cst_123 = arith.constant 0.000000e+00 : bf16
    %245 = vector.broadcast %cst_123 : bf16 to vector<8x71xbf16>
    %246 = vector.extract_strided_slice %229 {offsets = [0, 0], sizes = [8, 441], strides = [1, 1]} : vector<8x512xbf16> to vector<8x441xbf16>
    %247 = tpu.concatenate %245, %246 in 1 : vector<8x71xbf16>, vector<8x441xbf16> -> vector<8x512xbf16>
    %248 = vector.broadcast %244 : vector<1x512xbf16> to vector<8x512xbf16>
    %249 = arith.mulf %247, %248 : vector<8x512xbf16>
    %c16_124 = arith.constant 16 : index
    %c0_125 = arith.constant 0 : index
    %250 = vector.load %arg19[%c16_124, %c0_125] : memref<216x512xbf16, #tpu.memory_space<vmem>>, vector<8x512xbf16>
    tpu.vector_store %arg19[%c16_124, %c0_125], %249 {strides = array<i32>} : memref<216x512xbf16, #tpu.memory_space<vmem>>, vector<8x512xbf16>,
    %c3_126 = arith.constant 3 : index
    %c0_127 = arith.constant 0 : index
    %251 = vector.load %arg2[%c3_126, %c0_127] : memref<27x512xbf16, #tpu.memory_space<vmem>>, vector<1x512xbf16>
    %cst_128 = arith.constant 0.000000e+00 : bf16
    %252 = vector.broadcast %cst_128 : bf16 to vector<8x65xbf16>
    %253 = vector.extract_strided_slice %229 {offsets = [0, 0], sizes = [8, 447], strides = [1, 1]} : vector<8x512xbf16> to vector<8x447xbf16>
    %254 = tpu.concatenate %252, %253 in 1 : vector<8x65xbf16>, vector<8x447xbf16> -> vector<8x512xbf16>
    %255 = vector.broadcast %251 : vector<1x512xbf16> to vector<8x512xbf16>
    %256 = arith.mulf %254, %255 : vector<8x512xbf16>
    %c24_129 = arith.constant 24 : index
    %c0_130 = arith.constant 0 : index
    %257 = vector.load %arg19[%c24_129, %c0_130] : memref<216x512xbf16, #tpu.memory_space<vmem>>, vector<8x512xbf16>
    tpu.vector_store %arg19[%c24_129, %c0_130], %256 {strides = array<i32>} : memref<216x512xbf16, #tpu.memory_space<vmem>>, vector<8x512xbf16>,
    %c4_131 = arith.constant 4 : index
    %c0_132 = arith.constant 0 : index
    %258 = vector.load %arg2[%c4_131, %c0_132] : memref<27x512xbf16, #tpu.memory_space<vmem>>, vector<1x512xbf16>
    %cst_133 = arith.constant 0.000000e+00 : bf16
    %259 = vector.broadcast %cst_133 : bf16 to vector<8x64xbf16>
    %260 = vector.extract_strided_slice %229 {offsets = [0, 0], sizes = [8, 448], strides = [1, 1]} : vector<8x512xbf16> to vector<8x448xbf16>
    %261 = tpu.concatenate %259, %260 in 1 : vector<8x64xbf16>, vector<8x448xbf16> -> vector<8x512xbf16>
    %262 = vector.broadcast %258 : vector<1x512xbf16> to vector<8x512xbf16>
    %263 = arith.mulf %261, %262 : vector<8x512xbf16>
    %c32_134 = arith.constant 32 : index
    %c0_135 = arith.constant 0 : index
    %264 = vector.load %arg19[%c32_134, %c0_135] : memref<216x512xbf16, #tpu.memory_space<vmem>>, vector<8x512xbf16>
    tpu.vector_store %arg19[%c32_134, %c0_135], %263 {strides = array<i32>} : memref<216x512xbf16, #tpu.memory_space<vmem>>, vector<8x512xbf16>,
    %c5_136 = arith.constant 5 : index
    %c0_137 = arith.constant 0 : index
    %265 = vector.load %arg2[%c5_136, %c0_137] : memref<27x512xbf16, #tpu.memory_space<vmem>>, vector<1x512xbf16>
    %cst_138 = arith.constant 0.000000e+00 : bf16
    %266 = vector.broadcast %cst_138 : bf16 to vector<8x63xbf16>
    %267 = vector.extract_strided_slice %229 {offsets = [0, 0], sizes = [8, 449], strides = [1, 1]} : vector<8x512xbf16> to vector<8x449xbf16>
    %268 = tpu.concatenate %266, %267 in 1 : vector<8x63xbf16>, vector<8x449xbf16> -> vector<8x512xbf16>
    %269 = vector.broadcast %265 : vector<1x512xbf16> to vector<8x512xbf16>
    %270 = arith.mulf %268, %269 : vector<8x512xbf16>
    %c40_139 = arith.constant 40 : index
    %c0_140 = arith.constant 0 : index
    %271 = vector.load %arg19[%c40_139, %c0_140] : memref<216x512xbf16, #tpu.memory_space<vmem>>, vector<8x512xbf16>
    tpu.vector_store %arg19[%c40_139, %c0_140], %270 {strides = array<i32>} : memref<216x512xbf16, #tpu.memory_space<vmem>>, vector<8x512xbf16>,
    %c6_141 = arith.constant 6 : index
    %c0_142 = arith.constant 0 : index
    %272 = vector.load %arg2[%c6_141, %c0_142] : memref<27x512xbf16, #tpu.memory_space<vmem>>, vector<1x512xbf16>
    %cst_143 = arith.constant 0.000000e+00 : bf16
    %273 = vector.broadcast %cst_143 : bf16 to vector<8x57xbf16>
    %274 = vector.extract_strided_slice %229 {offsets = [0, 0], sizes = [8, 455], strides = [1, 1]} : vector<8x512xbf16> to vector<8x455xbf16>
    %275 = tpu.concatenate %273, %274 in 1 : vector<8x57xbf16>, vector<8x455xbf16> -> vector<8x512xbf16>
    %276 = vector.broadcast %272 : vector<1x512xbf16> to vector<8x512xbf16>
    %277 = arith.mulf %275, %276 : vector<8x512xbf16>
    %c48_144 = arith.constant 48 : index
    %c0_145 = arith.constant 0 : index
    %278 = vector.load %arg19[%c48_144, %c0_145] : memref<216x512xbf16, #tpu.memory_space<vmem>>, vector<8x512xbf16>
    tpu.vector_store %arg19[%c48_144, %c0_145], %277 {strides = array<i32>} : memref<216x512xbf16, #tpu.memory_space<vmem>>, vector<8x512xbf16>,
    %c7_146 = arith.constant 7 : index
    %c0_147 = arith.constant 0 : index
    %279 = vector.load %arg2[%c7_146, %c0_147] : memref<27x512xbf16, #tpu.memory_space<vmem>>, vector<1x512xbf16>
    %cst_148 = arith.constant 0.000000e+00 : bf16
    %280 = vector.broadcast %cst_148 : bf16 to vector<8x56xbf16>
    %281 = vector.extract_strided_slice %229 {offsets = [0, 0], sizes = [8, 456], strides = [1, 1]} : vector<8x512xbf16> to vector<8x456xbf16>
    %282 = tpu.concatenate %280, %281 in 1 : vector<8x56xbf16>, vector<8x456xbf16> -> vector<8x512xbf16>
    %283 = vector.broadcast %279 : vector<1x512xbf16> to vector<8x512xbf16>
    %284 = arith.mulf %282, %283 : vector<8x512xbf16>
    %c56_149 = arith.constant 56 : index
    %c0_150 = arith.constant 0 : index
    %285 = vector.load %arg19[%c56_149, %c0_150] : memref<216x512xbf16, #tpu.memory_space<vmem>>, vector<8x512xbf16>
    tpu.vector_store %arg19[%c56_149, %c0_150], %284 {strides = array<i32>} : memref<216x512xbf16, #tpu.memory_space<vmem>>, vector<8x512xbf16>,
    %c8_151 = arith.constant 8 : index
    %c0_152 = arith.constant 0 : index
    %286 = vector.load %arg2[%c8_151, %c0_152] : memref<27x512xbf16, #tpu.memory_space<vmem>>, vector<1x512xbf16>
    %cst_153 = arith.constant 0.000000e+00 : bf16
    %287 = vector.broadcast %cst_153 : bf16 to vector<8x55xbf16>
    %288 = vector.extract_strided_slice %229 {offsets = [0, 0], sizes = [8, 457], strides = [1, 1]} : vector<8x512xbf16> to vector<8x457xbf16>
    %289 = tpu.concatenate %287, %288 in 1 : vector<8x55xbf16>, vector<8x457xbf16> -> vector<8x512xbf16>
    %290 = vector.broadcast %286 : vector<1x512xbf16> to vector<8x512xbf16>
    %291 = arith.mulf %289, %290 : vector<8x512xbf16>
    %c64_154 = arith.constant 64 : index
    %c0_155 = arith.constant 0 : index
    %292 = vector.load %arg19[%c64_154, %c0_155] : memref<216x512xbf16, #tpu.memory_space<vmem>>, vector<8x512xbf16>
    tpu.vector_store %arg19[%c64_154, %c0_155], %291 {strides = array<i32>} : memref<216x512xbf16, #tpu.memory_space<vmem>>, vector<8x512xbf16>,
    %c9_156 = arith.constant 9 : index
    %c0_157 = arith.constant 0 : index
    %293 = vector.load %arg2[%c9_156, %c0_157] : memref<27x512xbf16, #tpu.memory_space<vmem>>, vector<1x512xbf16>
    %cst_158 = arith.constant 0.000000e+00 : bf16
    %294 = vector.broadcast %cst_158 : bf16 to vector<8x9xbf16>
    %295 = vector.extract_strided_slice %229 {offsets = [0, 0], sizes = [8, 503], strides = [1, 1]} : vector<8x512xbf16> to vector<8x503xbf16>
    %296 = tpu.concatenate %294, %295 in 1 : vector<8x9xbf16>, vector<8x503xbf16> -> vector<8x512xbf16>
    %297 = vector.broadcast %293 : vector<1x512xbf16> to vector<8x512xbf16>
    %298 = arith.mulf %296, %297 : vector<8x512xbf16>
    %c72_159 = arith.constant 72 : index
    %c0_160 = arith.constant 0 : index
    %299 = vector.load %arg19[%c72_159, %c0_160] : memref<216x512xbf16, #tpu.memory_space<vmem>>, vector<8x512xbf16>
    tpu.vector_store %arg19[%c72_159, %c0_160], %298 {strides = array<i32>} : memref<216x512xbf16, #tpu.memory_space<vmem>>, vector<8x512xbf16>,
    %c10_161 = arith.constant 10 : index
    %c0_162 = arith.constant 0 : index
    %300 = vector.load %arg2[%c10_161, %c0_162] : memref<27x512xbf16, #tpu.memory_space<vmem>>, vector<1x512xbf16>
    %cst_163 = arith.constant 0.000000e+00 : bf16
    %301 = vector.broadcast %cst_163 : bf16 to vector<8x8xbf16>
    %302 = vector.extract_strided_slice %229 {offsets = [0, 0], sizes = [8, 504], strides = [1, 1]} : vector<8x512xbf16> to vector<8x504xbf16>
    %303 = tpu.concatenate %301, %302 in 1 : vector<8x8xbf16>, vector<8x504xbf16> -> vector<8x512xbf16>
    %304 = vector.broadcast %300 : vector<1x512xbf16> to vector<8x512xbf16>
    %305 = arith.mulf %303, %304 : vector<8x512xbf16>
    %c80_164 = arith.constant 80 : index
    %c0_165 = arith.constant 0 : index
    %306 = vector.load %arg19[%c80_164, %c0_165] : memref<216x512xbf16, #tpu.memory_space<vmem>>, vector<8x512xbf16>
    tpu.vector_store %arg19[%c80_164, %c0_165], %305 {strides = array<i32>} : memref<216x512xbf16, #tpu.memory_space<vmem>>, vector<8x512xbf16>,
    %c11_166 = arith.constant 11 : index
    %c0_167 = arith.constant 0 : index
    %307 = vector.load %arg2[%c11_166, %c0_167] : memref<27x512xbf16, #tpu.memory_space<vmem>>, vector<1x512xbf16>
    %cst_168 = arith.constant 0.000000e+00 : bf16
    %308 = vector.broadcast %cst_168 : bf16 to vector<8x7xbf16>
    %309 = vector.extract_strided_slice %229 {offsets = [0, 0], sizes = [8, 505], strides = [1, 1]} : vector<8x512xbf16> to vector<8x505xbf16>
    %310 = tpu.concatenate %308, %309 in 1 : vector<8x7xbf16>, vector<8x505xbf16> -> vector<8x512xbf16>
    %311 = vector.broadcast %307 : vector<1x512xbf16> to vector<8x512xbf16>
    %312 = arith.mulf %310, %311 : vector<8x512xbf16>
    %c88_169 = arith.constant 88 : index
    %c0_170 = arith.constant 0 : index
    %313 = vector.load %arg19[%c88_169, %c0_170] : memref<216x512xbf16, #tpu.memory_space<vmem>>, vector<8x512xbf16>
    tpu.vector_store %arg19[%c88_169, %c0_170], %312 {strides = array<i32>} : memref<216x512xbf16, #tpu.memory_space<vmem>>, vector<8x512xbf16>,
    %c12_171 = arith.constant 12 : index
    %c0_172 = arith.constant 0 : index
    %314 = vector.load %arg2[%c12_171, %c0_172] : memref<27x512xbf16, #tpu.memory_space<vmem>>, vector<1x512xbf16>
    %cst_173 = arith.constant 0.000000e+00 : bf16
    %315 = vector.broadcast %cst_173 : bf16 to vector<8x1xbf16>
    %316 = vector.extract_strided_slice %229 {offsets = [0, 0], sizes = [8, 511], strides = [1, 1]} : vector<8x512xbf16> to vector<8x511xbf16>
    %317 = tpu.concatenate %315, %316 in 1 : vector<8x1xbf16>, vector<8x511xbf16> -> vector<8x512xbf16>
    %318 = vector.broadcast %314 : vector<1x512xbf16> to vector<8x512xbf16>
    %319 = arith.mulf %317, %318 : vector<8x512xbf16>
    %c96_174 = arith.constant 96 : index
    %c0_175 = arith.constant 0 : index
    %320 = vector.load %arg19[%c96_174, %c0_175] : memref<216x512xbf16, #tpu.memory_space<vmem>>, vector<8x512xbf16>
    tpu.vector_store %arg19[%c96_174, %c0_175], %319 {strides = array<i32>} : memref<216x512xbf16, #tpu.memory_space<vmem>>, vector<8x512xbf16>,
    %c13_176 = arith.constant 13 : index
    %c0_177 = arith.constant 0 : index
    %321 = vector.load %arg2[%c13_176, %c0_177] : memref<27x512xbf16, #tpu.memory_space<vmem>>, vector<1x512xbf16>
    %322 = vector.broadcast %321 : vector<1x512xbf16> to vector<8x512xbf16>
    %323 = arith.mulf %229, %322 : vector<8x512xbf16>
    %c104_178 = arith.constant 104 : index
    %c0_179 = arith.constant 0 : index
    %324 = vector.load %arg19[%c104_178, %c0_179] : memref<216x512xbf16, #tpu.memory_space<vmem>>, vector<8x512xbf16>
    tpu.vector_store %arg19[%c104_178, %c0_179], %323 {strides = array<i32>} : memref<216x512xbf16, #tpu.memory_space<vmem>>, vector<8x512xbf16>,
    %c14_180 = arith.constant 14 : index
    %c0_181 = arith.constant 0 : index
    %325 = vector.load %arg2[%c14_180, %c0_181] : memref<27x512xbf16, #tpu.memory_space<vmem>>, vector<1x512xbf16>
    %cst_182 = arith.constant 0.000000e+00 : bf16
    %326 = vector.broadcast %cst_182 : bf16 to vector<8x1xbf16>
    %327 = vector.extract_strided_slice %229 {offsets = [0, 1], sizes = [8, 511], strides = [1, 1]} : vector<8x512xbf16> to vector<8x511xbf16>
    %328 = tpu.concatenate %327, %326 in 1 : vector<8x511xbf16>, vector<8x1xbf16> -> vector<8x512xbf16>
    %329 = vector.broadcast %325 : vector<1x512xbf16> to vector<8x512xbf16>
    %330 = arith.mulf %328, %329 : vector<8x512xbf16>
    %c112 = arith.constant 112 : index
    %c0_183 = arith.constant 0 : index
    %331 = vector.load %arg19[%c112, %c0_183] : memref<216x512xbf16, #tpu.memory_space<vmem>>, vector<8x512xbf16>
    tpu.vector_store %arg19[%c112, %c0_183], %330 {strides = array<i32>} : memref<216x512xbf16, #tpu.memory_space<vmem>>, vector<8x512xbf16>,
    %c15_184 = arith.constant 15 : index
    %c0_185 = arith.constant 0 : index
    %332 = vector.load %arg2[%c15_184, %c0_185] : memref<27x512xbf16, #tpu.memory_space<vmem>>, vector<1x512xbf16>
    %cst_186 = arith.constant 0.000000e+00 : bf16
    %333 = vector.broadcast %cst_186 : bf16 to vector<8x7xbf16>
    %334 = vector.extract_strided_slice %229 {offsets = [0, 7], sizes = [8, 505], strides = [1, 1]} : vector<8x512xbf16> to vector<8x505xbf16>
    %335 = tpu.concatenate %334, %333 in 1 : vector<8x505xbf16>, vector<8x7xbf16> -> vector<8x512xbf16>
    %336 = vector.broadcast %332 : vector<1x512xbf16> to vector<8x512xbf16>
    %337 = arith.mulf %335, %336 : vector<8x512xbf16>
    %c120 = arith.constant 120 : index
    %c0_187 = arith.constant 0 : index
    %338 = vector.load %arg19[%c120, %c0_187] : memref<216x512xbf16, #tpu.memory_space<vmem>>, vector<8x512xbf16>
    tpu.vector_store %arg19[%c120, %c0_187], %337 {strides = array<i32>} : memref<216x512xbf16, #tpu.memory_space<vmem>>, vector<8x512xbf16>,
    %c16_188 = arith.constant 16 : index
    %c0_189 = arith.constant 0 : index
    %339 = vector.load %arg2[%c16_188, %c0_189] : memref<27x512xbf16, #tpu.memory_space<vmem>>, vector<1x512xbf16>
    %cst_190 = arith.constant 0.000000e+00 : bf16
    %340 = vector.broadcast %cst_190 : bf16 to vector<8x8xbf16>
    %341 = vector.extract_strided_slice %229 {offsets = [0, 8], sizes = [8, 504], strides = [1, 1]} : vector<8x512xbf16> to vector<8x504xbf16>
    %342 = tpu.concatenate %341, %340 in 1 : vector<8x504xbf16>, vector<8x8xbf16> -> vector<8x512xbf16>
    %343 = vector.broadcast %339 : vector<1x512xbf16> to vector<8x512xbf16>
    %344 = arith.mulf %342, %343 : vector<8x512xbf16>
    %c128 = arith.constant 128 : index
    %c0_191 = arith.constant 0 : index
    %345 = vector.load %arg19[%c128, %c0_191] : memref<216x512xbf16, #tpu.memory_space<vmem>>, vector<8x512xbf16>
    tpu.vector_store %arg19[%c128, %c0_191], %344 {strides = array<i32>} : memref<216x512xbf16, #tpu.memory_space<vmem>>, vector<8x512xbf16>,
    %c17_192 = arith.constant 17 : index
    %c0_193 = arith.constant 0 : index
    %346 = vector.load %arg2[%c17_192, %c0_193] : memref<27x512xbf16, #tpu.memory_space<vmem>>, vector<1x512xbf16>
    %cst_194 = arith.constant 0.000000e+00 : bf16
    %347 = vector.broadcast %cst_194 : bf16 to vector<8x9xbf16>
    %348 = vector.extract_strided_slice %229 {offsets = [0, 9], sizes = [8, 503], strides = [1, 1]} : vector<8x512xbf16> to vector<8x503xbf16>
    %349 = tpu.concatenate %348, %347 in 1 : vector<8x503xbf16>, vector<8x9xbf16> -> vector<8x512xbf16>
    %350 = vector.broadcast %346 : vector<1x512xbf16> to vector<8x512xbf16>
    %351 = arith.mulf %349, %350 : vector<8x512xbf16>
    %c136 = arith.constant 136 : index
    %c0_195 = arith.constant 0 : index
    %352 = vector.load %arg19[%c136, %c0_195] : memref<216x512xbf16, #tpu.memory_space<vmem>>, vector<8x512xbf16>
    tpu.vector_store %arg19[%c136, %c0_195], %351 {strides = array<i32>} : memref<216x512xbf16, #tpu.memory_space<vmem>>, vector<8x512xbf16>,
    %c18_196 = arith.constant 18 : index
    %c0_197 = arith.constant 0 : index
    %353 = vector.load %arg2[%c18_196, %c0_197] : memref<27x512xbf16, #tpu.memory_space<vmem>>, vector<1x512xbf16>
    %cst_198 = arith.constant 0.000000e+00 : bf16
    %354 = vector.broadcast %cst_198 : bf16 to vector<8x55xbf16>
    %355 = vector.extract_strided_slice %229 {offsets = [0, 55], sizes = [8, 457], strides = [1, 1]} : vector<8x512xbf16> to vector<8x457xbf16>
    %356 = tpu.concatenate %355, %354 in 1 : vector<8x457xbf16>, vector<8x55xbf16> -> vector<8x512xbf16>
    %357 = vector.broadcast %353 : vector<1x512xbf16> to vector<8x512xbf16>
    %358 = arith.mulf %356, %357 : vector<8x512xbf16>
    %c144 = arith.constant 144 : index
    %c0_199 = arith.constant 0 : index
    %359 = vector.load %arg19[%c144, %c0_199] : memref<216x512xbf16, #tpu.memory_space<vmem>>, vector<8x512xbf16>
    tpu.vector_store %arg19[%c144, %c0_199], %358 {strides = array<i32>} : memref<216x512xbf16, #tpu.memory_space<vmem>>, vector<8x512xbf16>,
    %c19_200 = arith.constant 19 : index
    %c0_201 = arith.constant 0 : index
    %360 = vector.load %arg2[%c19_200, %c0_201] : memref<27x512xbf16, #tpu.memory_space<vmem>>, vector<1x512xbf16>
    %cst_202 = arith.constant 0.000000e+00 : bf16
    %361 = vector.broadcast %cst_202 : bf16 to vector<8x56xbf16>
    %362 = vector.extract_strided_slice %229 {offsets = [0, 56], sizes = [8, 456], strides = [1, 1]} : vector<8x512xbf16> to vector<8x456xbf16>
    %363 = tpu.concatenate %362, %361 in 1 : vector<8x456xbf16>, vector<8x56xbf16> -> vector<8x512xbf16>
    %364 = vector.broadcast %360 : vector<1x512xbf16> to vector<8x512xbf16>
    %365 = arith.mulf %363, %364 : vector<8x512xbf16>
    %c152 = arith.constant 152 : index
    %c0_203 = arith.constant 0 : index
    %366 = vector.load %arg19[%c152, %c0_203] : memref<216x512xbf16, #tpu.memory_space<vmem>>, vector<8x512xbf16>
    tpu.vector_store %arg19[%c152, %c0_203], %365 {strides = array<i32>} : memref<216x512xbf16, #tpu.memory_space<vmem>>, vector<8x512xbf16>,
    %c20_204 = arith.constant 20 : index
    %c0_205 = arith.constant 0 : index
    %367 = vector.load %arg2[%c20_204, %c0_205] : memref<27x512xbf16, #tpu.memory_space<vmem>>, vector<1x512xbf16>
    %cst_206 = arith.constant 0.000000e+00 : bf16
    %368 = vector.broadcast %cst_206 : bf16 to vector<8x57xbf16>
    %369 = vector.extract_strided_slice %229 {offsets = [0, 57], sizes = [8, 455], strides = [1, 1]} : vector<8x512xbf16> to vector<8x455xbf16>
    %370 = tpu.concatenate %369, %368 in 1 : vector<8x455xbf16>, vector<8x57xbf16> -> vector<8x512xbf16>
    %371 = vector.broadcast %367 : vector<1x512xbf16> to vector<8x512xbf16>
    %372 = arith.mulf %370, %371 : vector<8x512xbf16>
    %c160 = arith.constant 160 : index
    %c0_207 = arith.constant 0 : index
    %373 = vector.load %arg19[%c160, %c0_207] : memref<216x512xbf16, #tpu.memory_space<vmem>>, vector<8x512xbf16>
    tpu.vector_store %arg19[%c160, %c0_207], %372 {strides = array<i32>} : memref<216x512xbf16, #tpu.memory_space<vmem>>, vector<8x512xbf16>,
    %c21_208 = arith.constant 21 : index
    %c0_209 = arith.constant 0 : index
    %374 = vector.load %arg2[%c21_208, %c0_209] : memref<27x512xbf16, #tpu.memory_space<vmem>>, vector<1x512xbf16>
    %cst_210 = arith.constant 0.000000e+00 : bf16
    %375 = vector.broadcast %cst_210 : bf16 to vector<8x63xbf16>
    %376 = vector.extract_strided_slice %229 {offsets = [0, 63], sizes = [8, 449], strides = [1, 1]} : vector<8x512xbf16> to vector<8x449xbf16>
    %377 = tpu.concatenate %376, %375 in 1 : vector<8x449xbf16>, vector<8x63xbf16> -> vector<8x512xbf16>
    %378 = vector.broadcast %374 : vector<1x512xbf16> to vector<8x512xbf16>
    %379 = arith.mulf %377, %378 : vector<8x512xbf16>
    %c168 = arith.constant 168 : index
    %c0_211 = arith.constant 0 : index
    %380 = vector.load %arg19[%c168, %c0_211] : memref<216x512xbf16, #tpu.memory_space<vmem>>, vector<8x512xbf16>
    tpu.vector_store %arg19[%c168, %c0_211], %379 {strides = array<i32>} : memref<216x512xbf16, #tpu.memory_space<vmem>>, vector<8x512xbf16>,
    %c22_212 = arith.constant 22 : index
    %c0_213 = arith.constant 0 : index
    %381 = vector.load %arg2[%c22_212, %c0_213] : memref<27x512xbf16, #tpu.memory_space<vmem>>, vector<1x512xbf16>
    %cst_214 = arith.constant 0.000000e+00 : bf16
    %382 = vector.broadcast %cst_214 : bf16 to vector<8x64xbf16>
    %383 = vector.extract_strided_slice %229 {offsets = [0, 64], sizes = [8, 448], strides = [1, 1]} : vector<8x512xbf16> to vector<8x448xbf16>
    %384 = tpu.concatenate %383, %382 in 1 : vector<8x448xbf16>, vector<8x64xbf16> -> vector<8x512xbf16>
    %385 = vector.broadcast %381 : vector<1x512xbf16> to vector<8x512xbf16>
    %386 = arith.mulf %384, %385 : vector<8x512xbf16>
    %c176 = arith.constant 176 : index
    %c0_215 = arith.constant 0 : index
    %387 = vector.load %arg19[%c176, %c0_215] : memref<216x512xbf16, #tpu.memory_space<vmem>>, vector<8x512xbf16>
    tpu.vector_store %arg19[%c176, %c0_215], %386 {strides = array<i32>} : memref<216x512xbf16, #tpu.memory_space<vmem>>, vector<8x512xbf16>,
    %c23_216 = arith.constant 23 : index
    %c0_217 = arith.constant 0 : index
    %388 = vector.load %arg2[%c23_216, %c0_217] : memref<27x512xbf16, #tpu.memory_space<vmem>>, vector<1x512xbf16>
    %cst_218 = arith.constant 0.000000e+00 : bf16
    %389 = vector.broadcast %cst_218 : bf16 to vector<8x65xbf16>
    %390 = vector.extract_strided_slice %229 {offsets = [0, 65], sizes = [8, 447], strides = [1, 1]} : vector<8x512xbf16> to vector<8x447xbf16>
    %391 = tpu.concatenate %390, %389 in 1 : vector<8x447xbf16>, vector<8x65xbf16> -> vector<8x512xbf16>
    %392 = vector.broadcast %388 : vector<1x512xbf16> to vector<8x512xbf16>
    %393 = arith.mulf %391, %392 : vector<8x512xbf16>
    %c184 = arith.constant 184 : index
    %c0_219 = arith.constant 0 : index
    %394 = vector.load %arg19[%c184, %c0_219] : memref<216x512xbf16, #tpu.memory_space<vmem>>, vector<8x512xbf16>
    tpu.vector_store %arg19[%c184, %c0_219], %393 {strides = array<i32>} : memref<216x512xbf16, #tpu.memory_space<vmem>>, vector<8x512xbf16>,
    %c24_220 = arith.constant 24 : index
    %c0_221 = arith.constant 0 : index
    %395 = vector.load %arg2[%c24_220, %c0_221] : memref<27x512xbf16, #tpu.memory_space<vmem>>, vector<1x512xbf16>
    %cst_222 = arith.constant 0.000000e+00 : bf16
    %396 = vector.broadcast %cst_222 : bf16 to vector<8x71xbf16>
    %397 = vector.extract_strided_slice %229 {offsets = [0, 71], sizes = [8, 441], strides = [1, 1]} : vector<8x512xbf16> to vector<8x441xbf16>
    %398 = tpu.concatenate %397, %396 in 1 : vector<8x441xbf16>, vector<8x71xbf16> -> vector<8x512xbf16>
    %399 = vector.broadcast %395 : vector<1x512xbf16> to vector<8x512xbf16>
    %400 = arith.mulf %398, %399 : vector<8x512xbf16>
    %c192 = arith.constant 192 : index
    %c0_223 = arith.constant 0 : index
    %401 = vector.load %arg19[%c192, %c0_223] : memref<216x512xbf16, #tpu.memory_space<vmem>>, vector<8x512xbf16>
    tpu.vector_store %arg19[%c192, %c0_223], %400 {strides = array<i32>} : memref<216x512xbf16, #tpu.memory_space<vmem>>, vector<8x512xbf16>,
    %c25_224 = arith.constant 25 : index
    %c0_225 = arith.constant 0 : index
    %402 = vector.load %arg2[%c25_224, %c0_225] : memref<27x512xbf16, #tpu.memory_space<vmem>>, vector<1x512xbf16>
    %cst_226 = arith.constant 0.000000e+00 : bf16
    %403 = vector.broadcast %cst_226 : bf16 to vector<8x72xbf16>
    %404 = vector.extract_strided_slice %229 {offsets = [0, 72], sizes = [8, 440], strides = [1, 1]} : vector<8x512xbf16> to vector<8x440xbf16>
    %405 = tpu.concatenate %404, %403 in 1 : vector<8x440xbf16>, vector<8x72xbf16> -> vector<8x512xbf16>
    %406 = vector.broadcast %402 : vector<1x512xbf16> to vector<8x512xbf16>
    %407 = arith.mulf %405, %406 : vector<8x512xbf16>
    %c200 = arith.constant 200 : index
    %c0_227 = arith.constant 0 : index
    %408 = vector.load %arg19[%c200, %c0_227] : memref<216x512xbf16, #tpu.memory_space<vmem>>, vector<8x512xbf16>
    tpu.vector_store %arg19[%c200, %c0_227], %407 {strides = array<i32>} : memref<216x512xbf16, #tpu.memory_space<vmem>>, vector<8x512xbf16>,
    %c26_228 = arith.constant 26 : index
    %c0_229 = arith.constant 0 : index
    %409 = vector.load %arg2[%c26_228, %c0_229] : memref<27x512xbf16, #tpu.memory_space<vmem>>, vector<1x512xbf16>
    %cst_230 = arith.constant 0.000000e+00 : bf16
    %410 = vector.broadcast %cst_230 : bf16 to vector<8x73xbf16>
    %411 = vector.extract_strided_slice %229 {offsets = [0, 73], sizes = [8, 439], strides = [1, 1]} : vector<8x512xbf16> to vector<8x439xbf16>
    %412 = tpu.concatenate %411, %410 in 1 : vector<8x439xbf16>, vector<8x73xbf16> -> vector<8x512xbf16>
    %413 = vector.broadcast %409 : vector<1x512xbf16> to vector<8x512xbf16>
    %414 = arith.mulf %412, %413 : vector<8x512xbf16>
    %c208 = arith.constant 208 : index
    %c0_231 = arith.constant 0 : index
    %415 = vector.load %arg19[%c208, %c0_231] : memref<216x512xbf16, #tpu.memory_space<vmem>>, vector<8x512xbf16>
    tpu.vector_store %arg19[%c208, %c0_231], %414 {strides = array<i32>} : memref<216x512xbf16, #tpu.memory_space<vmem>>, vector<8x512xbf16>,
    %c0_232 = arith.constant 0 : index
    %c0_233 = arith.constant 0 : index
    %416 = vector.load %arg4[%c0_232, %c0_233] : memref<8x216xbf16, #tpu.memory_space<vmem>>, vector<8x216xbf16>
    %c0_234 = arith.constant 0 : index
    %c0_235 = arith.constant 0 : index
    %417 = vector.load %arg19[%c0_234, %c0_235] : memref<216x512xbf16, #tpu.memory_space<vmem>>, vector<216x512xbf16>
    %cst_236 = arith.constant dense<0.000000e+00> : vector<8x512xf32>
    %418 = tpu.matmul %416, %417, %cst_236 {dimension_numbers = #tpu.dot_dimension_numbers<[1], [0], [0], [1], [0, 0, 1, 1], [], []>} : vector<8x216xbf16>, vector<216x512xbf16>, vector<8x512xf32> -> vector<8x512xf32>
    %c0_237 = arith.constant 0 : index
    %c0_238 = arith.constant 0 : index
    %419 = vector.load %arg9[%c0_237, %c0_238] : memref<8x1xf32, #tpu.memory_space<vmem>>, vector<8x1xf32>
    %c0_239 = arith.constant 0 : index
    %c0_240 = arith.constant 0 : index
    %420 = vector.load %arg10[%c0_239, %c0_240] : memref<8x1xf32, #tpu.memory_space<vmem>>, vector<8x1xf32>
    %c0_241 = arith.constant 0 : index
    %c0_242 = arith.constant 0 : index
    %421 = vector.load %arg11[%c0_241, %c0_242] : memref<8x1xf32, #tpu.memory_space<vmem>>, vector<8x1xf32>
    %422 = vector.broadcast %419 : vector<8x1xf32> to vector<8x512xf32>
    %423 = arith.addf %418, %422 : vector<8x512xf32>
    %cst_243 = arith.constant dense<0.000000e+00> : vector<8xf32>
    %424 = vector.multi_reduction <add>, %423, %cst_243 [1] : vector<8x512xf32> to vector<8xf32>
    %425 = vector.shape_cast %424 : vector<8xf32> to vector<8x1xf32>
    %cst_244 = arith.constant 0.001953125 : f32
    %426 = vector.broadcast %cst_244 : f32 to vector<8x1xf32>
    %427 = arith.mulf %425, %426 : vector<8x1xf32>
    %428 = arith.mulf %423, %423 : vector<8x512xf32>
    %cst_245 = arith.constant dense<0.000000e+00> : vector<8xf32>
    %429 = vector.multi_reduction <add>, %428, %cst_245 [1] : vector<8x512xf32> to vector<8xf32>
    %430 = vector.shape_cast %429 : vector<8xf32> to vector<8x1xf32>
    %cst_246 = arith.constant 0.001953125 : f32
    %431 = vector.broadcast %cst_246 : f32 to vector<8x1xf32>
    %432 = arith.mulf %430, %431 : vector<8x1xf32>
    %433 = arith.mulf %427, %427 : vector<8x1xf32>
    %434 = arith.subf %432, %433 : vector<8x1xf32>
    %cst_247 = arith.constant 0.000000e+00 : f32
    %435 = vector.broadcast %cst_247 : f32 to vector<8x1xf32>
    %436 = arith.maximumf %434, %435 : vector<8x1xf32>
    %cst_248 = arith.constant 9.99999974E-6 : f32
    %437 = vector.broadcast %cst_248 : f32 to vector<8x1xf32>
    %438 = arith.addf %436, %437 : vector<8x1xf32>
    %439 = math.rsqrt %438 : vector<8x1xf32>
    %440 = arith.mulf %420, %439 : vector<8x1xf32>
    %441 = vector.broadcast %427 : vector<8x1xf32> to vector<8x512xf32>
    %442 = arith.subf %423, %441 : vector<8x512xf32>
    %443 = vector.broadcast %440 : vector<8x1xf32> to vector<8x512xf32>
    %444 = arith.mulf %442, %443 : vector<8x512xf32>
    %445 = vector.broadcast %421 : vector<8x1xf32> to vector<8x512xf32>
    %446 = arith.addf %444, %445 : vector<8x512xf32>
    %cst_249 = arith.constant 0.000000e+00 : f32
    %447 = vector.broadcast %cst_249 : f32 to vector<8x512xf32>
    %448 = arith.cmpf oge, %446, %447 : vector<8x512xf32>
    %cst_250 = arith.constant 0.00999999977 : f32
    %449 = vector.broadcast %cst_250 : f32 to vector<8x512xf32>
    %450 = arith.mulf %449, %446 : vector<8x512xf32>
    %451 = arith.select %448, %446, %450 : vector<8x512xi1>, vector<8x512xf32>
    %452 = tpu.concatenate %451, %1, %224 in 0 : vector<8x512xf32>, vector<4x512xf32>, vector<4x512xf32> -> vector<16x512xf32>
    %c0_251 = arith.constant 0 : index
    %c0_252 = arith.constant 0 : index
    %c0_253 = arith.constant 0 : index
    %453 = vector.load %arg16[%c0_251, %c0_252, %c0_253] : memref<1x16x512xf32, #tpu.memory_space<vmem>>, vector<1x16x512xf32>
    %454 = vector.shape_cast %453 : vector<1x16x512xf32> to vector<16x512xf32>
    %455 = vector.shape_cast %452 : vector<16x512xf32> to vector<1x16x512xf32>
    tpu.vector_store %arg16[%c0_251, %c0_252, %c0_253], %455 {strides = array<i32>} : memref<1x16x512xf32, #tpu.memory_space<vmem>>, vector<1x16x512xf32>,
    %c0_254 = arith.constant 0 : index
    %c0_255 = arith.constant 0 : index
    %456 = vector.load %arg5[%c0_254, %c0_255] : memref<8x16xbf16, #tpu.memory_space<vmem>>, vector<8x16xbf16>
    %457 = arith.truncf %452 : vector<16x512xf32> to vector<16x512xbf16>
    %cst_256 = arith.constant dense<0.000000e+00> : vector<8x512xf32>
    %458 = tpu.matmul %456, %457, %cst_256 {dimension_numbers = #tpu.dot_dimension_numbers<[1], [0], [0], [1], [0, 0, 1, 1], [], []>} : vector<8x16xbf16>, vector<16x512xbf16>, vector<8x512xf32> -> vector<8x512xf32>
    %c0_257 = arith.constant 0 : index
    %c0_258 = arith.constant 0 : index
    %459 = vector.load %arg12[%c0_257, %c0_258] : memref<8x1xf32, #tpu.memory_space<vmem>>, vector<8x1xf32>
    %c0_259 = arith.constant 0 : index
    %c0_260 = arith.constant 0 : index
    %460 = vector.load %arg13[%c0_259, %c0_260] : memref<8x1xf32, #tpu.memory_space<vmem>>, vector<8x1xf32>
    %c0_261 = arith.constant 0 : index
    %c0_262 = arith.constant 0 : index
    %461 = vector.load %arg14[%c0_261, %c0_262] : memref<8x1xf32, #tpu.memory_space<vmem>>, vector<8x1xf32>
    %462 = vector.broadcast %459 : vector<8x1xf32> to vector<8x512xf32>
    %463 = arith.addf %458, %462 : vector<8x512xf32>
    %cst_263 = arith.constant dense<0.000000e+00> : vector<8xf32>
    %464 = vector.multi_reduction <add>, %463, %cst_263 [1] : vector<8x512xf32> to vector<8xf32>
    %465 = vector.shape_cast %464 : vector<8xf32> to vector<8x1xf32>
    %cst_264 = arith.constant 0.001953125 : f32
    %466 = vector.broadcast %cst_264 : f32 to vector<8x1xf32>
    %467 = arith.mulf %465, %466 : vector<8x1xf32>
    %468 = arith.mulf %463, %463 : vector<8x512xf32>
    %cst_265 = arith.constant dense<0.000000e+00> : vector<8xf32>
    %469 = vector.multi_reduction <add>, %468, %cst_265 [1] : vector<8x512xf32> to vector<8xf32>
    %470 = vector.shape_cast %469 : vector<8xf32> to vector<8x1xf32>
    %cst_266 = arith.constant 0.001953125 : f32
    %471 = vector.broadcast %cst_266 : f32 to vector<8x1xf32>
    %472 = arith.mulf %470, %471 : vector<8x1xf32>
    %473 = arith.mulf %467, %467 : vector<8x1xf32>
    %474 = arith.subf %472, %473 : vector<8x1xf32>
    %cst_267 = arith.constant 0.000000e+00 : f32
    %475 = vector.broadcast %cst_267 : f32 to vector<8x1xf32>
    %476 = arith.maximumf %474, %475 : vector<8x1xf32>
    %cst_268 = arith.constant 9.99999974E-6 : f32
    %477 = vector.broadcast %cst_268 : f32 to vector<8x1xf32>
    %478 = arith.addf %476, %477 : vector<8x1xf32>
    %479 = math.rsqrt %478 : vector<8x1xf32>
    %480 = arith.mulf %460, %479 : vector<8x1xf32>
    %481 = vector.broadcast %467 : vector<8x1xf32> to vector<8x512xf32>
    %482 = arith.subf %463, %481 : vector<8x512xf32>
    %483 = vector.broadcast %480 : vector<8x1xf32> to vector<8x512xf32>
    %484 = arith.mulf %482, %483 : vector<8x512xf32>
    %485 = vector.broadcast %461 : vector<8x1xf32> to vector<8x512xf32>
    %486 = arith.addf %484, %485 : vector<8x512xf32>
    %cst_269 = arith.constant 0.000000e+00 : f32
    %487 = vector.broadcast %cst_269 : f32 to vector<8x512xf32>
    %488 = arith.cmpf oge, %486, %487 : vector<8x512xf32>
    %cst_270 = arith.constant 0.00999999977 : f32
    %489 = vector.broadcast %cst_270 : f32 to vector<8x512xf32>
    %490 = arith.mulf %489, %486 : vector<8x512xf32>
    %491 = arith.select %488, %486, %490 : vector<8x512xi1>, vector<8x512xf32>
    %c0_271 = arith.constant 0 : index
    %c0_272 = arith.constant 0 : index
    %c0_273 = arith.constant 0 : index
    %492 = vector.load %arg17[%c0_271, %c0_272, %c0_273] : memref<1x8x512xf32, #tpu.memory_space<vmem>>, vector<1x8x512xf32>
    %493 = vector.shape_cast %492 : vector<1x8x512xf32> to vector<8x512xf32>
    %494 = vector.shape_cast %491 : vector<8x512xf32> to vector<1x8x512xf32>
    tpu.vector_store %arg17[%c0_271, %c0_272, %c0_273], %494 {strides = array<i32>} : memref<1x8x512xf32, #tpu.memory_space<vmem>>, vector<1x8x512xf32>,
    %495 = tpu.transpose %491, [1, 0] : vector<8x512xf32> -> vector<512x8xf32>
    %496 = vector.shape_cast %495 : vector<512x8xf32> to vector<8x8x8x8xf32>
    %497 = vector.shape_cast %496 : vector<8x8x8x8xf32> to vector<4x2x8x8x8xf32>
    %498 = vector.extract_strided_slice %497 {offsets = [0, 0, 0, 0, 0], sizes = [4, 1, 8, 8, 8], strides = [1, 1, 1, 1, 1]} : vector<4x2x8x8x8xf32> to vector<4x1x8x8x8xf32>
    %499 = vector.shape_cast %498 : vector<4x1x8x8x8xf32> to vector<4x8x8x8xf32>
    %500 = vector.extract_strided_slice %497 {offsets = [0, 1, 0, 0, 0], sizes = [4, 1, 8, 8, 8], strides = [1, 1, 1, 1, 1]} : vector<4x2x8x8x8xf32> to vector<4x1x8x8x8xf32>
    %501 = vector.shape_cast %500 : vector<4x1x8x8x8xf32> to vector<4x8x8x8xf32>
    %502 = arith.maximumf %499, %501 : vector<4x8x8x8xf32>
    %503 = vector.shape_cast %502 : vector<4x8x8x8xf32> to vector<4x4x2x8x8xf32>
    %504 = vector.extract_strided_slice %503 {offsets = [0, 0, 0, 0, 0], sizes = [4, 4, 1, 8, 8], strides = [1, 1, 1, 1, 1]} : vector<4x4x2x8x8xf32> to vector<4x4x1x8x8xf32>
    %505 = vector.shape_cast %504 : vector<4x4x1x8x8xf32> to vector<4x4x8x8xf32>
    %506 = vector.extract_strided_slice %503 {offsets = [0, 0, 1, 0, 0], sizes = [4, 4, 1, 8, 8], strides = [1, 1, 1, 1, 1]} : vector<4x4x2x8x8xf32> to vector<4x4x1x8x8xf32>
    %507 = vector.shape_cast %506 : vector<4x4x1x8x8xf32> to vector<4x4x8x8xf32>
    %508 = arith.maximumf %505, %507 : vector<4x4x8x8xf32>
    %509 = vector.extract_strided_slice %508 {offsets = [0, 0, 0, 0], sizes = [4, 4, 1, 8], strides = [1, 1, 1, 1]} : vector<4x4x8x8xf32> to vector<4x4x1x8xf32>
    %510 = vector.extract_strided_slice %508 {offsets = [0, 0, 1, 0], sizes = [4, 4, 1, 8], strides = [1, 1, 1, 1]} : vector<4x4x8x8xf32> to vector<4x4x1x8xf32>
    %511 = arith.maximumf %509, %510 : vector<4x4x1x8xf32>
    %512 = vector.extract_strided_slice %508 {offsets = [0, 0, 2, 0], sizes = [4, 4, 1, 8], strides = [1, 1, 1, 1]} : vector<4x4x8x8xf32> to vector<4x4x1x8xf32>
    %513 = vector.extract_strided_slice %508 {offsets = [0, 0, 3, 0], sizes = [4, 4, 1, 8], strides = [1, 1, 1, 1]} : vector<4x4x8x8xf32> to vector<4x4x1x8xf32>
    %514 = arith.maximumf %512, %513 : vector<4x4x1x8xf32>
    %515 = vector.extract_strided_slice %508 {offsets = [0, 0, 4, 0], sizes = [4, 4, 1, 8], strides = [1, 1, 1, 1]} : vector<4x4x8x8xf32> to vector<4x4x1x8xf32>
    %516 = vector.extract_strided_slice %508 {offsets = [0, 0, 5, 0], sizes = [4, 4, 1, 8], strides = [1, 1, 1, 1]} : vector<4x4x8x8xf32> to vector<4x4x1x8xf32>
    %517 = arith.maximumf %515, %516 : vector<4x4x1x8xf32>
    %518 = vector.extract_strided_slice %508 {offsets = [0, 0, 6, 0], sizes = [4, 4, 1, 8], strides = [1, 1, 1, 1]} : vector<4x4x8x8xf32> to vector<4x4x1x8xf32>
    %519 = vector.extract_strided_slice %508 {offsets = [0, 0, 7, 0], sizes = [4, 4, 1, 8], strides = [1, 1, 1, 1]} : vector<4x4x8x8xf32> to vector<4x4x1x8xf32>
    %520 = arith.maximumf %518, %519 : vector<4x4x1x8xf32>
    %521 = tpu.concatenate %511, %514, %517, %520 in 2 : vector<4x4x1x8xf32>, vector<4x4x1x8xf32>, vector<4x4x1x8xf32>, vector<4x4x1x8xf32> -> vector<4x4x4x8xf32>
    %522 = vector.shape_cast %521 : vector<4x4x4x8xf32> to vector<64x8xf32>
    %523 = tpu.transpose %522, [1, 0] : vector<64x8xf32> -> vector<8x64xf32>
    %c0_274 = arith.constant 0 : index
    %c0_275 = arith.constant 0 : index
    %c0_276 = arith.constant 0 : index
    %524 = vector.load %arg18[%c0_274, %c0_275, %c0_276] : memref<1x8x64xf32, #tpu.memory_space<vmem>>, vector<1x8x64xf32>
    %525 = vector.shape_cast %524 : vector<1x8x64xf32> to vector<8x64xf32>
    %526 = vector.shape_cast %523 : vector<8x64xf32> to vector<1x8x64xf32>
    tpu.vector_store %arg18[%c0_274, %c0_275, %c0_276], %526 {strides = array<i32>} : memref<1x8x64xf32, #tpu.memory_space<vmem>>, vector<1x8x64xf32>,
    return
  }
  func.func @transform_0(%arg0: i32) -> (i32, i32, i32) {
    %c0_i32 = arith.constant 0 : i32
    %c0_i32_0 = arith.constant 0 : i32
    %c0_i32_1 = arith.constant 0 : i32
    return %arg0, %c0_i32, %c0_i32_0 : i32, i32, i32
  }
  func.func @transform_1(%arg0: i32) -> (i32, i32) {
    %c0_i32 = arith.constant 0 : i32
    %c0_i32_0 = arith.constant 0 : i32
    %c0_i32_1 = arith.constant 0 : i32
    return %c0_i32, %c0_i32_0 : i32, i32
  }
  func.func @transform_2(%arg0: i32) -> (i32, i32) {
    %c0_i32 = arith.constant 0 : i32
    %c0_i32_0 = arith.constant 0 : i32
    %c0_i32_1 = arith.constant 0 : i32
    return %c0_i32, %c0_i32_0 : i32, i32
  }
  func.func @transform_3(%arg0: i32) -> (i32, i32) {
    %c0_i32 = arith.constant 0 : i32
    %c0_i32_0 = arith.constant 0 : i32
    %c0_i32_1 = arith.constant 0 : i32
    return %c0_i32, %c0_i32_0 : i32, i32
  }
  func.func @transform_4(%arg0: i32) -> (i32, i32) {
    %c0_i32 = arith.constant 0 : i32
    %c0_i32_0 = arith.constant 0 : i32
    %c0_i32_1 = arith.constant 0 : i32
    return %c0_i32, %c0_i32_0 : i32, i32
  }
  func.func @transform_5(%arg0: i32) -> (i32, i32) {
    %c0_i32 = arith.constant 0 : i32
    %c0_i32_0 = arith.constant 0 : i32
    %c0_i32_1 = arith.constant 0 : i32
    return %c0_i32, %c0_i32_0 : i32, i32
  }
  func.func @transform_6(%arg0: i32) -> (i32, i32) {
    %c0_i32 = arith.constant 0 : i32
    %c0_i32_0 = arith.constant 0 : i32
    %c0_i32_1 = arith.constant 0 : i32
    return %c0_i32, %c0_i32_0 : i32, i32
  }
  func.func @transform_7(%arg0: i32) -> (i32, i32) {
    %c0_i32 = arith.constant 0 : i32
    %c0_i32_0 = arith.constant 0 : i32
    %c0_i32_1 = arith.constant 0 : i32
    return %c0_i32, %c0_i32_0 : i32, i32
  }
  func.func @transform_8(%arg0: i32) -> (i32, i32) {
    %c0_i32 = arith.constant 0 : i32
    %c0_i32_0 = arith.constant 0 : i32
    %c0_i32_1 = arith.constant 0 : i32
    return %c0_i32, %c0_i32_0 : i32, i32
  }
  func.func @transform_9(%arg0: i32) -> (i32, i32) {
    %c0_i32 = arith.constant 0 : i32
    %c0_i32_0 = arith.constant 0 : i32
    %c0_i32_1 = arith.constant 0 : i32
    return %c0_i32, %c0_i32_0 : i32, i32
  }
  func.func @transform_10(%arg0: i32) -> (i32, i32) {
    %c0_i32 = arith.constant 0 : i32
    %c0_i32_0 = arith.constant 0 : i32
    %c0_i32_1 = arith.constant 0 : i32
    return %c0_i32, %c0_i32_0 : i32, i32
  }
  func.func @transform_11(%arg0: i32) -> (i32, i32) {
    %c0_i32 = arith.constant 0 : i32
    %c0_i32_0 = arith.constant 0 : i32
    %c0_i32_1 = arith.constant 0 : i32
    return %c0_i32, %c0_i32_0 : i32, i32
  }
  func.func @transform_12(%arg0: i32) -> (i32, i32) {
    %c0_i32 = arith.constant 0 : i32
    %c0_i32_0 = arith.constant 0 : i32
    %c0_i32_1 = arith.constant 0 : i32
    return %c0_i32, %c0_i32_0 : i32, i32
  }
  func.func @transform_13(%arg0: i32) -> (i32, i32) {
    %c0_i32 = arith.constant 0 : i32
    %c0_i32_0 = arith.constant 0 : i32
    %c0_i32_1 = arith.constant 0 : i32
    return %c0_i32, %c0_i32_0 : i32, i32
  }
  func.func @transform_14(%arg0: i32) -> (i32, i32, i32) {
    %c0_i32 = arith.constant 0 : i32
    %c0_i32_0 = arith.constant 0 : i32
    %c0_i32_1 = arith.constant 0 : i32
    return %arg0, %c0_i32, %c0_i32_0 : i32, i32, i32
  }
  func.func @transform_15(%arg0: i32) -> (i32, i32, i32) {
    %c0_i32 = arith.constant 0 : i32
    %c0_i32_0 = arith.constant 0 : i32
    %c0_i32_1 = arith.constant 0 : i32
    return %arg0, %c0_i32, %c0_i32_0 : i32, i32, i32
  }
  func.func @transform_16(%arg0: i32) -> (i32, i32, i32) {
    %c0_i32 = arith.constant 0 : i32
    %c0_i32_0 = arith.constant 0 : i32
    %c0_i32_1 = arith.constant 0 : i32
    return %arg0, %c0_i32, %c0_i32_0 : i32, i32, i32
  }
  func.func @transform_17(%arg0: i32) -> (i32, i32, i32) {
    %c0_i32 = arith.constant 0 : i32
    %c0_i32_0 = arith.constant 0 : i32
    %c0_i32_1 = arith.constant 0 : i32
    return %arg0, %c0_i32, %c0_i32_0 : i32, i32, i32
  }
}

</mosaic_0001>

<bundles_post_ra>
// kernel: tpu_custom_call.1
= control target key start
LH: loop header
LB: loop body
LE: loop exit
PB: predicated region body
PF: predicated region fallthrough
CT: control target
= control target key end

     0   :  { %s10341_s0 = inlined_call_operand.hbm [shape: f32[2,4,512], index: 0, kind: input, shape index: {}]   ;;  %s10342_s1 = inlined_call_operand.vmem [shape: bf16[27,512], index: 1, kind: input, shape index: {}]   ;;  %s10343_s2 = inlined_call_operand.hbm [shape: bf16[4,108], index: 2, kind: input, shape index: {}]   ;;  %s10344_s3 = inlined_call_operand.vmem [shape: bf16[8,216], index: 3, kind: input, shape index: {}]   ;;  %s10345_s4 = inlined_call_operand.vmem [shape: bf16[8,16], index: 4, kind: input, shape index: {}]   ;;  %s10346_s5 = inlined_call_operand.vmem [shape: f32[4,1], index: 5, kind: input, shape index: {}]   ;;  %s10347_s6 = inlined_call_operand.vmem [shape: f32[4,1], index: 6, kind: input, shape index: {}]   ;;  %s10348_s7 = inlined_call_operand.vmem [shape: f32[4,1], index: 7, kind: input, shape index: {}]   ;;  %s10349_s8 = inlined_call_operand.vmem [shape: f32[8,1], index: 8, kind: input, shape index: {}]   ;;  %s10350_s9 = inlined_call_operand.vmem [shape: f32[8,1], index: 9, kind: input, shape index: {}]   ;;  %s10351_s10 = inlined_call_operand.vmem [shape: f32[8,1], index: 10, kind: input, shape index: {}]   ;;  %s10352_s11 = inlined_call_operand.vmem [shape: f32[8,1], index: 11, kind: input, shape index: {}]   ;;  %s10353_s12 = inlined_call_operand.vmem [shape: f32[8,1], index: 12, kind: input, shape index: {}]   ;;  %s10354_s13 = inlined_call_operand.vmem [shape: f32[8,1], index: 13, kind: input, shape index: {}]   ;;  %s10355_s14 = inlined_call_operand.hbm [shape: f32[2,8,512], index: 14, kind: output, shape index: {0}]   ;;  %s10356_s15 = inlined_call_operand.hbm [shape: f32[2,16,512], index: 15, kind: output, shape index: {1}]   ;;  %s10357_s16 = inlined_call_operand.hbm [shape: f32[2,8,512], index: 16, kind: output, shape index: {2}]   ;;  %s10358_s17 = inlined_call_operand.hbm [shape: f32[2,8,64], index: 17, kind: output, shape index: {3}]  }
   0x1   :  { %10446 = sst [smem:[#allocation59_spill]] %s10341_s0 }
   0x2   :  { %10447 = sst [smem:[#allocation60_spill]] %s10342_s1 }
   0x3   :  { %10448 = sst [smem:[#allocation61_spill]] %s10343_s2 }
   0x4   :  { %10449 = sst [smem:[#allocation62_spill]] %s10344_s3 }
   0x5   :  { %10450 = sst [smem:[#allocation63_spill]] %s10345_s4 }
   0x6   :  { %10451 = sst [smem:[#allocation64_spill]] %s10346_s5 }
   0x7   :  { %10452 = sst [smem:[#allocation65_spill]] %s10347_s6 }
   0x8   :  { %10453 = sst [smem:[#allocation66_spill]] %s10355_s14 }
   0x9   :  { %10454 = sst [smem:[#allocation67_spill]] %s10356_s15 }
   0xa   :  { %10455 = sst [smem:[#allocation68_spill]] %s10357_s16 }
   0xb   :  { %10456 = sst [smem:[#allocation69_spill]] %s10358_s17 }
   0xc   :  { %23 = vsyncpa [#allocation4], 0 }
   0xd   :  { %25 = vsyncpa [#allocation4 + $0x1], 0 }
   0xe   :  { %26 = vsyncpa [#allocation7], 0 }
   0xf   :  { %27 = vsyncpa [#allocation5], 0 }
  0x10   :  { %29 = vsyncpa [#allocation5 + $0x1], 0 }
  0x11   :  { %30 = vsyncpa [#allocation10], 0 }
  0x12   :  { %32 = vsyncpa [#allocation10 + $0x1], 0 }
  0x13   :  { %33 = vsyncpa [#allocation13], 0 }
  0x14   :  { %35 = vsyncpa [#allocation13 + $0x1], 0  ;;  %s7498_s24 = smov 0   ;;  %s7500_s25 = smov 0  }
  0x15   :  { %s7502_s26 = smov 0   ;;  %s7504_s27 = smov 0  }
  0x16 LB: > { %10457 = sst [smem:[#allocation19_spill]] %s7368_s24  ;;  %s7519_s28 = sadd.s32 4294967295, %s7380_s27   ;;  %s7380_s27 = sphi %s7504_s27, %s10716_s27   ;;  %s7376_s26 = sphi %s7502_s26, %s10718_s26   ;;  %s7372_s25 = sphi %s7500_s25, %s10720_s25   ;;  %s7368_s24 = sphi %s7498_s24, %s10719_s24  }
  0x17   : > { %10458 = sst [smem:[#allocation20_spill]] %s7376_s26  ;;  %s10361_s29 = sadd.s32 4294967294, %s7380_s27  }
  0x18   : > { %10459 = sst [smem:[#allocation21_spill]] %s7380_s27  ;;  %p61_p0 = scmp.ne.s32.totalorder %s7372_s25, %s7368_s24 }
  0x19   : > { %p10362_p1 = scmp.eq.s32.totalorder %s7519_s28, 0  ;;  %p364_p3 = scmp.eq.s32.totalorder %s10361_s29, 1 }
  0x1a   : > { %p6300_p5 = scmp.ge.s32.totalorder %s7380_s27, 1  ;;  %p449_p7 = scmp.lt.s32.totalorder %s7380_s27, 3 }
  0x1b   : > { %p7530_p4 = por %p10362_p1, %p61_p0  ;;  %p7535_p6 = por %p364_p3, %p61_p0 }
  0x1c   : > { %p7540_p8 = pnand %p6300_p5, %p449_p7  ;;  %s7382_s19 = smov [#allocation6]  }
  0x1d   : > { %s10460_s0 = scalar_select %p7530_p4, 1, 0 }
  0x1e   : > { %s10461_s30 = scalar_select %p7535_p6, 1, 0 }
  0x1f   : > { %s10463_s18 = scalar_select %p7540_p8, 1, 0 }
  0x20   : > { %10462 = sst [smem:[#allocation22_spill]] %s10461_s30  ;;  %s465_s1 = sshll.u32 %s7382_s19, 4  ;;  %s466_s1 = int_to_ptr.vmem [resolvable:$true] %s465_s1 }
  0x21   : > { %p6764_p10 = pneg %p7540_p8  ;;  %s7548_s20 = sadd.s32 1, %s7380_s27  }
  0x22   : > { %10464 = sst [smem:[#allocation23_spill]] %s7548_s20  ;;  %s45_s22 = ssub.s32 %s7380_s27, %s7548_s20 }
  0x23   : > { %p7552_p11 = pnand %p6764_p10, %p10362_p1  ;;  %p7558_p12 = scmp.eq.s32.totalorder %s45_s22, 0 }
  0x24   : > { %s48_s29 = sadd.s32 1, %s7376_s26  ;;  %p55_p13 = scmp.ne.s32.totalorder %s7376_s26, %s7372_s25 }
  0x25   : > { %p7174_p0 = pneg %p7552_p11  ;;  %s7183_s19 = scalar_lea.vmem %s466_s1, 32 }
  0x26   : > { %p7184_p3 = scmp.ne.s32.totalorder %s466_s1, %s7183_s19  ;;  %p7191_p9 = scmp.lt.s32.totalorder %s466_s1, %s466_s1 }
  0x27   : > { %p7192_p2 = scmp.lt.s32.totalorder %s7183_s19, %s7183_s19 }
  0x28   : > { %p7186_p5 = pnand %p7184_p3, %p7174_p0 }
  0x29   : > { %p7193_p10 = por %p7192_p2, %p7191_p9 }
  0x2a   : > { %p7187_p7 = pneg %p7186_p5 }
  0x2c   : > { %p7194_p1 = pnand %p7193_p10, %p7187_p7 }
  0x2e   : > { %7197 = shalt.err (!%p7194_p1)
}
  0x2f   : > { %s10467_s2 = sld [smem:[#allocation61_spill]]  ;;  %p56_p1 = scmp.eq.s32.totalorder %s7380_s27, 0 }
  0x30   : > { %s7575_s19 = scalar_select %p7558_p12, %s7376_s26, %s48_s29  }
  0x31   : > { %p10469_p2 = scmp.eq.s32.totalorder %s7519_s28, 1  ;;  %p6786_p0 = scmp.lt.s32.totalorder %s7380_s27, 2 }
  0x32   : > { %10468 = sst [smem:[#allocation24_spill]] %s7575_s19  ;;  %s509_s21 = sand.u32 1, %s7376_s26  }
  0x33   : > { %p7583_p9 = por %p10469_p2, %p55_p13  ;;  %p57_p3 = por %p56_p1, %p55_p13 }
  0x34   : > { %s6303_s22 = sshll.u32 %s509_s21, 4  ;;  %s6746_s30 = sshll.u32 %s7380_s27, 8 }
  0x35   : > { %6767 = dma.hbm_to_vmem [thread:$0]  (!%p7552_p11), %s10467_s2, 32, %s466_s1, [#allocation7]  }
  0x36   : > { %s10470_s20 = scalar_select %p7583_p9, 1, 0 }
  0x37   : > { %s10471_s16 = sld [smem:[#allocation59_spill]]  ;;  %s513_s29 = scalar_lea.vmem [#allocation3], %s6303_s22 }
  0x38   : > { %s521_s23 = sshll.u32 %s513_s29, 4  ;;  %p7598_p11 = pnand %p6786_p0, %p57_p3  ;;  %s522_s23 = int_to_ptr.vmem [resolvable:$true] %s521_s23 }
  0x39   : > { %s510_s19 = scalar_lea.sflag [#allocation4], %s509_s21 }
  0x3a   : > { %p7200_p13 = pneg %p7598_p11 }
  0x3d   : > { %s7596_s1 = scalar_lea.hbm %s10471_s16, %s6746_s30  ;;  %s7203_s30 = scalar_lea.hbm %s10471_s16, 512 }
  0x3e   : > { %s7198_s26 = scalar_lea.hbm %s7596_s1, 256  ;;  %p7204_p10 = scmp.lt.s32.totalorder %s7596_s1, %s10471_s16 }
  0x3f   : > { %p7199_p12 = scmp.ne.s32.totalorder %s7596_s1, %s7198_s26  ;;  %p7205_p1 = scmp.lt.s32.totalorder %s7203_s30, %s7198_s26 }
  0x41   : > { %p7201_p5 = pnand %p7200_p13, %p7199_p12  ;;  %p7206_p2 = por %p7205_p1, %p7204_p10 }
  0x43   : > { %p7202_p7 = pneg %p7201_p5 }
  0x45   : > { %p7207_p0 = pnand %p7206_p2, %p7202_p7 }
  0x47   : > { %7210 = shalt.err (!%p7207_p0)
}
  0x48   : > { %s7211_s29 = scalar_lea.vmem %s522_s23, 256  ;;  %s7383_s21 = smov [#allocation3]  }
  0x49   : > { %p7212_p3 = scmp.ne.s32.totalorder %s522_s23, %s7211_s29  ;;  %s7216_s14 = sshll.u32 %s7383_s21, 4  ;;  %s7217_s14 = int_to_ptr.vmem [resolvable:$false] %s7216_s14 }
  0x4a   : > { %s7218_s15 = scalar_lea.vmem %s7217_s14, 512  ;;  %p7219_p12 = scmp.lt.s32.totalorder %s522_s23, %s7217_s14 }
  0x4b   : > { %p7214_p6 = pnand %p7212_p3, %p7200_p13  ;;  %p7220_p5 = scmp.lt.s32.totalorder %s7218_s15, %s7211_s29 }
  0x4d   : > { %p7215_p9 = pneg %p7214_p6  ;;  %p7221_p4 = por %p7220_p5, %p7219_p12 }
  0x4f   : > { %p7222_p8 = pnand %p7221_p4, %p7215_p9 }
  0x51   : > { %7225 = shalt.err (!%p7222_p8)
}
  0x52   : > { %6771 = dma.hbm_to_vmem [thread:$0]  (!%p7598_p11), %s7596_s1, 256, %s522_s23, %s510_s19  }
  0x53   : > { %p10473_p7 = scmp.ne.s32.totalorder %s10463_s18, 0 }
  0x55   : > { %530 = sbr.rel (%p10473_p7) target bundleno = 2576 (0xa10), region = 76 }
  0x5a   : > { %s7619_s26 = sand.u32 1, %s7372_s25   ;;  %p10474_p6 = scmp.ne.s32.totalorder %s10460_s0, 0 }
  0x5b   : > { %s6307_s27 = sshll.u32 %s7619_s26, 4  ;;  %s533_s17 = scalar_lea.sflag [#allocation4], %s7619_s26 }
  0x5c   : > { %s7623_s14 = scalar_lea.vmem [#allocation3], %s6307_s27 }
  0x5d   : > { %7347 = dma.done.wait (%p10474_p6), %s533_s17, 256  }
  0x5e   : > { %7349 = vsyncadd (%p10474_p6), %s533_s17, 4294967040  ;;  %p10475_p4 = scmp.eq.s32.totalorder %s7519_s28, 0 }
  0x60   : > { %7351 = dma.done.wait (%p10475_p4), [#allocation7], 32   ;;  %p10476_p8 = pmov %p10475_p4 }
  0x61   : > { %v608_v0 = vld [vmem:[%s7623_s14 + $0x8] sm:$0xff]  ;;  %v607_v1 = vld [vmem:[%s7623_s14] sm:$0xff]  ;;  %s10381_s2 = smov 56   ;;  %s10383_s15 = smov 57   ;;  %v658_v11 = vlaneseq  ;;  %vm1191_vm0 = vcmask 457728   ;;  %vm1114_vm1 = vcmask 465920  }
  0x62   : > { %7353 = vsyncadd (%p10476_p8), [#allocation7], 4294967264  ;;  %v7635_v2 = vpack.c.bf16 %v608_v0, %v608_v0  ;;  %v7637_v3 = vpack.c.bf16 %v607_v1, %v607_v1  ;;  %v7643_v4 = vcombine.high %v607_v1, %v607_v1  ;;  %s10385_s0 = smov 55   ;;  %s10377_s18 = smov 65   ;;  %v7669_v6 = vcombine.high %v608_v0, %v608_v0 }
  0x63   : > { %s10379_s19 = smov 63   ;;  %s10402_s1 = smov 71   ;;  %v659_v21 = vshrl.u32 %v658_v11, 7  ;;  %vm1274_vm2 = vcmask 449536   ;;  %vm10405_vm3 = vcmask 531456   ;;  %vm1031_vm4 = vcmask 515072  }
  0x64   : > { %1187 = vrot.lane.b32.xlu1 %v7635_v2, %s10381_s2  ;;  %1183 = vrot.lane.b32.xlu0 %v7637_v3, %s10381_s2  ;;  %10477 = vst [vmem:[#allocation25_spill] sm:$0xff] %v7643_v4  ;;  %v7651_v5 = vpack.c.bf16 %v7643_v4, %v7643_v4  ;;  %10478 = vst [vmem:[#allocation26_spill] sm:$0xff] %v7669_v6  ;;  %v7677_v7 = vpack.c.bf16 %v7669_v6, %v7669_v6  ;;  %s10408_s23 = smov 64   ;;  %s10391_s24 = smov 72   ;;  %vm2795_vm5 = vcmask 1045504   ;;  %vm10406_vm6 = vcmask 580608  }
  0x65   : > { %s10387_s30 = smov 119   ;;  %s10393_s22 = smov 73   ;;  %v7756_v34 = vsub.s32 2, %v659_v21  ;;  %v7762_v35 = vsub.s32 3, %v659_v21  ;;  %v7764_v37 = vsub.s32 0, %v659_v21  ;;  %v7790_v55 = vsub.s32 1, %v659_v21 }
  0x66   : > { %s10479_s27 = sld [smem:[#allocation60_spill]]  ;;  %s7395_s21 = smov 121   ;;  %vm954_vm7 = vcmask 523264   ;;  %vm10401_vm8 = vcmask 588800   ;;  %vm10399_vm9 = vcmask 973824   ;;  %vm10404_vm10 = vcmask 596992  }
  0x67   : > { %s10495_s5 = sld [smem:[#allocation64_spill]]  ;;  %vm10400_vm11 = vcmask 982016   ;;  %vm1812_vm12 = vcmask 990208   ;;  %vm1594_vm13 = vcmask 7168   ;;  %vm1735_vm14 = vcmask 1039360   ;;  %p10706_p11 = scmp.ne.s32.totalorder %s10470_s20, 0 }
  0x68   : > { %1106 = vrot.lane.b32.xlu1 %v7637_v3, %s10383_s15  ;;  %1266 = vrot.lane.b32.xlu0 %v7637_v3, %s10385_s0  ;;  %vm1351_vm15 = vcmask 72704   ;;  %s10510_s6 = sld [smem:[#allocation65_spill]] }
  0x69   : > { %s10542_s3 = sld [smem:[#allocation62_spill]] }
  0x6a   : > { %s10703_s4 = sld [smem:[#allocation63_spill]] }
  0x6c   : > { %1110 = vrot.lane.b32.xlu1 %v7635_v2, %s10383_s15  ;;  %1185 = vrot.lane.b32.xlu0 %v7651_v5, %s10381_s2  ;;  %s10480_s17 = smov %s10479_s27  ;;  %v1181_v8 = vld [vmem:[%s10479_s27] sm:$0x88]  ;;  %s7396_s27 = smov 1  }
  0x6d   : > { %v7729_v9 = vld [vmem:[%s10480_s17 + $0x8] sm:$0x88]  ;;  %v1661_v10 = vld [vmem:[%s10480_s17 + $0x10] sm:$0x44]  ;;  %v6355_v12 = vcombine.low %v1181_v8, %v1181_v8  ;;  %v1104_v13 = vld [vmem:[%s10480_s17] sm:$0x88]  ;;  %v6356_v15 = vcombine.high %v1181_v8, %v1181_v8 }
  0x6e   : > { %v1264_v14 = vld [vmem:[%s10480_s17 + $0x10] sm:$0x11]  ;;  %v6357_v16 = vcombine.low %v7729_v9, %v7729_v9  ;;  %v6391_v18 = vcombine.low %v1661_v10, %v1661_v10  ;;  %v6392_v19 = vcombine.high %v1661_v10, %v1661_v10  ;;  %v6349_v20 = vcombine.low %v1104_v13, %v1104_v13  ;;  %v2557_v33 = vld [vmem:[%s10480_s17 + $0x30] sm:$0x22]  ;;  %v7769_v41 = vld [vmem:[%s10480_s17 + $0x8] sm:$0x88] }
  0x6f   : > { %v2490_v17 = vld [vmem:[%s10480_s17 + $0x30] sm:$0x11]  ;;  %v1213_v22 = vshrl.u32 %v6355_v12, 16  ;;  %v6361_v23 = vcombine.low %v1264_v14, %v1264_v14  ;;  %v1221_v25 = vshrl.u32 %v6356_v15, 16  ;;  %v6362_v29 = vcombine.high %v1264_v14, %v1264_v14  ;;  %v861_v57 = vld [vmem:[%s10480_s17] sm:$0x22] }
  0x70   : > { %1268 = vrot.lane.b32.xlu1 %v7651_v5, %s10385_s0  ;;  %1108 = vrot.lane.b32.xlu0 %v7651_v5, %s10383_s15  ;;  %v1674_v24 = vshrl.u32 %v6391_v18, 16  ;;  %v1229_v26 = vshrl.u32 %v6357_v16, 16  ;;  %v6463_v27 = vcombine.low %v2490_v17, %v2490_v17  ;;  %v6464_v28 = vcombine.high %v2490_v17, %v2490_v17  ;;  %v2429_v48 = vld [vmem:[%s10480_s17 + $0x30] sm:$0x11]  ;;  %v7803_v61 = vld [vmem:[%s10480_s17 + $0x8] sm:$0x22] }
  0x71   : > { %v1682_v31 = vshrl.u32 %v6392_v19, 16  ;;  %v1136_v32 = vpack.i.b16 %v6349_v20, %v6349_v20  ;;  %v1214_v36 = vpack.i.b16 %v1213_v22, %v1213_v22  ;;  %v1296_v38 = vpack.i.b16 %v6361_v23, %v6361_v23  ;;  %v7815_v10 = vld [vmem:[%s10480_s17 + $0x18] sm:$0x11]  ;;  %v2234_v14 = vld [vmem:[%s10480_s17 + $0x20] sm:$0x44] }
  0x72   : > { %v1675_v30 = vpack.i.b16 %v1674_v24, %v1674_v24  ;;  %v1222_v39 = vpack.i.b16 %v1221_v25, %v1221_v25  ;;  %v2506_v40 = vshrl.u32 %v6463_v27, 16  ;;  %v1230_v44 = vpack.i.b16 %v1229_v26, %v1229_v26  ;;  %v1021_v15 = vld [vmem:[%s10480_s17] sm:$0x44] }
  0x73   : > { %v1683_v43 = vpack.i.b16 %v1682_v31, %v1682_v31  ;;  %v2514_v45 = vshrl.u32 %v6464_v28, 16  ;;  %v1303_v46 = vpack.i.b16 %v6362_v29, %v6362_v29  ;;  %v6469_v47 = vcombine.low %v2557_v33, %v2557_v33  ;;  %v2362_v28 = vld [vmem:[%s10480_s17 + $0x20] sm:$0x88] }
  0x74   : > { %863 = vrot.lane.b32.xlu1 %v7637_v3, %s10377_s18  ;;  %1270 = vrot.lane.b32.xlu0 %v7635_v2, %s10385_s0  ;;  %v1680_v42 = vrot.slane %v1675_v30, %v7756_v34  ;;  %v7776_v49 = vrot.slane %v1136_v32, %v7762_v35  ;;  %v6350_v50 = vcombine.high %v1104_v13, %v1104_v13 }
  0x75   : > { %v1688_v51 = vrot.slane %v1683_v43, %v7756_v34  ;;  %v7785_v53 = vrot.slane %v1214_v36, %v7762_v35  ;;  %v7788_v54 = vrot.slane %v1296_v38, %v7764_v37  ;;  %v6351_v56 = vcombine.low %v7769_v41, %v7769_v41 }
  0x76   : > { %v1705_v52 = vmul.bf16 %v1680_v42, %v7637_v3  ;;  %v7798_v58 = vrot.slane %v1222_v39, %v7762_v35  ;;  %v2507_v59 = vpack.i.b16 %v2506_v40, %v2506_v40  ;;  %v6457_v60 = vcombine.low %v2429_v48, %v2429_v48  ;;  %v2491_v40 = vld [vmem:[%s10480_s17 + $0x38] sm:$0x11] }
  0x77   : > { %v1706_v62 = vmul.bf16 %v1688_v51, %v7651_v5  ;;  %v7807_v63 = vrot.slane %v1230_v44, %v7762_v35  ;;  %v2515_v0 = vpack.i.b16 %v2514_v45, %v2514_v45  ;;  %v7810_v1 = vrot.slane %v1303_v46, %v7764_v37  ;;  %v7862_v46 = vld [vmem:[%s10480_s17 + $0x8] sm:$0x44] }
  0x78   : > { %867 = vrot.lane.b32.xlu1 %v7635_v2, %s10377_s18  ;;  %865 = vrot.lane.b32.xlu0 %v7651_v5, %s10377_s18  ;;  %v2573_v8 = vpack.i.b16 %v6469_v47, %v6469_v47  ;;  %v1143_v11 = vpack.i.b16 %v6350_v50, %v6350_v50  ;;  %v6331_v12 = vcombine.low %v861_v57, %v861_v57 }
  0x79   : > { %v6332_v13 = vcombine.high %v861_v57, %v861_v57  ;;  %v6395_v16 = vcombine.low %v1705_v52, %v1706_v62  ;;  %v1150_v17 = vpack.i.b16 %v6351_v56, %v6351_v56  ;;  %v6458_v18 = vcombine.high %v2429_v48, %v2429_v48 }
  0x7a   : > { %v6333_v19 = vcombine.low %v7803_v61, %v7803_v61  ;;  %v7830_v20 = vrot.slane %v2507_v59, %v7764_v37  ;;  %v2445_v21 = vpack.i.b16 %v6457_v60, %v6457_v60  ;;  %v6363_v22 = vcombine.low %v7815_v10, %v7815_v10 }
  0x7b   : > { %v1719_v23 = vrot.slane %v6395_v16, 6  ;;  %v6470_v24 = vcombine.high %v2557_v33, %v2557_v33  ;;  %v6439_v25 = vcombine.low %v2234_v14, %v2234_v14  ;;  %v6440_v26 = vcombine.high %v2234_v14, %v2234_v14 }
  0x7c   : > { %1025 = vrot.lane.b32.xlu1 %v7651_v5, %s10379_s19  ;;  %1023 = vrot.lane.b32.xlu0 %v7637_v3, %s10379_s19  ;;  %v6343_v27 = vcombine.low %v1021_v15, %v1021_v15  ;;  %v7838_v29 = vrot.slane %v2515_v0, %v7764_v37  ;;  %v7841_v30 = vrot.slane %v2573_v8, %v7790_v55  ;;  %v893_v31 = vshrl.u32 %v6331_v12, 16 }
  0x7d   : > { %v901_v32 = vshrl.u32 %v6332_v13, 16  ;;  %1723 = vst [vmem:[#allocation2 + $0x148] sm:$0xcc] %v1719_v23  ;;  %v7848_v33 = vrot.slane %v1143_v11, %v7762_v35  ;;  %v7851_v36 = vrot.slane %v1150_v17, %v7762_v35  ;;  %v2452_v38 = vpack.i.b16 %v6458_v18, %v6458_v18 }
  0x7e   : > { %v909_v39 = vshrl.u32 %v6333_v19, 16  ;;  %v7857_v42 = vrot.slane %v2445_v21, %v7764_v37  ;;  %v1310_v43 = vpack.i.b16 %v6363_v22, %v6363_v22  ;;  %v6344_v44 = vcombine.high %v1021_v15, %v1021_v15  ;;  %v1662_v22 = vld [vmem:[%s10480_s17 + $0x18] sm:$0x44] }
  0x7f   : > { %10481 = vst [vmem:[#allocation27_spill] sm:$0xff] %v7851_v36  ;;  %v6451_v45 = vcombine.low %v2362_v28, %v2362_v28  ;;  %v2580_v47 = vpack.i.b16 %v6470_v24, %v6470_v24  ;;  %v2250_v48 = vshrl.u32 %v6439_v25, 16  ;;  %v2258_v50 = vshrl.u32 %v6440_v26, 16 }
  0x80   : > { %1189 = vrot.lane.b32.xlu1 %v7677_v7, %s10381_s2  ;;  %1027 = vrot.lane.b32.xlu0 %v7635_v2, %s10379_s19  ;;  %v1053_v51 = vshrl.u32 %v6343_v27, 16  ;;  %v894_v52 = vpack.i.b16 %v893_v31, %v893_v31  ;;  %v902_v56 = vpack.i.b16 %v901_v32, %v901_v32  ;;  %v6358_v57 = vcombine.high %v7729_v9, %v7729_v9  ;;  %v784_v31 = vld [vmem:[%s10480_s17] sm:$0x22] }
  0x81   : > { %v6465_v59 = vcombine.low %v2491_v40, %v2491_v40  ;;  %v910_v60 = vpack.i.b16 %v909_v39, %v909_v39  ;;  %v6466_v62 = vcombine.high %v2491_v40, %v2491_v40  ;;  %v6345_v0 = vcombine.low %v7862_v46, %v7862_v46 }
  0x82   : > { %v7873_v8 = vrot.slane %v2452_v38, %v7764_v37  ;;  %v7876_v11 = vrot.slane %v1310_v43, %v7764_v37  ;;  %v1061_v9 = vshrl.u32 %v6344_v44, 16  ;;  %v2378_v12 = vshrl.u32 %v6451_v45, 16 }
  0x83   : > { %v2251_v13 = vpack.i.b16 %v2250_v48, %v2250_v48  ;;  %v2259_v14 = vpack.i.b16 %v2258_v50, %v2258_v50  ;;  %v1054_v15 = vpack.i.b16 %v1053_v51, %v1053_v51  ;;  %v6452_v16 = vcombine.high %v2362_v28, %v2362_v28  ;;  %v2173_v48 = vld [vmem:[%s10480_s17 + $0x20] sm:$0x44] }
  0x84   : > { %788 = vrot.lane.b32.xlu1 %v7651_v5, %s10402_s1  ;;  %786 = vrot.lane.b32.xlu0 %v7637_v3, %s10402_s1  ;;  %10482 = vst [vmem:[#allocation28_spill] sm:$0xff] %v7876_v11  ;;  %v7879_v17 = vrot.slane %v894_v52, %v7790_v55  ;;  %v7882_v18 = vrot.slane %v2580_v47, %v7790_v55  ;;  %v1237_v19 = vshrl.u32 %v6358_v57, 16  ;;  %v2522_v21 = vshrl.u32 %v6465_v59, 16  ;;  %v944_v50 = vld [vmem:[%s10480_s17] sm:$0x44] }
  0x85   : > { %v7892_v23 = vrot.slane %v902_v56, %v7790_v55  ;;  %v7895_v24 = vrot.slane %v910_v60, %v7790_v55  ;;  %v2530_v25 = vshrl.u32 %v6466_v62, 16  ;;  %v1069_v26 = vshrl.u32 %v6345_v0, 16 }
  0x86   : > { %v1062_v27 = vpack.i.b16 %v1061_v9, %v1061_v9  ;;  %v2379_v28 = vpack.i.b16 %v2378_v12, %v2378_v12  ;;  %v6393_v32 = vcombine.low %v1662_v22, %v1662_v22  ;;  %v6394_v38 = vcombine.high %v1662_v22, %v1662_v22 }
  0x87   : > { %10483 = vst [vmem:[#allocation29_spill] sm:$0xff] %v7895_v24  ;;  %v7901_v39 = vrot.slane %v2251_v13, %v7756_v34  ;;  %v7904_v40 = vrot.slane %v2259_v14, %v7756_v34  ;;  %v7907_v43 = vrot.slane %v1054_v15, %v7756_v34  ;;  %v2386_v44 = vshrl.u32 %v6452_v16, 16  ;;  %v7928_v16 = vld [vmem:[%s10480_s17 + $0x8] sm:$0x22] }
  0x88   : > { %946 = vrot.lane.b32.xlu1 %v7637_v3, %s10408_s23  ;;  %790 = vrot.lane.b32.xlu0 %v7635_v2, %s10402_s1  ;;  %v1238_v45 = vpack.i.b16 %v1237_v19, %v1237_v19  ;;  %v2523_v47 = vpack.i.b16 %v2522_v21, %v2522_v21  ;;  %v1690_v51 = vshrl.u32 %v6393_v32, 16  ;;  %v1698_v52 = vshrl.u32 %v6394_v38, 16  ;;  %10484 = vst [vmem:[#allocation30_spill] sm:$0xff] %v7928_v16  ;;  %v2301_v32 = vld [vmem:[%s10480_s17 + $0x20] sm:$0x88] }
  0x89   : > { %v2531_v56 = vpack.i.b16 %v2530_v25, %v2530_v25  ;;  %v1070_v57 = vpack.i.b16 %v1069_v26, %v1069_v26  ;;  %v6325_v59 = vcombine.low %v784_v31, %v784_v31  ;;  %v7920_v60 = vrot.slane %v1062_v27, %v7756_v34 }
  0x8a   : > { %v7923_v62 = vrot.slane %v2379_v28, %v7762_v35  ;;  %v1691_v0 = vpack.i.b16 %v1690_v51, %v1690_v51  ;;  %v1699_v9 = vpack.i.b16 %v1698_v52, %v1698_v52  ;;  %v2387_v12 = vpack.i.b16 %v2386_v44, %v2386_v44 }
  0x8b   : > { %v6326_v13 = vcombine.high %v784_v31, %v784_v31  ;;  %v6433_v14 = vcombine.low %v2173_v48, %v2173_v48  ;;  %v6337_v15 = vcombine.low %v944_v50, %v944_v50  ;;  %v7931_v19 = vrot.slane %v1238_v45, %v7762_v35  ;;  %v7951_v31 = vld [vmem:[%s10480_s17 + $0x8] sm:$0x44]  ;;  %v2558_v45 = vld [vmem:[%s10480_s17 + $0x38] sm:$0x22] }
  0x8c   : > { %950 = vrot.lane.b32.xlu1 %v7635_v2, %s10408_s23  ;;  %948 = vrot.lane.b32.xlu0 %v7651_v5, %s10408_s23  ;;  %v7934_v21 = vrot.slane %v2523_v47, %v7764_v37  ;;  %v1696_v22 = vrot.slane %v1691_v0, %v7756_v34  ;;  %v1704_v25 = vrot.slane %v1699_v9, %v7756_v34 }
  0x8d   : > { %v7943_v26 = vrot.slane %v2531_v56, %v7764_v37  ;;  %v7946_v27 = vrot.slane %v1070_v57, %v7756_v34  ;;  %v816_v28 = vpack.i.b16 %v6325_v59, %v6325_v59  ;;  %10486 = vst [vmem:[#allocation32_spill] sm:$0xff] %v7951_v31  ;;  %v6327_v38 = vcombine.low %v7928_v16, %v7928_v16 }
  0x8e   : > { %v6434_v44 = vcombine.high %v2173_v48, %v2173_v48  ;;  %v1707_v47 = vmul.bf16 %v1696_v22, %v7635_v2  ;;  %v1708_v51 = vmul.bf16 %v1704_v25, %v7677_v7  ;;  %v7964_v52 = vrot.slane %v2387_v12, %v7762_v35  ;;  %v2430_v48 = vld [vmem:[%s10480_s17 + $0x38] sm:$0x11] }
  0x8f   : > { %10485 = vst [vmem:[#allocation31_spill] sm:$0xff] %v7946_v27  ;;  %v823_v56 = vpack.i.b16 %v6326_v13, %v6326_v13  ;;  %v2189_v57 = vpack.i.b16 %v6433_v14, %v6433_v14  ;;  %v976_v59 = vpack.i.b16 %v6337_v15, %v6337_v15  ;;  %v6338_v0 = vcombine.high %v944_v50, %v944_v50 }
  0x90   : > { %1272 = vrot.lane.b32.xlu1 %v7677_v7, %s10385_s0  ;;  %1112 = vrot.lane.b32.xlu0 %v7677_v7, %s10383_s15  ;;  %s10389_s0 = smov 120   ;;  %s7397_s15 = smov 127   ;;  %v6339_v9 = vcombine.low %v7951_v31, %v7951_v31  ;;  %v6445_v6 = vcombine.low %v2301_v32, %v2301_v32  ;;  %v6396_v4 = vcombine.low %v1707_v47, %v1708_v51 }
  0x91   : > { %v6446_v12 = vcombine.high %v2301_v32, %v2301_v32  ;;  %v6364_v50 = vcombine.high %v7815_v10, %v7815_v10  ;;  %v6471_v13 = vcombine.low %v2558_v45, %v2558_v45  ;;  %v830_v14 = vpack.i.b16 %v6327_v38, %v6327_v38 }
  0x92   : > { %v2196_v15 = vpack.i.b16 %v6434_v44, %v6434_v44  ;;  %v6472_v22 = vcombine.high %v2558_v45, %v2558_v45  ;;  %v1720_v25 = vrot.slane %v6396_v4, 6  ;;  %v7980_v51 = vrot.slane %v816_v28, %v7790_v55  ;;  %v701_v4 = vld [vmem:[%s10480_s17] sm:$0x11] }
  0x93   : > { %v6352_v32 = vcombine.high %v7769_v41, %v7769_v41  ;;  %v6459_v24 = vcombine.low %v2430_v48, %v2430_v48  ;;  %v7988_v10 = vrot.slane %v2189_v57, %v7756_v34  ;;  %v983_v38 = vpack.i.b16 %v6338_v0, %v6338_v0 }
  0x94   : > { %705 = vrot.lane.b32.xlu1 %v7651_v5, %s10391_s24  ;;  %703 = vrot.lane.b32.xlu0 %v7637_v3, %s10391_s24  ;;  %v990_v44 = vpack.i.b16 %v6339_v9, %v6339_v9  ;;  %v2317_v45 = vpack.i.b16 %v6445_v6, %v6445_v6  ;;  %1724 = vst [vmem:[#allocation2 + $0x100] sm:$0xcc] %v1720_v25 }
  0x95   : > { %v2324_v41 = vpack.i.b16 %v6446_v12, %v6446_v12  ;;  %v1317_v28 = vpack.i.b16 %v6364_v50, %v6364_v50  ;;  %v7998_v57 = vrot.slane %v976_v59, %v7756_v34  ;;  %v8001_v6 = vrot.slane %v830_v14, %v7790_v55  ;;  %v8011_v12 = vld [vmem:[%s10480_s17 + $0x20] sm:$0x22] }
  0x96   : > { %v8004_v0 = vrot.slane %v2196_v15, %v7756_v34  ;;  %v2594_v9 = vpack.i.b16 %v6472_v22, %v6472_v22  ;;  %v1157_v11 = vpack.i.b16 %v6352_v32, %v6352_v32  ;;  %v8006_v36 = vcombine.high %v2430_v48, %v2430_v48  ;;  %v8038_v22 = vld [vmem:[%s10480_s17 + $0x28] sm:$0x44] }
  0x97   : > { %10487 = vst [vmem:[#allocation33_spill] sm:$0xff] %v8001_v6  ;;  %v6319_v16 = vcombine.low %v701_v4, %v701_v4  ;;  %v8014_v59 = vrot.slane %v983_v38, %v7756_v34  ;;  %v8017_v50 = vrot.slane %v990_v44, %v7756_v34  ;;  %v6320_v14 = vcombine.high %v701_v4, %v701_v4 }
  0x98   : > { %869 = vrot.lane.b32.xlu1 %v7677_v7, %s10377_s18  ;;  %707 = vrot.lane.b32.xlu0 %v7635_v2, %s10391_s24  ;;  %v8030_v48 = vrot.slane %v1317_v28, %v7764_v37  ;;  %v8042_v38 = vrot.slane %v2594_v9, %v7790_v55  ;;  %v6427_v44 = vcombine.low %v8011_v12, %v8011_v12  ;;  %s10515_s18 = smov 56  }
  0x99   : > { %10488 = vst [vmem:[#allocation34_spill] sm:$0xff] %v8017_v50  ;;  %v8051_v28 = vrot.slane %v1157_v11, %v7762_v35  ;;  %v2466_v9 = vpack.i.b16 %v8006_v36, %v8006_v36  ;;  %v733_v50 = vshrl.u32 %v6319_v16, 16 }
  0x9a   : > { %10490 = vst [vmem:[#allocation36_spill] sm:$0xff] %v8030_v48  ;;  %10492 = vst [vmem:[#allocation38_spill] sm:$0xff] %v8042_v38 }
  0x9b   : > { %10493 = vst [vmem:[#allocation39_spill] sm:$0xff] %v8051_v28 }
  0x9c   : > { %1964 = vrot.lane.b32.xlu1 %v7637_v3, %s10387_s30  ;;  %1029 = vrot.lane.b32.xlu0 %v7677_v7, %s10379_s19  ;;  %s7399_s19 = smov 7  }
  0xa0   : > { %1968 = vrot.lane.b32.xlu1 %v7635_v2, %s10387_s30  ;;  %1966 = vrot.lane.b32.xlu0 %v7651_v5, %s10387_s30 }
  0xa4   : > { %627 = vrot.lane.b32.xlu1 %v7651_v5, %s10393_s22  ;;  %625 = vrot.lane.b32.xlu0 %v7637_v3, %s10393_s22 }
  0xa8   : > { %792 = vrot.lane.b32.xlu1 %v7677_v7, %s10402_s1  ;;  %629 = vrot.lane.b32.xlu0 %v7635_v2, %s10393_s22  ;;  %s10407_s1 = sshll.u32 %s7619_s26, 5 }
  0xac   : > { %1887 = vrot.lane.b32.xlu1 %v7637_v3, %s10389_s0  ;;  %952 = vrot.lane.b32.xlu0 %v7677_v7, %s10408_s23 }
  0xb0   : > { %1891 = vrot.lane.b32.xlu1 %v7635_v2, %s10389_s0  ;;  %1889 = vrot.lane.b32.xlu0 %v7651_v5, %s10389_s0 }
  0xb4   : > { %1804 = vrot.lane.b32.xlu1 %v7637_v3, %s7395_s21  ;;  %709 = vrot.lane.b32.xlu0 %v7677_v7, %s10391_s24  ;;  %s7400_s24 = smov 8  }
  0xb8   : > { %1808 = vrot.lane.b32.xlu1 %v7635_v2, %s7395_s21  ;;  %1806 = vrot.lane.b32.xlu0 %v7651_v5, %s7395_s21 }
  0xbc   : > { %631 = vrot.lane.b32.xlu1 %v7677_v7, %s10393_s22  ;;  %1970 = vrot.lane.b32.xlu0 %v7677_v7, %s10387_s30  ;;  %s7398_s30 = smov 9   ;;  %s6310_s22 = sshll.u32 %s7619_s26, 6 }
  0xbd   : > { %s8713_s29 = scalar_lea.vmem [#allocation9], %s6310_s22  ;;  %s10518_s22 = smov 65  }
  0xc0   : > { %1588 = vrot.lane.b32.xlu1 %v7651_v5, %s7396_s27  ;;  %1586 = vrot.lane.b32.xlu0 %v7637_v3, %s7396_s27 }
  0xc4   : > { %1729 = vrot.lane.b32.xlu1 %v7651_v5, %s7397_s15  ;;  %1727 = vrot.lane.b32.xlu0 %v7637_v3, %s7397_s15 }
  0xc8   : > { %1893 = vrot.lane.b32.xlu1 %v7677_v7, %s10389_s0  ;;  %1731 = vrot.lane.b32.xlu0 %v7635_v2, %s7397_s15 }
  0xcc   : > { %1345 = vrot.lane.b32.xlu1 %v7651_v5, %s7398_s30  ;;  %1343 = vrot.lane.b32.xlu0 %v7637_v3, %s7398_s30 }
  0xd0   : > { %1505 = vrot.lane.b32.xlu1 %v7651_v5, %s7399_s19  ;;  %1503 = vrot.lane.b32.xlu0 %v7637_v3, %s7399_s19 }
  0xd4   : > { %1426 = vrot.lane.b32.xlu1 %v7637_v3, %s7400_s24  ;;  %1810 = vrot.lane.b32.xlu0 %v7677_v7, %s7395_s21  ;;  %v7983_v3 = vrot.slane %v823_v56, %v7790_v55  ;;  %v2587_v56 = vpack.i.b16 %v6471_v13, %v6471_v13  ;;  %v8020_v13 = vrot.slane %v2317_v45, %v7762_v35 }
  0xd5   : > { %v6334_v45 = vcombine.high %v7803_v61, %v7803_v61  ;;  %v741_v61 = vshrl.u32 %v6320_v14, 16 }
  0xd6   : > { %v7977_v27 = vpop.permute.xlu1 %1187  ;;  %v1184_v47 = vpop.permute.xlu0 %1183  ;;  %v8033_v15 = vrot.slane %v2587_v56, %v7790_v55 }
  0xd7   : > { %v1200_v32 = vsel %vm1191_vm0, 0, %v1184_v47  ;;  %v8075_v14 = vshrl.u32 %v6334_v45, 16 }
  0xd8   : > { %1590 = vrot.lane.b32.xlu1 %v7635_v2, %s7396_s27  ;;  %1428 = vrot.lane.b32.xlu0 %v7651_v5, %s7400_s24  ;;  %v2459_v5 = vpack.i.b16 %v6459_v24, %v6459_v24  ;;  %v8027_v24 = vrot.slane %v2324_v41, %v7762_v35  ;;  %10491 = vst [vmem:[#allocation37_spill] sm:$0xff] %v8033_v15 }
  0xd9   : > { %v6441_v15 = vcombine.low %v8038_v22, %v8038_v22  ;;  %v1244_v11 = vmul.bf16 %v7785_v53, %v1200_v32  ;;  %v6442_v53 = vcombine.high %v8038_v22, %v8038_v22  ;;  %v8089_v22 = vld [vmem:[%s10480_s17 + $0x8] sm:$0x11] }
  0xda   : > { %v1107_v25 = vpop.permute.xlu1 %1106  ;;  %v1267_v31 = vpop.permute.xlu0 %1266  ;;  %10489 = vst [vmem:[#allocation35_spill] sm:$0xff] %v8027_v24  ;;  %v8054_v56 = vrot.slane %v2459_v5, %v7764_v37 }
  0xdb   : > { %v1283_v16 = vsel %vm1274_vm2, 0, %v1267_v31 }
  0xdc   : > { %1733 = vrot.lane.b32.xlu1 %v7677_v7, %s7397_s15  ;;  %1592 = vrot.lane.b32.xlu0 %v7677_v7, %s7396_s27  ;;  %10494 = vst [vmem:[#allocation40_spill] sm:$0xff] %v8054_v56  ;;  %v1323_v45 = vmul.bf16 %v7788_v54, %v1283_v16  ;;  %v8105_v16 = vrot.slane %v2466_v9, %v7764_v37  ;;  %v8120_v9 = vshrl.u32 %v6442_v53, 16 }
  0xde   : > { %v8048_v4 = vpop.permute.xlu1 %1110  ;;  %v1186_v41 = vpop.permute.xlu0 %1185 }
  0xdf   : > { %v1192_v6 = vsel %vm1191_vm0, %v1184_v47, %v1186_v41  ;;  %v8061_v38 = vsel %vm1191_vm0, %v1186_v41, %v7977_v27  ;;  %v2122_v47 = vshrl.u32 %v6427_v44, 16  ;;  %v734_v41 = vpack.i.b16 %v733_v50, %v733_v50 }
  0xe0   : > { %v1245_v28 = vmul.bf16 %v7798_v58, %v1192_v6  ;;  %v2537_v5 = vmul.bf16 %v7830_v20, %v1192_v6  ;;  %v2538_v36 = vmul.bf16 %v7838_v29, %v8061_v38  ;;  %1349 = vrot.lane.b32.xlu1 %v7677_v7, %s7398_s30  ;;  %1347 = vrot.lane.b32.xlu0 %v7635_v2, %s7398_s30  ;;  %v1123_v58 = vsel %vm1114_vm1, 0, %v1107_v25 }
  0xe1   : > { %v742_v44 = vpack.i.b16 %v741_v61, %v741_v61 }
  0xe2   : > { %v6359_v20 = vcombine.low %v1244_v11, %v1245_v28  ;;  %v6467_v6 = vcombine.low %v2537_v5, %v2538_v36  ;;  %v1269_v32 = vpop.permute.xlu1 %1268  ;;  %v1109_v29 = vpop.permute.xlu0 %1108 }
  0xe3   : > { %v1275_v56 = vsel %vm1274_vm2, %v1267_v31, %v1269_v32  ;;  %v1115_v48 = vsel %vm1114_vm1, %v1107_v25, %v1109_v29  ;;  %v8084_v24 = vsel %vm1114_vm1, %v1109_v29, %v8048_v4  ;;  %v1163_v31 = vmul.bf16 %v7776_v49, %v1123_v58 }
  0xe4   : > { %v1258_v28 = vrot.slane %v6359_v20, 6  ;;  %v2551_v11 = vrot.slane %v6467_v6, 6  ;;  %v1324_v50 = vmul.bf16 %v7810_v1, %v1275_v56  ;;  %1509 = vrot.lane.b32.xlu1 %v7677_v7, %s7399_s19  ;;  %v1164_v25 = vmul.bf16 %v7848_v33, %v1115_v48  ;;  %1507 = vrot.lane.b32.xlu0 %v7635_v2, %s7399_s19 }
  0xe5   : > { %v2472_v61 = vmul.bf16 %v7857_v42, %v1115_v48  ;;  %v2473_v5 = vmul.bf16 %v7873_v8, %v8084_v24  ;;  %v2266_v49 = vshrl.u32 %v6441_v15, 16  ;;  %v6321_v33 = vcombine.low %v8089_v22, %v8089_v22 }
  0xe6   : > { %1262 = vst [vmem:[#allocation2 + $0x40] sm:$0xcc] %v1258_v28  ;;  %2555 = vst [vmem:[#allocation2 + $0x80] sm:$0xcc] %v2551_v11  ;;  %v6365_v54 = vcombine.low %v1323_v45, %v1324_v50  ;;  %v864_v1 = vpop.permute.xlu1 %863  ;;  %v8102_v36 = vpop.permute.xlu0 %1270  ;;  %v6353_v42 = vcombine.low %v1163_v31, %v1164_v25  ;;  %v2123_v58 = vpack.i.b16 %v2122_v47, %v2122_v47  ;;  %v10410_v28 = vmov 0  }
  0xe7   : > { %v6461_v48 = vcombine.low %v2472_v61, %v2473_v5  ;;  %v8111_v8 = vsel %vm1274_vm2, %v1269_v32, %v8102_v36  ;;  %v2600_v20 = vmul.bf16 %v7841_v30, %v1275_v56  ;;  %v918_v15 = vpack.i.b16 %v8075_v14, %v8075_v14  ;;  %2840 = vmatprep.mubr.bf16.mxu0 %v10410_v28 }
  0xe8   : > { %1339 = vst [vmem:[#allocation2 + $0x108] sm:$0x33] %v6365_v54  ;;  %v2601_v6 = vmul.bf16 %v7882_v18, %v8111_v8  ;;  %1432 = vrot.lane.b32.xlu1 %v7677_v7, %s7400_s24  ;;  %1179 = vst [vmem:[#allocation2 + $0x40] sm:$0x33] %v6353_v42  ;;  %v880_v32 = vsel %vm10405_vm3, 0, %v864_v1  ;;  %1430 = vrot.lane.b32.xlu0 %v7635_v2, %s7400_s24  ;;  %v8126_v30 = vrot.slane %v734_v41, %v7764_v37 }
  0xe9   : > { %2488 = vst [vmem:[#allocation2 + $0x80] sm:$0x33] %v6461_v48  ;;  %v8129_v18 = vrot.slane %v742_v44, %v7764_v37  ;;  %v6428_v7 = vcombine.high %v8011_v12, %v8011_v12  ;;  %v2267_v53 = vpack.i.b16 %v2266_v49, %v2266_v49  ;;  %v6346_v29 = vcombine.high %v7862_v46, %v7862_v46  ;;  %v2363_v2 = vld [vmem:[%s10480_s17 + $0x28] sm:$0x88] }
  0xea   : > { %v6473_v56 = vcombine.low %v2600_v20, %v2601_v6  ;;  %v8133_v47 = vpop.permute.xlu1 %867  ;;  %v866_v14 = vpop.permute.xlu0 %865  ;;  %v8146_v12 = vrot.slane %v2123_v58, %v7790_v55  ;;  %v8148_v45 = vshrl.u32 %v6321_v33, 16  ;;  %2881 = vmatprep.mubr.bf16.mxu1 %v10410_v28  ;;  %v924_v46 = vmul.bf16 %v7879_v17, %v880_v32  ;;  %6843 = vset.pattern.permute.xlu0 %v10410_v28  ;;  %v1962_v33 = vld [vmem:[%s10480_s17 + $0x20] sm:$0x11] }
  0xeb   : > { %v872_v41 = vsel %vm10405_vm3, %v864_v1, %v866_v14  ;;  %v8143_v44 = vsel %vm10405_vm3, %v866_v14, %v8133_v47  ;;  %v8159_v25 = vrot.slane %v918_v15, %v7790_v55  ;;  %v8161_v61 = vshrl.u32 %v6428_v7, 16  ;;  %6844 = vset.pattern.permute.xlu1 %v10410_v28  ;;  %v619_v6 = vld [vmem:[%s10480_s17] sm:$0x11] }
  0xec   : > { %2616 = vst [vmem:[#allocation2 + $0x28] sm:$0x33] %v6473_v56  ;;  %v925_v11 = vmul.bf16 %v7892_v23, %v872_v41  ;;  %v2281_v50 = vmul.bf16 %v7901_v39, %v872_v41  ;;  %v2282_v31 = vmul.bf16 %v7904_v40, %v8143_v44  ;;  %v6453_v5 = vcombine.low %v2363_v2, %v2363_v2 }
  0xed   : > { %v6454_v54 = vcombine.high %v2363_v2, %v2363_v2  ;;  %v2275_v39 = vpack.i.b16 %v8120_v9, %v8120_v9  ;;  %v8166_v40 = vshrl.u32 %v6346_v29, 16  ;;  %v8174_v58 = vrot.slane %v2267_v53, %v7756_v34 }
  0xee   : > { %v6335_v17 = vcombine.low %v924_v46, %v925_v11  ;;  %v6443_v1 = vcombine.low %v2281_v50, %v2282_v31  ;;  %v1026_v23 = vpop.permute.xlu1 %1025  ;;  %v1024_v49 = vpop.permute.xlu0 %1023  ;;  %v750_v20 = vpack.i.b16 %v8148_v45, %v8148_v45  ;;  %v2131_v56 = vpack.i.b16 %v8161_v61, %v8161_v61 }
  0xef   : > { %v1032_v42 = vsel %vm1031_vm4, %v1024_v49, %v1026_v23  ;;  %v1040_v48 = vsel %vm1031_vm4, 0, %v1024_v49  ;;  %v8185_v14 = vshrl.u32 %v6453_v5, 16  ;;  %v8187_v53 = vshrl.u32 %v6454_v54, 16 }
  0xf0   : > { %v938_v15 = vrot.slane %v6335_v17, 6  ;;  %v2295_v9 = vrot.slane %v6443_v1, 6  ;;  %v1084_v32 = vmul.bf16 %v7907_v43, %v1040_v48  ;;  %v1085_v7 = vmul.bf16 %v7920_v60, %v1032_v42 }
  0xf1   : > { %v6415_v29 = vcombine.low %v1962_v33, %v1962_v33  ;;  %v1078_v43 = vpack.i.b16 %v8166_v40, %v8166_v40  ;;  %v6416_v46 = vcombine.high %v1962_v33, %v1962_v33  ;;  %v8193_v60 = vcombine.low %v619_v6, %v619_v6 }
  0xf2   : > { %942 = vst [vmem:[#allocation2 + $0x10] sm:$0xcc] %v938_v15  ;;  %2299 = vst [vmem:[#allocation2 + $0x1a0] sm:$0xcc] %v2295_v9  ;;  %v6347_v2 = vcombine.low %v1084_v32, %v1085_v7  ;;  %v1190_v41 = vpop.permute.xlu1 %1189  ;;  %v8189_v45 = vpop.permute.xlu0 %1027  ;;  %v1246_v11 = vmul.bf16 %v7807_v63, %v8061_v38  ;;  %v2409_v63 = vmul.bf16 %v7923_v62, %v1032_v42  ;;  %v2647_v62 = vld [vmem:[%s10495_s5] sm:$0xf] }
  0xf3   : > { %v1194_v50 = vsel %vm1191_vm0, %v7977_v27, %v1190_v41  ;;  %v2493_v31 = vsel %vm1191_vm0, %v1190_v41, 0  ;;  %v8202_v61 = vsel %vm1031_vm4, %v1026_v23, %v8189_v45  ;;  %v6875_v5 = vld [vmem:[#allocation2 + $0x84] ss:$-88 sps:$4 sm:$0x3f]   ;;  %v2395_v38 = vpack.i.b16 %v8185_v14, %v8185_v14  ;;  %2652 = vperm.xlu0 %6843, %v2647_v62  }
  0xf4   : > { %v1098_v54 = vrot.slane %v6347_v2, 6  ;;  %v1247_v17 = vmul.bf16 %v7931_v19, %v1194_v50  ;;  %v2539_v1 = vmul.bf16 %v7934_v21, %v1194_v50  ;;  %v2540_v49 = vmul.bf16 %v7943_v26, %v2493_v31  ;;  %v6880_v40 = vld [vmem:[#allocation2 + $0x80] ss:$-88 sps:$4 sm:$0x3f]   ;;  %6503 = vmatprep.subr.msk.bf16.mxu0 %vm2795_vm5, %v6875_v5 }
  0xf5   : > { %v2410_v27 = vmul.bf16 %v7964_v52, %v8202_v61  ;;  %v1994_v23 = vshrl.u32 %v6415_v29, 16  ;;  %v2797_v21 = vsel %vm2795_vm5, %v6880_v40, 0  ;;  %v2403_v26 = vpack.i.b16 %v8187_v53, %v8187_v53  ;;  %v8226_v53 = vld [vmem:[%s10480_s17 + $0x20] sm:$0x22] }
  0xf6   : > { %1102 = vst [vmem:[#allocation2 + $0x160] sm:$0xcc] %v1098_v54  ;;  %v6360_v33 = vcombine.low %v1246_v11, %v1247_v17  ;;  %v6468_v48 = vcombine.low %v2539_v1, %v2540_v49  ;;  %v789_v19 = vpop.permute.xlu1 %788  ;;  %v787_v15 = vpop.permute.xlu0 %786  ;;  %2811 = vmatpush1.bf16.msra.mxu0 %v2797_v21  ;;  %v2002_v32 = vshrl.u32 %v6416_v46, 16  ;;  %v8229_v11 = vrot.slane %v2275_v39, %v7756_v34  ;;  %v2174_v39 = vld [vmem:[%s10480_s17 + $0x28] sm:$0x44] }
  0xf7   : > { %v6455_v52 = vcombine.low %v2409_v63, %v2410_v27  ;;  %v795_v42 = vsel %vm10406_vm6, %v787_v15, %v789_v19  ;;  %v803_v9 = vsel %vm10406_vm6, 0, %v787_v15  ;;  %v8232_v50 = vrot.slane %v750_v20, %v7764_v37  ;;  %v10496_v27 = vld [vmem:[#allocation30_spill] sm:$0xff] }
  0xf8   : > { %v1259_v7 = vrot.slane %v6360_v33, 6  ;;  %v2552_v14 = vrot.slane %v6468_v48, 6  ;;  %v843_v29 = vmul.bf16 %v7980_v51, %v803_v9  ;;  %v844_v2 = vmul.bf16 %v7983_v3, %v795_v42 }
  0xf9   : > { %v2423_v41 = vrot.slane %v6455_v52, 6  ;;  %v8235_v46 = vrot.slane %v2131_v56, %v7790_v55  ;;  %v1995_v5 = vpack.i.b16 %v1994_v23, %v1994_v23  ;;  %v8239_v54 = vcombine.high %v619_v6, %v619_v6 }
  0xfa   : > { %1263 = vst [vmem:[#allocation2 + $0x178] sm:$0xcc] %v1259_v7  ;;  %2556 = vst [vmem:[#allocation2 + $0xa8] sm:$0xcc] %v2552_v14  ;;  %v6329_v51 = vcombine.low %v843_v29, %v844_v2  ;;  %v947_v31 = vpop.permute.xlu1 %946  ;;  %v8237_v3 = vpop.permute.xlu0 %790  ;;  %v656_v17 = vpack.i.b16 %v8193_v60, %v8193_v60  ;;  %v8251_v56 = vrot.slane %v1078_v43, %v7756_v34  ;;  %v10497_v29 = vld [vmem:[#allocation35_spill] sm:$0xff] }
  0xfb   : > { %2427 = vst [vmem:[#allocation2 + $0x98] sm:$0xcc] %v2423_v41  ;;  %v8248_v20 = vsel %vm10406_vm6, %v789_v19, %v8237_v3  ;;  %v2003_v1 = vpack.i.b16 %v2002_v32, %v2002_v32  ;;  %v8255_v6 = vcombine.low %v8226_v53, %v8226_v53  ;;  %v2216_v60 = vmul.bf16 %v7988_v10, %v795_v42 }
  0xfc   : > { %859 = vst [vmem:[#allocation2 + $0x10] sm:$0x33] %v6329_v51  ;;  %v2217_v49 = vmul.bf16 %v8004_v0, %v8248_v20  ;;  %v8261_v40 = vrot.slane %v2395_v38, %v7762_v35  ;;  %v8264_v63 = vrot.slane %v2403_v26, %v7762_v35  ;;  %v963_v43 = vsel %vm954_vm7, 0, %v947_v31  ;;  %v8286_v26 = vld [vmem:[%s10480_s17 + $0x8] sm:$0x11] }
  0xfd   : > { %v6328_v23 = vcombine.high %v10496_v27, %v10496_v27  ;;  %v8269_v33 = vcombine.low %v2174_v39, %v2174_v39  ;;  %v8271_v48 = vcombine.high %v2174_v39, %v2174_v39  ;;  %v8276_v15 = vrot.slane %v1995_v5, %v7764_v37 }
  0xfe   : > { %v6437_v10 = vcombine.low %v2216_v60, %v2217_v49  ;;  %v8273_v19 = vpop.permute.xlu1 %950  ;;  %v949_v0 = vpop.permute.xlu0 %948  ;;  %v8279_v38 = vrot.slane %v656_v17, %v7764_v37  ;;  %v663_v21 = vpack.i.b16 %v8239_v54, %v8239_v54  ;;  %v8294_v42 = vrot.slane %v2003_v1, %v7764_v37 }
  0xff   : > { %v955_v62 = vsel %vm954_vm7, %v947_v31, %v949_v0  ;;  %v8291_v52 = vsel %vm954_vm7, %v949_v0, %v8273_v19  ;;  %v2061_v9 = vpack.i.b16 %v8255_v6, %v8255_v6  ;;  %v1003_v32 = vmul.bf16 %v7998_v57, %v963_v43  ;;  %v10498_v57 = vld [vmem:[#allocation27_spill] sm:$0xff] }
 0x100   : > { %2232 = vst [vmem:[#allocation2 + $0x1a0] sm:$0x33] %v6437_v10  ;;  %v1004_v7 = vmul.bf16 %v8014_v59, %v955_v62  ;;  %v2344_v14 = vmul.bf16 %v8020_v13, %v955_v62  ;;  %v2345_v2 = vmul.bf16 %v10497_v29, %v8291_v52  ;;  %v837_v41 = vpack.i.b16 %v6328_v23, %v6328_v23  ;;  %v10499_v59 = vld [vmem:[#allocation28_spill] sm:$0xff]  ;;  %v10503_v0 = vld [vmem:[#allocation39_spill] sm:$0xff] }
 0x101   : > { %v2203_v51 = vpack.i.b16 %v8269_v33, %v8269_v33  ;;  %v2210_v31 = vpack.i.b16 %v8271_v48, %v8271_v48  ;;  %v6315_v5 = vcombine.low %v8286_v26, %v8286_v26  ;;  %v1165_v54 = vmul.bf16 %v10498_v57, %v8084_v24  ;;  %v10500_v24 = vld [vmem:[#allocation36_spill] sm:$0xff]  ;;  %v10501_v33 = vld [vmem:[#allocation37_spill] sm:$0xff]  ;;  %v10502_v48 = vld [vmem:[#allocation38_spill] sm:$0xff] }
 0x102   : > { %v1325_v17 = vmul.bf16 %v10499_v59, %v8111_v8  ;;  %v6341_v13 = vcombine.low %v1003_v32, %v1004_v7  ;;  %v6449_v39 = vcombine.low %v2344_v14, %v2345_v2  ;;  %v1273_v1 = vpop.permute.xlu1 %1272  ;;  %v1113_v6 = vpop.permute.xlu0 %1112  ;;  %v10504_v32 = vld [vmem:[#allocation40_spill] sm:$0xff] }
 0x103   : > { %v1277_v60 = vsel %vm1274_vm2, %v8102_v36, %v1273_v1  ;;  %v2560_v49 = vsel %vm1274_vm2, %v1273_v1, 0  ;;  %v1117_v43 = vsel %vm1114_vm1, %v8048_v4, %v1113_v6  ;;  %v2432_v27 = vsel %vm1114_vm1, %v1113_v6, 0  ;;  %v2302_v6 = vld [vmem:[%s10480_s17 + $0x28] sm:$0x88] }
 0x104   : > { %1019 = vst [vmem:[#allocation2 + $0x160] sm:$0x33] %v6341_v13  ;;  %2360 = vst [vmem:[#allocation2 + $0x98] sm:$0x33] %v6449_v39  ;;  %v1326_v23 = vmul.bf16 %v10500_v24, %v1277_v60  ;;  %v2602_v8 = vmul.bf16 %v10501_v33, %v1277_v60  ;;  %v2603_v10 = vmul.bf16 %v10502_v48, %v2560_v49  ;;  %v10505_v39 = vld [vmem:[#allocation32_spill] sm:$0xff] }
 0x105   : > { %v1166_v62 = vmul.bf16 %v10503_v0, %v1117_v43  ;;  %v2474_v7 = vmul.bf16 %v10504_v32, %v1117_v43  ;;  %v2475_v36 = vmul.bf16 %v8105_v16, %v2432_v27  ;;  %v670_v14 = vpack.i.b16 %v6315_v5, %v6315_v5 }
 0x106   : > { %v8327_v4 = vcombine.high %v8226_v53, %v8226_v53  ;;  %v6366_v29 = vcombine.low %v1325_v17, %v1326_v23  ;;  %v6474_v2 = vcombine.low %v2602_v8, %v2603_v10  ;;  %v706_v59 = vpop.permute.xlu1 %705  ;;  %v704_v13 = vpop.permute.xlu0 %703  ;;  %v8331_v1 = vcombine.high %v10505_v39, %v10505_v39  ;;  %v10506_v8 = vld [vmem:[#allocation29_spill] sm:$0xff]  ;;  %v10507_v39 = vld [vmem:[#allocation31_spill] sm:$0xff] }
 0x107   : > { %v6354_v57 = vcombine.low %v1165_v54, %v1166_v62  ;;  %v6462_v60 = vcombine.low %v2474_v7, %v2475_v36  ;;  %v712_v16 = vsel %vm10401_vm8, %v704_v13, %v706_v59  ;;  %v720_v5 = vsel %vm10401_vm8, 0, %v704_v13 }
 0x108   : > { %v8339_v53 = vrot.slane %v663_v21, %v7764_v37  ;;  %1340 = vst [vmem:[#allocation2 + $0x110] sm:$0x33] %v6366_v29  ;;  %2617 = vst [vmem:[#allocation2] sm:$0x33] %v6474_v2  ;;  %v764_v54 = vmul.bf16 %v8126_v30, %v720_v5  ;;  %v765_v17 = vmul.bf16 %v8129_v18, %v712_v16 }
 0x109   : > { %1180 = vst [vmem:[#allocation2 + $0x178] sm:$0x33] %v6354_v57  ;;  %v8344_v49 = vrot.slane %v2061_v9, %v7790_v55  ;;  %v8347_v43 = vrot.slane %v837_v41, %v7790_v55  ;;  %2489 = vst [vmem:[#allocation2 + $0xa8] sm:$0x33] %v6462_v60  ;;  %v8350_v27 = vrot.slane %v2203_v51, %v7756_v34 }
 0x10a   : > { %v8353_v21 = vrot.slane %v2210_v31, %v7756_v34  ;;  %v8355_v24 = vcombine.low %v2302_v6, %v2302_v6  ;;  %v8357_v23 = vcombine.high %v2302_v6, %v2302_v6  ;;  %v6323_v30 = vcombine.low %v764_v54, %v765_v17  ;;  %v870_v18 = vpop.permute.xlu1 %869  ;;  %v8359_v33 = vpop.permute.xlu0 %707  ;;  %v1885_v31 = vld [vmem:[%s10480_s17 + $0x20] sm:$0x11] }
 0x10b   : > { %v8362_v9 = vrot.slane %v670_v14, %v7764_v37  ;;  %v2068_v41 = vpack.i.b16 %v8327_v4, %v8327_v4  ;;  %v997_v51 = vpack.i.b16 %v8331_v1, %v8331_v1  ;;  %v926_v48 = vmul.bf16 %v10506_v8, %v8143_v44  ;;  %v6902_v32 = vld [vmem:[#allocation2 + $0x1a4] ss:$-264 sps:$4 sm:$0xff]   ;;  %v6907_v7 = vld [vmem:[#allocation2 + $0x1a0] ss:$-264 sps:$4 sm:$0xff]  }
 0x10c   : > { %v874_v10 = vsel %vm10405_vm3, %v8133_v47, %v870_v18  ;;  %v2237_v0 = vsel %vm10405_vm3, %v870_v18, 0  ;;  %v8378_v62 = vsel %vm10401_vm8, %v706_v59, %v8359_v33  ;;  %v778_v36 = vrot.slane %v6323_v30, 6  ;;  %2812 = vmatprep.subr.bf16.mxu0 %v6902_v32 }
 0x10d   : > { %v927_v14 = vmul.bf16 %v8159_v25, %v874_v10  ;;  %v2283_v4 = vmul.bf16 %v8174_v58, %v874_v10  ;;  %v2284_v29 = vmul.bf16 %v8229_v11, %v2237_v0  ;;  %v2153_v44 = vmul.bf16 %v8146_v12, %v712_v16  ;;  %2813 = vmatpush1.bf16.msra.mxu0 %v6907_v7 }
 0x10e   : > { %v2154_v47 = vmul.bf16 %v8235_v46, %v8378_v62  ;;  %v2331_v2 = vpack.i.b16 %v8355_v24, %v8355_v24  ;;  %v2338_v57 = vpack.i.b16 %v8357_v23, %v8357_v23  ;;  %782 = vst [vmem:[#allocation2 + $0xb0] sm:$0xcc] %v778_v36  ;;  %v1965_v13 = vpop.permute.xlu1 %1964  ;;  %v1030_v58 = vpop.permute.xlu0 %1029  ;;  %v6409_v11 = vcombine.low %v1885_v31, %v1885_v31  ;;  %v2107_v46 = vld [vmem:[%s10480_s17 + $0x28] sm:$0x22] }
 0x10f   : > { %v6336_v59 = vcombine.low %v926_v48, %v927_v14  ;;  %v6444_v25 = vcombine.low %v2283_v4, %v2284_v29  ;;  %v6322_v12 = vcombine.high %v8089_v22, %v8089_v22  ;;  %v1086_v1 = vmul.bf16 %v10507_v39, %v8202_v61  ;;  %v1802_v14 = vld [vmem:[%s10480_s17 + $0x10] sm:$0x88] }
 0x110   : > { %v6431_v6 = vcombine.low %v2153_v44, %v2154_v47  ;;  %v1034_v60 = vsel %vm1031_vm4, %v8189_v45, %v1030_v58  ;;  %v2365_v16 = vsel %vm1031_vm4, %v1030_v58, 0  ;;  %v6908_v22 = vld [vmem:[#allocation2 + $0xac] ss:$-168 sps:$4 sm:$0x3f]   ;;  %v6410_v48 = vcombine.high %v1885_v31, %v1885_v31 }
 0x111   : > { %v939_v5 = vrot.slane %v6336_v59, 6  ;;  %v2296_v54 = vrot.slane %v6444_v25, 6  ;;  %v1087_v17 = vmul.bf16 %v8251_v56, %v1034_v60  ;;  %v2411_v24 = vmul.bf16 %v8261_v40, %v1034_v60  ;;  %v6912_v8 = vld [vmem:[#allocation2 + $0xa8] ss:$-168 sps:$4 sm:$0x3f]   ;;  %6505 = vmatprep.subr.msk.bf16.mxu1 %vm2795_vm5, %v6908_v22 }
 0x112   : > { %v2167_v30 = vrot.slane %v6431_v6, 6  ;;  %v2412_v18 = vmul.bf16 %v8264_v63, %v2365_v16  ;;  %v6429_v10 = vcombine.low %v2107_v46, %v2107_v46  ;;  %v8403_v0 = vpop.permute.xlu1 %1968  ;;  %v1967_v45 = vpop.permute.xlu0 %1966  ;;  %v8407_v32 = vrot.slane %v2068_v41, %v7790_v55 }
 0x113   : > { %943 = vst [vmem:[#allocation2 + $0x48] sm:$0xcc] %v939_v5  ;;  %2300 = vst [vmem:[#allocation2 + $0x158] sm:$0xcc] %v2296_v54  ;;  %v6348_v61 = vcombine.low %v1086_v1, %v1087_v17  ;;  %v757_v56 = vshrl.u32 %v6322_v12, 16  ;;  %v6430_v40 = vcombine.high %v2107_v46, %v2107_v46  ;;  %v1973_v63 = vsel %vm10399_vm9, %v1965_v13, %v1967_v45 }
 0x114   : > { %2171 = vst [vmem:[#allocation2 + $0x138] sm:$0xcc] %v2167_v30  ;;  %v6456_v7 = vcombine.low %v2411_v24, %v2412_v18  ;;  %v1974_v31 = vsel %vm10399_vm9, %v1967_v45, %v8403_v0  ;;  %v2803_v36 = vsel %vm2795_vm5, %v6912_v8, 0  ;;  %v2025_v29 = vmul.bf16 %v8276_v15, %v1973_v63  ;;  %v10508_v45 = vld [vmem:[#allocation33_spill] sm:$0xff] }
 0x115   : > { %v1099_v4 = vrot.slane %v6348_v61, 6  ;;  %v2026_v41 = vmul.bf16 %v8294_v42, %v1974_v31  ;;  %2852 = vmatpush1.bf16.msra.mxu1 %v2803_v36  ;;  %v8419_v44 = vrot.slane %v997_v51, %v7756_v34  ;;  %v1917_v59 = vpack.i.b16 %v6409_v11, %v6409_v11 }
 0x116   : > { %v2424_v47 = vrot.slane %v6456_v7, 6  ;;  %v1924_v25 = vpack.i.b16 %v6410_v48, %v6410_v48  ;;  %v2138_v13 = vshrl.u32 %v6429_v10, 16  ;;  %v628_v12 = vpop.permute.xlu1 %627  ;;  %v626_v46 = vpop.permute.xlu0 %625  ;;  %v758_v39 = vpack.i.b16 %v757_v56, %v757_v56 }
 0x117   : > { %1103 = vst [vmem:[#allocation2 + $0x128] sm:$0xcc] %v1099_v4  ;;  %v6419_v58 = vcombine.low %v2025_v29, %v2026_v41  ;;  %v8421_v1 = vshrl.u32 %v6430_v40, 16  ;;  %v6403_v6 = vcombine.low %v1802_v14, %v1802_v14  ;;  %v634_v15 = vsel %vm10404_vm10, %v626_v46, %v628_v12 }
 0x118   : > { %2428 = vst [vmem:[#allocation2 + $0xe8] sm:$0xcc] %v2424_v47  ;;  %v643_v42 = vsel %vm10404_vm10, 0, %v626_v46  ;;  %v2336_v51 = vrot.slane %v2331_v2, %v7762_v35  ;;  %v6404_v60 = vcombine.high %v1802_v14, %v1802_v14  ;;  %v684_v5 = vmul.bf16 %v8339_v53, %v634_v15  ;;  %v1584_v46 = vld [vmem:[%s10480_s17 + $0x10] sm:$0x44] }
 0x119   : > { %v2039_v16 = vrot.slane %v6419_v58, 6  ;;  %v683_v11 = vmul.bf16 %v8279_v38, %v643_v42  ;;  %v2343_v54 = vrot.slane %v2338_v57, %v7762_v35  ;;  %v8433_v17 = vrot.slane %v1917_v59, %v7764_v37  ;;  %v1963_v57 = vld [vmem:[%s10480_s17 + $0x28] sm:$0x11] }
 0x11a   : > { %v8436_v24 = vrot.slane %v1924_v25, %v7764_v37  ;;  %v2139_v22 = vpack.i.b16 %v2138_v13, %v2138_v13  ;;  %v793_v30 = vpop.permute.xlu1 %792  ;;  %v8438_v18 = vpop.permute.xlu0 %629  ;;  %v8441_v38 = vrot.slane %v758_v39, %v7764_v37  ;;  %v2147_v53 = vpack.i.b16 %v8421_v1, %v8421_v1  ;;  %v10509_v25 = vld [vmem:[#allocation34_spill] sm:$0xff] }
 0x11b   : > { %2043 = vst [vmem:[#allocation2 + $0x180] sm:$0xcc] %v2039_v16  ;;  %v6317_v2 = vcombine.low %v683_v11, %v684_v5  ;;  %v1834_v23 = vshrl.u32 %v6403_v6, 16  ;;  %v797_v8 = vsel %vm10406_vm6, %v8237_v3, %v793_v30  ;;  %v2176_v48 = vsel %vm10406_vm6, %v793_v30, 0 }
 0x11c   : > { %v8453_v10 = vsel %vm10404_vm10, %v628_v12, %v8438_v18  ;;  %v1842_v61 = vshrl.u32 %v6404_v60, 16  ;;  %v845_v56 = vmul.bf16 %v10508_v45, %v8248_v20  ;;  %v846_v40 = vmul.bf16 %v8347_v43, %v797_v8 }
 0x11d   : > { %699 = vst [vmem:[#allocation2 + $0xb0] sm:$0x33] %v6317_v2  ;;  %v2218_v7 = vmul.bf16 %v8350_v27, %v797_v8  ;;  %v2219_v63 = vmul.bf16 %v8353_v21, %v2176_v48  ;;  %v2088_v31 = vmul.bf16 %v8344_v49, %v634_v15  ;;  %v2089_v3 = vmul.bf16 %v8407_v32, %v8453_v10  ;;  %v2046_v27 = vld [vmem:[%s10480_s17 + $0x28] sm:$0x22] }
 0x11e   : > { %v8464_v36 = vrot.slane %v2139_v22, %v7790_v55  ;;  %v6417_v14 = vcombine.low %v1963_v57, %v1963_v57  ;;  %v6330_v4 = vcombine.low %v845_v56, %v846_v40  ;;  %v1888_v41 = vpop.permute.xlu1 %1887  ;;  %v953_v20 = vpop.permute.xlu0 %952  ;;  %v6316_v43 = vcombine.high %v8286_v26, %v8286_v26 }
 0x11f   : > { %v6438_v29 = vcombine.low %v2218_v7, %v2219_v63  ;;  %v6418_v21 = vcombine.high %v1963_v57, %v1963_v57  ;;  %v6425_v49 = vcombine.low %v2088_v31, %v2089_v3  ;;  %v957_v32 = vsel %vm954_vm7, %v8273_v19, %v953_v20 }
 0x120   : > { %v2304_v47 = vsel %vm954_vm7, %v953_v20, 0  ;;  %v1835_v59 = vpack.i.b16 %v1834_v23, %v1834_v23  ;;  %v1005_v13 = vmul.bf16 %v10509_v25, %v8291_v52  ;;  %860 = vst [vmem:[#allocation2 + $0x48] sm:$0x33] %v6330_v4  ;;  %v1006_v58 = vmul.bf16 %v8419_v44, %v957_v32 }
 0x121   : > { %2233 = vst [vmem:[#allocation2 + $0x158] sm:$0x33] %v6438_v29  ;;  %v2346_v26 = vmul.bf16 %v2336_v51, %v957_v32  ;;  %v2347_v12 = vmul.bf16 %v2343_v54, %v2304_v47  ;;  %2104 = vst [vmem:[#allocation2 + $0x138] sm:$0x33] %v6425_v49  ;;  %v1843_v39 = vpack.i.b16 %v1842_v61, %v1842_v61  ;;  %v2010_v6 = vshrl.u32 %v6417_v14, 16 }
 0x122   : > { %v6423_v1 = vcombine.low %v2046_v27, %v2046_v27  ;;  %v6424_v19 = vcombine.high %v2046_v27, %v2046_v27  ;;  %v6342_v15 = vcombine.low %v1005_v13, %v1006_v58  ;;  %v8480_v60 = vpop.permute.xlu1 %1891  ;;  %v1890_v52 = vpop.permute.xlu0 %1889  ;;  %v677_v16 = vpack.i.b16 %v6316_v43, %v6316_v43 }
 0x123   : > { %v6450_v42 = vcombine.low %v2346_v26, %v2347_v12  ;;  %v2018_v11 = vshrl.u32 %v6418_v21, 16  ;;  %v1896_v44 = vsel %vm10400_vm11, %v1888_v41, %v1890_v52  ;;  %v1897_v51 = vsel %vm10400_vm11, %v1890_v52, %v8480_v60 }
 0x124   : > { %v6385_v5 = vcombine.low %v1584_v46, %v1584_v46  ;;  %v6386_v54 = vcombine.high %v1584_v46, %v1584_v46  ;;  %1020 = vst [vmem:[#allocation2 + $0x128] sm:$0x33] %v6342_v15  ;;  %v1944_v22 = vmul.bf16 %v8433_v17, %v1896_v44  ;;  %v1945_v2 = vmul.bf16 %v8436_v24, %v1897_v51  ;;  %v1725_v17 = vld [vmem:[%s10480_s17 + $0x10] sm:$0x88] }
 0x125   : > { %2361 = vst [vmem:[#allocation2 + $0xe8] sm:$0x33] %v6450_v42  ;;  %v2152_v30 = vrot.slane %v2147_v53, %v7790_v55  ;;  %v1840_v23 = vrot.slane %v1835_v59, %v7762_v35  ;;  %v2075_v57 = vpack.i.b16 %v6423_v1, %v6423_v1  ;;  %v2082_v8 = vpack.i.b16 %v6424_v19, %v6424_v19 }
 0x126   : > { %v2011_v48 = vpack.i.b16 %v2010_v6, %v2010_v6  ;;  %v6413_v61 = vcombine.low %v1944_v22, %v1945_v2  ;;  %v1805_v45 = vpop.permute.xlu1 %1804  ;;  %v710_v56 = vpop.permute.xlu0 %709  ;;  %v1848_v40 = vrot.slane %v1843_v39, %v7762_v35  ;;  %v8491_v7 = vrot.slane %v677_v16, %v7764_v37 }
 0x127   : > { %v2019_v63 = vpack.i.b16 %v2018_v11, %v2018_v11  ;;  %v714_v24 = vsel %vm10401_vm8, %v8359_v33, %v710_v56  ;;  %v2109_v53 = vsel %vm10401_vm8, %v710_v56, 0  ;;  %v1616_v31 = vpack.i.b16 %v6385_v5, %v6385_v5 }
 0x128   : > { %v1623_v3 = vpack.i.b16 %v6386_v54, %v6386_v54  ;;  %v766_v14 = vmul.bf16 %v8232_v50, %v8378_v62  ;;  %1960 = vst [vmem:[#allocation2 + $0x180] sm:$0x33] %v6413_v61  ;;  %v767_v4 = vmul.bf16 %v8441_v38, %v714_v24  ;;  %v2155_v29 = vmul.bf16 %v8464_v36, %v714_v24  ;;  %v1886_v62 = vld [vmem:[%s10480_s17 + $0x28] sm:$0x11]  ;;  %v1341_v38 = vld [vmem:[%s10480_s17 + $0x10] sm:$0x11] }
 0x129   : > { %v2156_v41 = vmul.bf16 %v2152_v30, %v2109_v53  ;;  %v2080_v20 = vrot.slane %v2075_v57, %v7790_v55  ;;  %v2087_v43 = vrot.slane %v2082_v8, %v7790_v55  ;;  %v2016_v27 = vrot.slane %v2011_v48, %v7764_v37  ;;  %v1501_v54 = vld [vmem:[%s10480_s17 + $0x10] sm:$0x22] }
 0x12a   : > { %v8506_v33 = vcombine.low %v1725_v17, %v1725_v17  ;;  %v6324_v21 = vcombine.low %v766_v14, %v767_v4  ;;  %v8508_v32 = vpop.permute.xlu1 %1808  ;;  %v1807_v47 = vpop.permute.xlu0 %1806  ;;  %v2024_v50 = vrot.slane %v2019_v63, %v7764_v37  ;;  %v1621_v58 = vrot.slane %v1616_v31, %v7756_v34 }
 0x12b   : > { %v6432_v49 = vcombine.low %v2155_v29, %v2156_v41  ;;  %v1813_v36 = vsel %vm1812_vm12, %v1805_v45, %v1807_v47  ;;  %v1814_v59 = vsel %vm1812_vm12, %v1807_v47, %v8508_v32  ;;  %v1628_v26 = vrot.slane %v1623_v3, %v7756_v34 }
 0x12c   : > { %v6934_v25 = vld [vmem:[#allocation2 + $0x15c] ss:$-112 sps:$4 sm:$0xff]   ;;  %v6938_v13 = vld [vmem:[#allocation2 + $0x158] ss:$-112 sps:$4 sm:$0xff]   ;;  %v779_v12 = vrot.slane %v6324_v21, 6  ;;  %v1865_v39 = vmul.bf16 %v1840_v23, %v1813_v36  ;;  %v1866_v1 = vmul.bf16 %v1848_v40, %v1814_v59  ;;  %v1757_v19 = vpack.i.b16 %v8506_v33, %v8506_v33 }
 0x12d   : > { %v2168_v46 = vrot.slane %v6432_v49, 6  ;;  %2853 = vmatprep.subr.bf16.mxu1 %v6934_v25  ;;  %v6411_v6 = vcombine.low %v1886_v62, %v1886_v62  ;;  %v6412_v15 = vcombine.high %v1886_v62, %v1886_v62  ;;  %v6367_v42 = vcombine.low %v1341_v38, %v1341_v38 }
 0x12e   : > { %v685_v52 = vmul.bf16 %v8362_v9, %v8453_v10  ;;  %783 = vst [vmem:[#allocation2 + $0xd0] sm:$0xcc] %v779_v12  ;;  %v6407_v16 = vcombine.low %v1865_v39, %v1866_v1  ;;  %v632_v11 = vpop.permute.xlu1 %631  ;;  %v1971_v44 = vpop.permute.xlu0 %1970  ;;  %2854 = vmatpush1.bf16.msra.mxu1 %v6938_v13  ;;  %v6398_v51 = vcombine.high %v1725_v17, %v1725_v17  ;;  %vm1511_vm5 = vcmask 56320  }
 0x12f   : > { %2172 = vst [vmem:[#allocation2 + $0x78] sm:$0xcc] %v2168_v46  ;;  %v6368_v5 = vcombine.high %v1341_v38, %v1341_v38  ;;  %v636_v22 = vsel %vm10404_vm10, %v8438_v18, %v632_v11  ;;  %v2048_v2 = vsel %vm10404_vm10, %v632_v11, 0  ;;  %v1975_v9 = vsel %vm10399_vm9, %v8403_v0, %v1971_v44  ;;  %v6939_v30 = vld [vmem:[#allocation2 + $0x184] ss:$-72 sps:$4 sm:$0xff]  }
 0x130   : > { %v1981_v10 = vsel %vm10399_vm9, %v1971_v44, 0  ;;  %v1879_v23 = vrot.slane %v6407_v16, 6  ;;  %v686_v57 = vmul.bf16 %v8491_v7, %v636_v22  ;;  %v2090_v8 = vmul.bf16 %v2080_v20, %v636_v22  ;;  %v6943_v61 = vld [vmem:[#allocation2 + $0x180] ss:$-72 sps:$4 sm:$0xff]   ;;  %2814 = vmatprep.subr.bf16.mxu0 %v6939_v30 }
 0x131   : > { %v2091_v48 = vmul.bf16 %v2087_v43, %v2048_v2  ;;  %v2027_v45 = vmul.bf16 %v2016_v27, %v1975_v9  ;;  %v2028_v56 = vmul.bf16 %v2024_v50, %v1981_v10  ;;  %v1931_v40 = vpack.i.b16 %v6411_v6, %v6411_v6  ;;  %2815 = vmatpush1.bf16.msra.mxu0 %v6943_v61  ;;  %v1803_v7 = vld [vmem:[%s10480_s17 + $0x18] sm:$0x88] }
 0x132   : > { %v1373_v63 = vshrl.u32 %v6367_v42, 16  ;;  %1883 = vst [vmem:[#allocation2 + $0x58] sm:$0xcc] %v1879_v23  ;;  %v6318_v18 = vcombine.low %v685_v52, %v686_v57  ;;  %v8536_v24 = vpop.permute.xlu1 %1588  ;;  %v1587_v0 = vpop.permute.xlu0 %1586  ;;  %v1381_v53 = vshrl.u32 %v6368_v5, 16  ;;  %v6379_v31 = vcombine.low %v1501_v54, %v1501_v54 }
 0x133   : > { %v6426_v17 = vcombine.low %v2090_v8, %v2091_v48  ;;  %v6420_v3 = vcombine.low %v2027_v45, %v2028_v56  ;;  %v1595_v14 = vsel %vm1594_vm13, %v1587_v0, %v8536_v24  ;;  %v1603_v4 = vsel %vm1594_vm13, 0, %v1587_v0 }
 0x134   : > { %v6380_v29 = vcombine.high %v1501_v54, %v1501_v54  ;;  %700 = vst [vmem:[#allocation2 + $0xd0] sm:$0x33] %v6318_v18  ;;  %v1643_v41 = vmul.bf16 %v1621_v58, %v1603_v4  ;;  %v1644_v20 = vmul.bf16 %v1628_v26, %v1595_v14  ;;  %v1938_v43 = vpack.i.b16 %v6412_v15, %v6412_v15  ;;  %v1342_v14 = vld [vmem:[%s10480_s17 + $0x18] sm:$0x11] }
 0x135   : > { %2105 = vst [vmem:[#allocation2 + $0x78] sm:$0x33] %v6426_v17  ;;  %v1764_v27 = vpack.i.b16 %v6398_v51, %v6398_v51  ;;  %v2040_v33 = vrot.slane %v6420_v3, 6  ;;  %v1374_v21 = vpack.i.b16 %v1373_v63, %v1373_v63  ;;  %v6405_v49 = vcombine.low %v1803_v7, %v1803_v7  ;;  %v1726_v63 = vld [vmem:[%s10480_s17 + $0x18] sm:$0x88] }
 0x136   : > { %v6389_v47 = vcombine.low %v1643_v41, %v1644_v20  ;;  %v1730_v50 = vpop.permute.xlu1 %1729  ;;  %v1728_v62 = vpop.permute.xlu0 %1727  ;;  %v1382_v38 = vpack.i.b16 %v1381_v53, %v1381_v53  ;;  %v1533_v36 = vshrl.u32 %v6379_v31, 16  ;;  %v6406_v59 = vcombine.high %v1803_v7, %v1803_v7 }
 0x137   : > { %2044 = vst [vmem:[#allocation2 + $0x130] sm:$0xcc] %v2040_v33  ;;  %v1541_v25 = vshrl.u32 %v6380_v29, 16  ;;  %v1762_v13 = vrot.slane %v1757_v19, %v7762_v35  ;;  %v1936_v58 = vrot.slane %v1931_v40, %v7764_v37  ;;  %v1943_v26 = vrot.slane %v1938_v43, %v7764_v37  ;;  %v1424_v19 = vld [vmem:[%s10480_s17 + $0x10] sm:$0x22] }
 0x138   : > { %1659 = vst [vmem:[#allocation2 + $0x148] sm:$0x33] %v6389_v47  ;;  %v1769_v12 = vrot.slane %v1764_v27, %v7762_v35  ;;  %v1736_v46 = vsel %vm1735_vm14, %v1728_v62, %v1730_v50  ;;  %v1850_v39 = vshrl.u32 %v6405_v49, 16  ;;  %v1379_v15 = vrot.slane %v1374_v21, %v7764_v37 }
 0x139   : > { %v1387_v42 = vrot.slane %v1382_v38, %v7764_v37  ;;  %v1534_v52 = vpack.i.b16 %v1533_v36, %v1533_v36  ;;  %v1858_v16 = vshrl.u32 %v6406_v59, 16  ;;  %v1542_v5 = vpack.i.b16 %v1541_v25, %v1541_v25 }
 0x13a   : > { %v1894_v1 = vpop.permute.xlu1 %1893  ;;  %v8549_v6 = vpop.permute.xlu0 %1731  ;;  %v1784_v54 = vmul.bf16 %v1762_v13, %v1736_v46  ;;  %v6373_v10 = vcombine.low %v1424_v19, %v1424_v19  ;;  %v1851_v30 = vpack.i.b16 %v1850_v39, %v1850_v39  ;;  %v6374_v45 = vcombine.high %v1424_v19, %v1424_v19 }
 0x13b   : > { %v1898_v11 = vsel %vm10400_vm11, %v8480_v60, %v1894_v1  ;;  %v1904_v44 = vsel %vm10400_vm11, %v1894_v1, 0  ;;  %v1737_v51 = vsel %vm1735_vm14, %v1730_v50, %v8549_v6  ;;  %v1859_v61 = vpack.i.b16 %v1858_v16, %v1858_v16  ;;  %v1585_v60 = vld [vmem:[%s10480_s17 + $0x18] sm:$0x44]  ;;  %v1502_v1 = vld [vmem:[%s10480_s17 + $0x18] sm:$0x22] }
 0x13c   : > { %v1946_v22 = vmul.bf16 %v1936_v58, %v1898_v11  ;;  %v1947_v2 = vmul.bf16 %v1943_v26, %v1904_v44  ;;  %v1785_v9 = vmul.bf16 %v1769_v12, %v1737_v51  ;;  %v1539_v0 = vrot.slane %v1534_v52, %v7790_v55 }
 0x13d   : > { %v1547_v53 = vrot.slane %v1542_v5, %v7790_v55  ;;  %v1456_v31 = vpack.i.b16 %v6373_v10, %v6373_v10  ;;  %v1856_v7 = vrot.slane %v1851_v30, %v7762_v35  ;;  %v6387_v3 = vcombine.low %v1585_v60, %v1585_v60 }
 0x13e   : > { %v6414_v23 = vcombine.low %v1946_v22, %v1947_v2  ;;  %v6401_v57 = vcombine.low %v1784_v54, %v1785_v9  ;;  %v8561_v8 = vpop.permute.xlu1 %1345  ;;  %v1344_v48 = vpop.permute.xlu0 %1343  ;;  %v1864_v20 = vrot.slane %v1859_v61, %v7762_v35  ;;  %v1463_v43 = vpack.i.b16 %v6374_v45, %v6374_v45 }
 0x13f   : > { %v1352_v56 = vsel %vm1351_vm15, %v1344_v48, %v8561_v8  ;;  %v1360_v40 = vsel %vm1351_vm15, 0, %v1344_v48  ;;  %v6399_v27 = vcombine.low %v1726_v63, %v1726_v63  ;;  %v6400_v49 = vcombine.high %v1726_v63, %v1726_v63  ;;  %v1425_v63 = vld [vmem:[%s10480_s17 + $0x18] sm:$0x22] }
 0x140   : > { %1961 = vst [vmem:[#allocation2 + $0x130] sm:$0x33] %v6414_v23  ;;  %1800 = vst [vmem:[#allocation2 + $0x58] sm:$0x33] %v6401_v57  ;;  %v1404_v18 = vmul.bf16 %v1379_v15, %v1360_v40  ;;  %v1405_v17 = vmul.bf16 %v1387_v42, %v1352_v56  ;;  %v6388_v47 = vcombine.high %v1585_v60, %v1585_v60  ;;  %vm1434_vm9 = vcmask 64512  }
 0x141   : > { %v6369_v36 = vcombine.low %v1342_v14, %v1342_v14  ;;  %v1461_v59 = vrot.slane %v1456_v31, %v7790_v55  ;;  %v6370_v25 = vcombine.high %v1342_v14, %v1342_v14  ;;  %v1630_v12 = vpack.i.b16 %v6387_v3, %v6387_v3 }
 0x142   : > { %v6371_v4 = vcombine.low %v1404_v18, %v1405_v17  ;;  %v8578_v29 = vpop.permute.xlu1 %1505  ;;  %v1504_v41 = vpop.permute.xlu0 %1503  ;;  %v1468_v46 = vrot.slane %v1463_v43, %v7790_v55  ;;  %v1771_v39 = vpack.i.b16 %v6399_v27, %v6399_v27  ;;  %v1778_v19 = vpack.i.b16 %v6400_v49, %v6400_v49 }
 0x143   : > { %v1512_v33 = vsel %vm1511_vm5, %v1504_v41, %v8578_v29  ;;  %v1520_v21 = vsel %vm1511_vm5, 0, %v1504_v41  ;;  %v1637_v16 = vpack.i.b16 %v6388_v47, %v6388_v47  ;;  %v1389_v22 = vshrl.u32 %v6369_v36, 16 }
 0x144   : > { %v1418_v50 = vrot.slane %v6371_v4, 6  ;;  %v1564_v62 = vmul.bf16 %v1539_v0, %v1520_v21  ;;  %v1565_v38 = vmul.bf16 %v1547_v53, %v1512_v33  ;;  %v1397_v10 = vshrl.u32 %v6370_v25, 16 }
 0x145   : > { %v6381_v30 = vcombine.low %v1502_v1, %v1502_v1  ;;  %v6382_v23 = vcombine.high %v1502_v1, %v1502_v1  ;;  %v1635_v57 = vrot.slane %v1630_v12, %v7756_v34  ;;  %v1776_v60 = vrot.slane %v1771_v39, %v7762_v35 }
 0x146   : > { %1422 = vst [vmem:[#allocation2 + $0x108] sm:$0xcc] %v1418_v50  ;;  %v6383_v13 = vcombine.low %v1564_v62, %v1565_v38  ;;  %v1427_v58 = vpop.permute.xlu1 %1426  ;;  %v1811_v26 = vpop.permute.xlu0 %1810  ;;  %v1783_v56 = vrot.slane %v1778_v19, %v7762_v35  ;;  %v1642_v40 = vrot.slane %v1637_v16, %v7756_v34  ;;  %v1390_v53 = vpack.i.b16 %v1389_v22, %v1389_v22 }
 0x147   : > { %v1815_v15 = vsel %vm1812_vm12, %v8508_v32, %v1811_v26  ;;  %v1821_v42 = vsel %vm1812_vm12, %v1811_v26, 0  ;;  %v6956_v52 = vld [vmem:[#allocation2 + $0x134] ss:$-184 sps:$4 sm:$0xff]   ;;  %v6963_v54 = vld [vmem:[#allocation2 + $0x148] ss:$-240 sps:$4 sm:$0xff]   ;;  %v1443_v2 = vsel %vm1434_vm9, 0, %v1427_v58  ;;  %v6375_v43 = vcombine.low %v1425_v63, %v1425_v63 }
 0x148   : > { %v1578_v11 = vrot.slane %v6383_v13, 6  ;;  %v1867_v44 = vmul.bf16 %v1856_v7, %v1815_v15  ;;  %v1868_v51 = vmul.bf16 %v1864_v20, %v1821_v42  ;;  %v6961_v5 = vld [vmem:[#allocation2 + $0x14c] ss:$-240 sps:$4 sm:$0xff]   ;;  %2855 = vmatprep.subr.bf16.mxu1 %v6956_v52  ;;  %v6964_v9 = vld [vmem:[#allocation2 + $0x130] ss:$-184 sps:$4 sm:$0xff]   ;;  %v1483_v18 = vmul.bf16 %v1461_v59, %v1443_v2 }
 0x149   : > { %2816 = vmatprep.subr.bf16.mxu0 %v6961_v5  ;;  %2856 = vmatpush1.bf16.msra.mxu1 %v6964_v9  ;;  %v1398_v7 = vpack.i.b16 %v1397_v10, %v1397_v10  ;;  %v1549_v3 = vshrl.u32 %v6381_v30, 16  ;;  %v1557_v14 = vshrl.u32 %v6382_v23, 16  ;;  %v6376_v49 = vcombine.high %v1425_v63, %v1425_v63  ;;  %v2625_v10 = vld [vmem:[#allocation2 + $0x40] sm:$0xff] }
 0x14a   : > { %1582 = vst [vmem:[#allocation2 + $0x90] sm:$0xcc] %v1578_v11  ;;  %v6408_v32 = vcombine.low %v1867_v44, %v1868_v51  ;;  %v1591_v48 = vpop.permute.xlu1 %1590  ;;  %v8594_v61 = vpop.permute.xlu0 %1428  ;;  %2817 = vmatpush1.bf16.msra.mxu0 %v6963_v54  ;;  %v1395_v38 = vrot.slane %v1390_v53, %v7764_v37  ;;  %v1470_v39 = vpack.i.b16 %v6375_v43, %v6375_v43  ;;  %v2623_v11 = vld [vmem:[#allocation2 + $0x160] sm:$0xff]  ;;  %vm2791_vm11 = vcmask 883712   ;;  %v6985_v43 = vld [vmem:[#allocation2 + $0x12c] ss:$80 sps:$4 sm:$0xff]  }
 0x14b   : > { %v1435_v45 = vsel %vm1434_vm9, %v1427_v58, %v8594_v61  ;;  %v1596_v31 = vsel %vm1594_vm13, %v8536_v24, %v1591_v48  ;;  %v1403_v36 = vrot.slane %v1398_v7, %v7764_v37  ;;  %v1550_v59 = vpack.i.b16 %v1549_v3, %v1549_v3 }
 0x14c   : > { %v1880_v17 = vrot.slane %v6408_v32, 6  ;;  %v1484_v0 = vmul.bf16 %v1468_v46, %v1435_v45  ;;  %v1645_v47 = vmul.bf16 %v1635_v57, %v1596_v31  ;;  %v1558_v25 = vpack.i.b16 %v1557_v14, %v1557_v14 }
 0x14d   : > { %v1477_v1 = vpack.i.b16 %v6376_v49, %v6376_v49  ;;  %v1555_v52 = vrot.slane %v1550_v59, %v7790_v55  ;;  %v1475_v2 = vrot.slane %v1470_v39, %v7790_v55  ;;  %v6480_v57 = vcombine.high %v2623_v11, %v2625_v10 }
 0x14e   : > { %1884 = vst [vmem:[#allocation2 + $0xd8] sm:$0xcc] %v1880_v17  ;;  %v6377_v4 = vcombine.low %v1483_v18, %v1484_v0  ;;  %v1734_v41 = vpop.permute.xlu1 %1733  ;;  %v1593_v20 = vpop.permute.xlu0 %1592  ;;  %v1563_v19 = vrot.slane %v1558_v25, %v7790_v55  ;;  %v6479_v18 = vcombine.low %v2623_v11, %v2625_v10  ;;  %v2621_v0 = vld [vmem:[#allocation2 + $0x10] sm:$0xff]  ;;  %vm2890_vm8 = vcmask 1043456   ;;  %v2649_v10 = vld [vmem:[%s10348_s7] sm:$0xf] }
 0x14f   : > { %v1738_v27 = vsel %vm1735_vm14, %v8549_v6, %v1734_v41  ;;  %v1744_v33 = vsel %vm1735_vm14, %v1734_v41, 0  ;;  %v1597_v21 = vsel %vm1594_vm13, %v1591_v48, %v1593_v20  ;;  %v1482_v9 = vrot.slane %v1477_v1, %v7790_v55  ;;  %v2618_v41 = vld [vmem:[#allocation6] sm:$0x3] }
 0x150   : > { %1499 = vst [vmem:[#allocation2 + $0x90] sm:$0x33] %v6377_v4  ;;  %v1786_v50 = vmul.bf16 %v1776_v60, %v1738_v27  ;;  %v1787_v24 = vmul.bf16 %v1783_v56, %v1744_v33  ;;  %v1646_v62 = vmul.bf16 %v1642_v40, %v1597_v21  ;;  %v2619_v60 = vld [vmem:[#allocation2 + $0xb0] sm:$0xff]  ;;  %v6987_v27 = vld [vmem:[#allocation2 + $0x128] ss:$80 sps:$4 sm:$0xff]  }
 0x151   : > { %v6476_v3 = vcombine.high %v2619_v60, %v2621_v0  ;;  %v6475_v4 = vcombine.low %v2619_v60, %v2621_v0  ;;  %v6988_v33 = vld [vmem:[#allocation2 + $0xd4] ss:$-136 sps:$4 sm:$0xff]   ;;  %v6990_v21 = vld [vmem:[#allocation2 + $0xd0] ss:$-136 sps:$4 sm:$0xff]  }
 0x152   : > { %v6402_v13 = vcombine.low %v1786_v50, %v1787_v24  ;;  %v6390_v58 = vcombine.low %v1645_v47, %v1646_v62  ;;  %v1350_v26 = vpop.permute.xlu1 %1349  ;;  %v1348_v6 = vpop.permute.xlu0 %1347 }
 0x153   : > { %v1353_v12 = vsel %vm1351_vm15, %v8561_v8, %v1348_v6  ;;  %v1354_v46 = vsel %vm1351_vm15, %v1348_v6, %v1350_v26 }
 0x154   : > { %1801 = vst [vmem:[#allocation2 + $0xd8] sm:$0x33] %v6402_v13  ;;  %1660 = vst [vmem:[#allocation2 + $0x100] sm:$0x33] %v6390_v58  ;;  %v1406_v15 = vmul.bf16 %v1395_v38, %v1353_v12  ;;  %v1407_v42 = vmul.bf16 %v1403_v36, %v1354_v46 }
 0x156   : > { %v1510_v16 = vpop.permute.xlu1 %1509  ;;  %v6372_v44 = vcombine.low %v1406_v15, %v1407_v42  ;;  %v1508_v51 = vpop.permute.xlu0 %1507 }
 0x157   : > { %v6974_v5 = vld [vmem:[#allocation2 + $0x10c] ss:$-120 sps:$4 sm:$0xff]   ;;  %v6976_v54 = vld [vmem:[#allocation2 + $0x108] ss:$-120 sps:$4 sm:$0xff]   ;;  %v1513_v22 = vsel %vm1511_vm5, %v8578_v29, %v1508_v51  ;;  %v1514_v8 = vsel %vm1511_vm5, %v1508_v51, %v1510_v16 }
 0x158   : > { %v1419_v30 = vrot.slane %v6372_v44, 6  ;;  %v1566_v23 = vmul.bf16 %v1555_v52, %v1513_v22  ;;  %v1567_v32 = vmul.bf16 %v1563_v19, %v1514_v8  ;;  %2818 = vmatprep.subr.bf16.mxu0 %v6974_v5 }
 0x159   : > { %2819 = vmatpush1.bf16.msra.mxu0 %v6976_v54 }
 0x15a   : > { %v1433_v48 = vpop.permute.xlu1 %1432  ;;  %1423 = vst [vmem:[#allocation2 + $0x110] sm:$0xcc] %v1419_v30  ;;  %v6384_v45 = vcombine.low %v1566_v23, %v1567_v32  ;;  %v1431_v56 = vpop.permute.xlu0 %1430  ;;  %2820 = vmatprep.subr.bf16.mxu0 %v6480_v57 }
 0x15b   : > { %v6979_v29 = vld [vmem:[#allocation2 + $0x104] ss:$-40 sps:$4 sm:$0xff]   ;;  %v1436_v40 = vsel %vm1434_vm9, %v8594_v61, %v1431_v56  ;;  %v1437_v63 = vsel %vm1434_vm9, %v1431_v56, %v1433_v48  ;;  %v6981_v17 = vld [vmem:[#allocation2 + $0x100] ss:$-40 sps:$4 sm:$0xff]  }
 0x15c   : > { %v1579_v53 = vrot.slane %v6384_v45, 6  ;;  %v1485_v31 = vmul.bf16 %v1475_v2, %v1436_v40  ;;  %v1486_v7 = vmul.bf16 %v1482_v9, %v1437_v63  ;;  %2857 = vmatprep.subr.bf16.mxu1 %v6979_v29  ;;  %v2648_v29 = vld [vmem:[%s10510_s6] sm:$0xf] }
 0x15d   : > { %2821 = vmatpush1.bf16.msra.mxu0 %v6479_v18  ;;  %2858 = vmatpush1.bf16.msra.mxu1 %v6981_v17  ;;  %v3974_v18 = vld [vmem:[%s10480_s17 + $0x10] sm:$0x44]  ;;  %v3975_v17 = vld [vmem:[%s10480_s17 + $0x18] sm:$0x44] }
 0x15e   : > { %1583 = vst [vmem:[#allocation2 + $0x118] sm:$0xcc] %v1579_v53  ;;  %v6378_v14 = vcombine.low %v1485_v31, %v1486_v7  ;;  %2822 = vmatprep.subr.bf16.mxu0 %v6476_v3  ;;  %v6585_v0 = vcombine.low %v3974_v18, %v3974_v18  ;;  %v6586_v53 = vcombine.high %v3974_v18, %v3974_v18 }
 0x160   : > { %1500 = vst [vmem:[#allocation2 + $0x118] sm:$0x33] %v6378_v14 }
 0x161   : > { %2823 = vmatpush1.bf16.msra.mxu0 %v6475_v4 }
 0x164   : > { %6504 = vmatmul.mubr.msk.bf16.vlgmr.msra.gmra.mxu0 %vm2791_vm11, %v2618_v41 }
 0x167   : > { %v6982_v61 = vld [vmem:[#allocation2 + $0x114] ss:$8 sps:$4 sm:$0xff]   ;;  %v6984_v20 = vld [vmem:[#allocation2 + $0x110] ss:$8 sps:$4 sm:$0xff]  }
 0x168   : > { %2859 = vmatprep.subr.bf16.mxu1 %v6982_v61  ;;  %v6588_v61 = vcombine.high %v3975_v17, %v3975_v17 }
 0x169   : > { %2860 = vmatpush1.bf16.msra.mxu1 %v6984_v20 }
 0x16a   : > { %2861 = vmatprep.subr.bf16.mxu1 %v6985_v43 }
 0x16d   : > { %2862 = vmatpush1.bf16.msra.mxu1 %v6987_v27 }
 0x16e   : > { %2863 = vmatprep.subr.bf16.mxu1 %v6988_v33  ;;  %v2653_v62 = vpop.permute.xlu0 %2652 }
 0x171   : > { %2864 = vmatpush1.bf16.msra.mxu1 %v6990_v21 }
 0x174   : > { %6506 = vmatmul.mubr.msk.bf16.vlgmr.msra.gmra.mxu1 %vm2791_vm11, %v2618_v41  ;;  %v6587_v41 = vcombine.low %v3975_v17, %v3975_v17 }
 0x224   : > { %v2842_v49 = vpop.f32.mrf.mxu0 }
 0x225   : > { %v2843_v38 = vadd.f32 %v2842_v49, %v2653_v62  ;;  %v3987_v49 = vshrl.u32 %v6585_v0, 16  ;;  %v10511_v0 = vld [vmem:[#allocation25_spill] sm:$0xff] }
 0x226   : > { %v2844_v47 = vpop.f32.mrf.mxu0 }
 0x227   : > { %v2845_v36 = vadd.f32 %v2844_v47, %v2653_v62  ;;  %v2901_v59 = vmul.f32 %v2843_v38, %v2843_v38  ;;  %v2891_v13 = vsel %vm2890_vm8, %v2843_v38, 0.0  ;;  %v3995_v47 = vshrl.u32 %v6586_v53, 16 }
 0x228   : > { %v2846_v50 = vpop.f32.mrf.mxu0 }
 0x229   : > { %v2902_v25 = vmul.f32 %v2845_v36, %v2845_v36  ;;  %v2892_v58 = vsel %vm2890_vm8, %v2845_v36, 0.0  ;;  %v2905_v12 = vsel %vm2890_vm8, %v2901_v59, 0.0 }
 0x22a   : > { %v2847_v24 = vpop.f32.mrf.mxu0  ;;  %v2893_v1 = vadd.f32 %v2892_v58, %v2891_v13  ;;  %v4003_v58 = vshrl.u32 %v6587_v41, 16  ;;  %v4036_v41 = vld [vmem:[%s10480_s17 + $0x10] sm:$0x88] }
 0x22b   : > { %v2906_v46 = vsel %vm2890_vm8, %v2902_v25, 0.0  ;;  %v8651_v25 = vld [vmem:[%s7623_s14 + $0x8] sm:$0xff] }
 0x22c   : > { %v2907_v11 = vadd.f32 %v2906_v46, %v2905_v12  ;;  %v2956_v13 = vcombine.low %v8651_v25, %v8651_v25 }
 0x234   : > { %v2883_v26 = vpop.f32.mrf.mxu1 }
 0x235   : > { %v2884_v6 = vadd.f32 %v2883_v26, %v2653_v62  ;;  %v4011_v26 = vshrl.u32 %v6588_v61, 16  ;;  %v4111_v61 = vld [vmem:[%s10480_s17 + $0x10] sm:$0x88] }
 0x236   : > { %v2885_v39 = vpop.f32.mrf.mxu1 }
 0x237   : > { %v2903_v15 = vmul.f32 %v2884_v6, %v2884_v6  ;;  %v2886_v42 = vadd.f32 %v2885_v39, %v2653_v62  ;;  %v2894_v52 = vsel %vm2890_vm8, %v2884_v6, 0.0 }
 0x238   : > { %v2887_v19 = vpop.f32.mrf.mxu1  ;;  %v2895_v16 = vadd.f32 %v2894_v52, %v2893_v1  ;;  %v3988_v1 = vpack.i.b16 %v3987_v49, %v3987_v49  ;;  %v3820_v49 = vld [vmem:[%s10480_s17 + $0x10] sm:$0x22] }
 0x239   : > { %v2896_v44 = vsel %vm2890_vm8, %v2886_v42, 0.0  ;;  %v2904_v51 = vmul.f32 %v2886_v42, %v2886_v42  ;;  %v2908_v5 = vsel %vm2890_vm8, %v2903_v15, 0.0  ;;  %v3996_v15 = vpack.i.b16 %v3995_v47, %v3995_v47  ;;  %v4112_v47 = vld [vmem:[%s10480_s17 + $0x18] sm:$0x88] }
 0x23a   : > { %v2888_v54 = vpop.f32.mrf.mxu1  ;;  %v2897_v22 = vadd.f32 %v2896_v44, %v2895_v16  ;;  %v2909_v8 = vadd.f32 %v2908_v5, %v2907_v11  ;;  %v4004_v16 = vpack.i.b16 %v4003_v58, %v4003_v58 }
 0x23b   : > { %v2910_v2 = vsel %vm2890_vm8, %v2904_v51, 0.0 }
 0x23c   : > { %2898 = vadd.xlane.f32.xlu1 %v2897_v22  ;;  %v2911_v9 = vadd.f32 %v2910_v2, %v2909_v8  ;;  %v4012_v2 = vpack.i.b16 %v4011_v26, %v4011_v26 }
 0x23e   : > { %2912 = vadd.xlane.f32.xlu0 %v2911_v9  ;;  %v3993_v9 = vrot.slane %v3988_v1, %v7756_v34  ;;  %v8829_v1 = vld [vmem:[%s10480_s17 + $0x10] sm:$0x11] }
 0x254   : > { %2936 = vperm.xlu0 %6843, %v2649_v10  }
 0x2c5   : > { %v2899_v30 = vpop.xlane.xlu1 %2898 }
 0x2c6   : > { %v2900_v23 = vmul.f32 0.001953125, %v2899_v30  ;;  %v4001_v30 = vrot.slane %v3996_v15, %v7756_v34 }
 0x2c7   : > { %v2913_v32 = vpop.xlane.xlu0 %2912 }
 0x2c8   : > { %v2914_v57 = vmul.f32 0.001953125, %v2913_v32  ;;  %v2915_v48 = vmul.f32 %v2900_v23, %v2900_v23  ;;  %v2921_v31 = vsub.f32 %v2843_v38, %v2900_v23  ;;  %v2922_v7 = vsub.f32 %v2845_v36, %v2900_v23  ;;  %v8646_v36 = vld [vmem:[%s7623_s14] sm:$0xff]  ;;  %s8668_s14 = scalar_lea.vmem [#allocation8], %s10407_s1  ;;  %s10520_s1 = smov 73  }
 0x2c9   : > { %v2923_v3 = vsub.f32 %v2884_v6, %v2900_v23  ;;  %v2924_v14 = vsub.f32 %v2886_v42, %v2900_v23  ;;  %v2955_v59 = vcombine.low %v8646_v36, %v8646_v36  ;;  %v4009_v23 = vrot.slane %v4004_v16, %v7756_v34 }
 0x2ca   : > { %v2916_v60 = vsub.f32 %v2914_v57, %v2915_v48  ;;  %v4017_v57 = vrot.slane %v4012_v2, %v7756_v34  ;;  %v6574_v2 = vcombine.high %v3820_v49, %v3820_v49 }
 0x2cc   : > { %v2917_v45 = vmax.f32 %v2916_v60, 0.0 }
 0x2ce   : > { %v2918_v56 = vadd.f32 1e-05, %v2917_v45 }
 0x2cf   : > { %v2937_v21 = vpop.permute.xlu0 %2936 }
 0x2d0   : > { %7107 = vrsqrt.f32 %v2918_v56 }
 0x2dd   : > { %v7108_v40 = vpop.eup %7107 }
 0x2de   : > { %v2920_v63 = vmul.f32 %v7108_v40, %v2648_v29 }
 0x2e0   : > { %2927 = vperm.xlu1 %6844, %v2920_v63  }
 0x35b   : > { %v2928_v4 = vpop.permute.xlu1 %2927 }
 0x35c   : > { %v2930_v20 = vmul.f32 %v2928_v4, %v2921_v31  ;;  %v2931_v43 = vmul.f32 %v2928_v4, %v2922_v7  ;;  %v2932_v27 = vmul.f32 %v2928_v4, %v2923_v3  ;;  %v2933_v33 = vmul.f32 %v2928_v4, %v2924_v14  ;;  %v10512_v31 = vld [vmem:[#allocation26_spill] sm:$0xff] }
 0x35e   : > { %v2939_v50 = vadd.f32 %v2937_v21, %v2930_v20  ;;  %v2940_v24 = vadd.f32 %v2937_v21, %v2931_v43  ;;  %v2941_v62 = vadd.f32 %v2937_v21, %v2932_v27  ;;  %v2942_v38 = vadd.f32 %v2937_v21, %v2933_v33  ;;  %v3899_v43 = vld [vmem:[%s10480_s17 + $0x10] sm:$0x44]  ;;  %v4037_v21 = vld [vmem:[%s10480_s17 + $0x18] sm:$0x88] }
 0x35f   : > { %v6591_v20 = vcombine.low %v4036_v41, %v4036_v41  ;;  %v6597_v27 = vcombine.low %v4111_v61, %v4111_v61  ;;  %v6592_v33 = vcombine.high %v4036_v41, %v4036_v41  ;;  %v6594_v26 = vcombine.high %v4037_v21, %v4037_v21 }
 0x360   : > { %vm2943_vm11 = vcmp.ge.f32.partialorder %v2939_v50, 0.0  ;;  %vm2944_vm10 = vcmp.ge.f32.partialorder %v2940_v24, 0.0  ;;  %vm2945_vm3 = vcmp.ge.f32.partialorder %v2941_v62, 0.0  ;;  %vm2946_vm6 = vcmp.ge.f32.partialorder %v2942_v38, 0.0 }
 0x361   : > { %v2947_v6 = vmul.f32 0.01, %v2939_v50  ;;  %v2948_v12 = vmul.f32 0.01, %v2940_v24  ;;  %v2949_v46 = vmul.f32 0.01, %v2941_v62  ;;  %v4073_v58 = vpack.i.b16 %v6592_v33, %v6592_v33 }
 0x362   : > { %v2950_v39 = vmul.f32 0.01, %v2942_v38  ;;  %v3746_v33 = vld [vmem:[%s10480_s17 + $0x18] sm:$0x22] }
 0x363   : > { %v2951_v42 = vsel %vm2943_vm11, %v2939_v50, %v2947_v6  ;;  %v2952_v52 = vsel %vm2944_vm10, %v2940_v24, %v2948_v12  ;;  %v2953_v19 = vsel %vm2945_vm3, %v2941_v62, %v2949_v46  ;;  %v6579_v50 = vcombine.low %v3899_v43, %v3899_v43 }
 0x364   : > { %v2954_v11 = vsel %vm2946_vm6, %v2942_v38, %v2950_v39  ;;  %v2959_v44 = vsel %vm2890_vm8, %v2951_v42, %v2955_v59  ;;  %v2960_v51 = vsel %vm2890_vm8, %v2952_v52, %v8646_v36  ;;  %v2961_v5 = vsel %vm2890_vm8, %v2953_v19, %v2956_v13 }
 0x365   : > { %v2962_v54 = vsel %vm2890_vm8, %v2954_v11, %v8651_v25  ;;  %v8662_v22 = vpack.c.bf16 %v2959_v44, %v2959_v44  ;;  %v8664_v8 = vpack.c.bf16 %v2961_v5, %v2961_v5  ;;  %2963 = vst [vmem:[%s8668_s14] sm:$0xff] %v2959_v44  ;;  %2964 = vst [vmem:[%s8668_s14 + $0x8] sm:$0xff] %v2960_v51  ;;  %v5407_v29 = vrot.slane %v2952_v52, 4  ;;  %v3900_v44 = vld [vmem:[%s10480_s17 + $0x18] sm:$0x44] }
 0x366   : > { %2965 = vst [vmem:[%s8668_s14 + $0x10] sm:$0xff] %v2961_v5  ;;  %2966 = vst [vmem:[%s8668_s14 + $0x18] sm:$0xff] %v2962_v54  ;;  %v8679_v10 = vpack.c.bf16 %v2960_v51, %v2960_v51  ;;  %v8683_v32 = vpack.c.bf16 %v2962_v54, %v2962_v54  ;;  %v5409_v40 = vrot.slane %v2954_v11, 4  ;;  %v5406_v17 = vrot.slane %v2951_v42, 4  ;;  %v3591_v51 = vld [vmem:[%s10480_s17 + $0x10] sm:$0x11] }
 0x367   : > { %4042 = vrot.lane.b32.xlu0 %v8664_v8, %s7397_s15  ;;  %4038 = vrot.lane.b32.xlu1 %v8662_v22, %s7397_s15  ;;  %v8691_v48 = vmul.bf16 %v3993_v9, %v8662_v22  ;;  %v8698_v45 = vmul.bf16 %v4009_v23, %v8664_v8  ;;  %v5415_v53 = vsel %vm2890_vm8, %v10511_v0, %v5407_v29  ;;  %v5408_v14 = vrot.slane %v2953_v19, 4 }
 0x368   : > { %v8695_v60 = vmul.bf16 %v4001_v30, %v8679_v10  ;;  %v8701_v56 = vmul.bf16 %v4017_v57, %v8683_v32  ;;  %5423 = vst [vmem:[%s8713_s29 + $0x28] sm:$0xff] %v5415_v53  ;;  %v5417_v7 = vsel %vm2890_vm8, %v10512_v31, %v5409_v40  ;;  %v5414_v3 = vsel %vm2890_vm8, %v8646_v36, %v5406_v17  ;;  %v3745_v36 = vld [vmem:[%s10480_s17 + $0x10] sm:$0x22] }
 0x369   : > { %5425 = vst [vmem:[%s8713_s29 + $0x38] sm:$0xff] %v5417_v7  ;;  %5422 = vst [vmem:[%s8713_s29 + $0x20] sm:$0xff] %v5414_v3  ;;  %v5416_v4 = vsel %vm2890_vm8, %v8651_v25, %v5408_v14  ;;  %v6598_v24 = vcombine.high %v4111_v61, %v4111_v61  ;;  %v4066_v62 = vpack.i.b16 %v6591_v20, %v6591_v20  ;;  %v4141_v38 = vshrl.u32 %v6597_v27, 16  ;;  %v3821_v3 = vld [vmem:[%s10480_s17 + $0x18] sm:$0x22] }
 0x36a   : > { %v6589_v63 = vcombine.low %v8691_v48, %v8695_v60  ;;  %v6590_v18 = vcombine.low %v8698_v45, %v8701_v56  ;;  %5424 = vst [vmem:[%s8713_s29 + $0x30] sm:$0xff] %v5416_v4  ;;  %v6593_v59 = vcombine.low %v4037_v21, %v4037_v21  ;;  %v6573_v25 = vcombine.low %v3820_v49, %v3820_v49 }
 0x36b   : > { %4115 = vrot.lane.b32.xlu0 %v8679_v10, %s7395_s21  ;;  %4040 = vrot.lane.b32.xlu1 %v8679_v10, %s7397_s15  ;;  %v6599_v13 = vcombine.low %v4112_v47, %v4112_v47  ;;  %v3929_v6 = vpack.i.b16 %v6579_v50, %v6579_v50  ;;  %v4149_v12 = vshrl.u32 %v6598_v24, 16  ;;  %v6567_v46 = vcombine.low %v3745_v36, %v3745_v36  ;;  %v4848_v50 = vld [vmem:[%s10480_s17 + $0x30] sm:$0x22] }
 0x36c   : > { %4034 = vst [vmem:[#allocation2 + $0x28] sm:$0xff] %v6589_v63  ;;  %4035 = vst [vmem:[#allocation2] sm:$0xff] %v6590_v18  ;;  %v6600_v39 = vcombine.high %v4112_v47, %v4112_v47  ;;  %v8832_v15 = vrot.slane %v4066_v62, %v7762_v35  ;;  %v4142_v42 = vpack.i.b16 %v4141_v38, %v4141_v38  ;;  %v3850_v16 = vshrl.u32 %v6573_v25, 16 }
 0x36d   : > { %v4080_v52 = vpack.i.b16 %v6593_v59, %v6593_v59  ;;  %v6580_v19 = vcombine.high %v3899_v43, %v3899_v43  ;;  %v4157_v11 = vshrl.u32 %v6599_v13, 16  ;;  %v8841_v5 = vrot.slane %v4073_v58, %v7762_v35 }
 0x36e   : > { %v4087_v54 = vpack.i.b16 %v6594_v26, %v6594_v26  ;;  %v6561_v9 = vcombine.low %v8829_v1, %v8829_v1  ;;  %v8850_v30 = vrot.slane %v3929_v6, %v7756_v34  ;;  %v4150_v23 = vpack.i.b16 %v4149_v12, %v4149_v12  ;;  %v3437_v6 = vld [vmem:[%s10480_s17] sm:$0x88] }
 0x36f   : > { %3901 = vrot.lane.b32.xlu0 %v8662_v22, %s7396_s27  ;;  %4113 = vrot.lane.b32.xlu1 %v8662_v22, %s7395_s21  ;;  %v3775_v57 = vpack.i.b16 %v6567_v46, %v6567_v46  ;;  %v4165_v29 = vshrl.u32 %v6600_v39, 16  ;;  %v8853_v40 = vrot.slane %v4142_v42, %v7762_v35  ;;  %v6581_v63 = vcombine.low %v3900_v44, %v3900_v44  ;;  %v3512_v12 = vld [vmem:[%s10480_s17] sm:$0x88] }
 0x370   : > { %v6568_v18 = vcombine.high %v3745_v36, %v3745_v36  ;;  %v6555_v17 = vcombine.low %v3591_v51, %v3591_v51  ;;  %v8856_v0 = vrot.slane %v4080_v52, %v7762_v35  ;;  %v3936_v53 = vpack.i.b16 %v6580_v19, %v6580_v19 }
 0x371   : > { %v3851_v31 = vpack.i.b16 %v3850_v16, %v3850_v16  ;;  %v4158_v7 = vpack.i.b16 %v4157_v11, %v4157_v11  ;;  %v8862_v14 = vrot.slane %v4087_v54, %v7762_v35  ;;  %v3858_v4 = vshrl.u32 %v6574_v2, 16  ;;  %v8916_v11 = vld [vmem:[%s10480_s17 + $0x18] sm:$0x11] }
 0x372   : > { %v3696_v41 = vshrl.u32 %v6561_v9, 16  ;;  %v6582_v61 = vcombine.high %v3900_v44, %v3900_v44  ;;  %v8869_v20 = vrot.slane %v4150_v23, %v7762_v35  ;;  %v8872_v43 = vrot.slane %v3775_v57, %v7790_v55  ;;  %v8921_v9 = vld [vmem:[%s10480_s17 + $0x30] sm:$0x11] }
 0x373   : > { %4044 = vrot.lane.b32.xlu0 %v8683_v32, %s7397_s15  ;;  %4117 = vrot.lane.b32.xlu1 %v8664_v8, %s7395_s21  ;;  %s10513_s15 = smov 55   ;;  %v4166_v27 = vpack.i.b16 %v4165_v29, %v4165_v29  ;;  %v3943_v21 = vpack.i.b16 %v6581_v63, %v6581_v63  ;;  %v3782_v49 = vpack.i.b16 %v6568_v18, %v6568_v18  ;;  %vm5248_vm3 = vcmask 719872  }
 0x374   : > { %v3621_v47 = vpack.i.b16 %v6555_v17, %v6555_v17  ;;  %v6575_v24 = vcombine.low %v3821_v3, %v3821_v3  ;;  %v8881_v62 = vrot.slane %v3936_v53, %v7756_v34  ;;  %v8884_v38 = vrot.slane %v3851_v31, %v7790_v55  ;;  %v3592_v53 = vld [vmem:[%s10480_s17 + $0x18] sm:$0x11] }
 0x375   : > { %v8887_v36 = vrot.slane %v4158_v7, %v7762_v35  ;;  %v6562_v59 = vcombine.high %v8829_v1, %v8829_v1  ;;  %v3859_v25 = vpack.i.b16 %v3858_v4, %v3858_v4  ;;  %v3697_v13 = vpack.i.b16 %v3696_v41, %v3696_v41  ;;  %v8944_v4 = vld [vmem:[%s10480_s17 + $0x30] sm:$0x11] }
 0x376   : > { %v3950_v58 = vpack.i.b16 %v6582_v61, %v6582_v61  ;;  %v6569_v26 = vcombine.low %v3746_v33, %v3746_v33  ;;  %v8902_v46 = vrot.slane %v4166_v27, %v7762_v35  ;;  %v6556_v39 = vcombine.high %v3591_v51, %v3591_v51 }
 0x377   : > { %3747 = vrot.lane.b32.xlu0 %v8662_v22, %s7400_s24  ;;  %3903 = vrot.lane.b32.xlu1 %v8679_v10, %s7396_s27  ;;  %v6663_v1 = vcombine.low %v4848_v50, %v4848_v50  ;;  %v8905_v42 = vrot.slane %v3943_v21, %v7756_v34  ;;  %v8908_v52 = vrot.slane %v3782_v49, %v7790_v55  ;;  %v3866_v16 = vshrl.u32 %v6575_v24, 16 }
 0x378   : > { %v8911_v19 = vrot.slane %v3621_v47, %v7764_v37  ;;  %v3704_v44 = vshrl.u32 %v6562_v59, 16  ;;  %v6543_v54 = vcombine.low %v3437_v6, %v3437_v6  ;;  %v6549_v2 = vcombine.low %v3512_v12, %v3512_v12 }
 0x379   : > { %v6576_v51 = vcombine.high %v3821_v3, %v3821_v3  ;;  %v8924_v23 = vrot.slane %v3859_v25, %v7790_v55  ;;  %v8927_v57 = vrot.slane %v3697_v13, %v7764_v37  ;;  %v8930_v29 = vrot.slane %v3950_v58, %v7756_v34 }
 0x37a   : > { %v3789_v63 = vpack.i.b16 %v6569_v26, %v6569_v26  ;;  %v3628_v18 = vpack.i.b16 %v6556_v39, %v6556_v39  ;;  %v4864_v17 = vpack.i.b16 %v6663_v1, %v6663_v1  ;;  %v6563_v31 = vcombine.low %v8916_v11, %v8916_v11 }
 0x37b   : > { %3822 = vrot.lane.b32.xlu0 %v8662_v22, %s7399_s19  ;;  %4119 = vrot.lane.b32.xlu1 %v8683_v32, %s7395_s21  ;;  %s10514_s21 = smov 57   ;;  %v3867_v7 = vpack.i.b16 %v3866_v16, %v3866_v16  ;;  %v6570_v3 = vcombine.high %v3746_v33, %v3746_v33  ;;  %v6550_v41 = vcombine.high %v3512_v12, %v3512_v12  ;;  %v3542_v49 = vshrl.u32 %v6549_v2, 16 }
 0x37c   : > { %v6657_v61 = vcombine.low %v8921_v9, %v8921_v9  ;;  %v3705_v27 = vpack.i.b16 %v3704_v44, %v3704_v44  ;;  %v3467_v21 = vpack.i.b16 %v6543_v54, %v6543_v54  ;;  %v3874_v47 = vshrl.u32 %v6576_v51, 16 }
 0x37d   : > { %v8949_v24 = vrot.slane %v3789_v63, %v7790_v55  ;;  %v6557_v59 = vcombine.low %v3592_v53, %v3592_v53  ;;  %v6664_v25 = vcombine.high %v4848_v50, %v4848_v50  ;;  %v6544_v13 = vcombine.high %v3437_v6, %v3437_v6  ;;  %v8966_v50 = vld [vmem:[%s10480_s17] sm:$0x44] }
 0x37e   : > { %v8956_v33 = vrot.slane %v3628_v18, %v7764_v37  ;;  %v8959_v58 = vrot.slane %v4864_v17, %v7790_v55  ;;  %v6651_v26 = vcombine.low %v8944_v4, %v8944_v4  ;;  %v3712_v12 = vshrl.u32 %v6563_v31, 16  ;;  %v3283_v63 = vld [vmem:[%s10480_s17] sm:$0x44] }
 0x37f   : > { %3905 = vrot.lane.b32.xlu0 %v8664_v8, %s7396_s27  ;;  %3749 = vrot.lane.b32.xlu1 %v8679_v10, %s7400_s24  ;;  %v8969_v6 = vrot.slane %v3867_v7, %v7790_v55  ;;  %v3796_v39 = vpack.i.b16 %v6570_v3, %v6570_v3  ;;  %v3550_v1 = vshrl.u32 %v6550_v41, 16  ;;  %v4799_v16 = vshrl.u32 %v6657_v61, 16  ;;  %v4849_v7 = vld [vmem:[%s10480_s17 + $0x38] sm:$0x22] }
 0x380   : > { %10522 = vst [vmem:[#allocation30_spill] sm:$0xff] %v8959_v58  ;;  %v8972_v44 = vrot.slane %v3705_v27, %v7764_v37  ;;  %v8975_v54 = vrot.slane %v3467_v21, %v7762_v35  ;;  %v3543_v2 = vpack.i.b16 %v3542_v49, %v3542_v49  ;;  %v3875_v51 = vpack.i.b16 %v3874_v47, %v3874_v47 }
 0x381   : > { %v3635_v18 = vpack.i.b16 %v6557_v59, %v6557_v59  ;;  %v4871_v17 = vpack.i.b16 %v6664_v25, %v6664_v25  ;;  %v3474_v31 = vpack.i.b16 %v6544_v13, %v6544_v13  ;;  %v6537_v3 = vcombine.low %v8966_v50, %v8966_v50 }
 0x382   : > { %10523 = vst [vmem:[#allocation35_spill] sm:$0xff] %v8975_v54  ;;  %v4738_v41 = vpack.i.b16 %v6651_v26, %v6651_v26  ;;  %v3713_v61 = vpack.i.b16 %v3712_v12, %v3712_v12  ;;  %v6564_v27 = vcombine.high %v8916_v11, %v8916_v11  ;;  %v8992_v21 = vrot.slane %v3796_v39, %v7790_v55  ;;  %v9005_v11 = vld [vmem:[%s10480_s17 + $0x8] sm:$0x88] }
 0x383   : > { %3593 = vrot.lane.b32.xlu0 %v8662_v22, %s10513_s15  ;;  %3824 = vrot.lane.b32.xlu1 %v8679_v10, %s7399_s19  ;;  %v3551_v49 = vpack.i.b16 %v3550_v1, %v3550_v1  ;;  %v4800_v47 = vpack.i.b16 %v4799_v16, %v4799_v16  ;;  %v6531_v59 = vcombine.low %v3283_v63, %v3283_v63  ;;  %v3388_v58 = vshrl.u32 %v6537_v3, 16 }
 0x384   : > { %v8997_v28 = vrot.slane %v3543_v2, %v7762_v35  ;;  %v9000_v54 = vrot.slane %v3875_v51, %v7790_v55  ;;  %v6558_v26 = vcombine.high %v3592_v53, %v3592_v53  ;;  %v6665_v12 = vcombine.low %v4849_v7, %v4849_v7 }
 0x385   : > { %v9008_v39 = vrot.slane %v3635_v18, %v7764_v37  ;;  %v9011_v1 = vrot.slane %v4871_v17, %v7790_v55  ;;  %v6666_v16 = vcombine.high %v4849_v7, %v4849_v7  ;;  %v9018_v53 = vrot.slane %v3474_v31, %v7762_v35 }
 0x386   : > { %10524 = vst [vmem:[#allocation27_spill] sm:$0xff] %v8997_v28  ;;  %10525 = vst [vmem:[#allocation28_spill] sm:$0xff] %v9000_v54  ;;  %v9021_v2 = vrot.slane %v4738_v41, %v7764_v37  ;;  %v9024_v51 = vrot.slane %v3713_v61, %v7764_v37  ;;  %v3720_v18 = vshrl.u32 %v6564_v27, 16  ;;  %v9027_v17 = vrot.slane %v3551_v49, %v7762_v35  ;;  %v9039_v27 = vld [vmem:[%s10480_s17 + $0x20] sm:$0x88] }
 0x387   : > { %3668 = vrot.lane.b32.xlu0 %v8662_v22, %s7398_s30  ;;  %3907 = vrot.lane.b32.xlu1 %v8683_v32, %s7396_s27  ;;  %s10516_s27 = smov 63   ;;  %10526 = vst [vmem:[#allocation36_spill] sm:$0xff] %v9008_v39  ;;  %10527 = vst [vmem:[#allocation37_spill] sm:$0xff] %v9011_v1  ;;  %v9030_v7 = vrot.slane %v4800_v47, %v7764_v37  ;;  %v3313_v3 = vpack.i.b16 %v6531_v59, %v6531_v59  ;;  %v9044_v49 = vld [vmem:[%s10480_s17 + $0x8] sm:$0x88] }
 0x388   : > { %10529 = vst [vmem:[#allocation38_spill] sm:$0xff] %v9018_v53  ;;  %10530 = vst [vmem:[#allocation39_spill] sm:$0xff] %v9021_v2  ;;  %v6545_v39 = vcombine.low %v9005_v11, %v9005_v11  ;;  %v3642_v53 = vpack.i.b16 %v6558_v26, %v6558_v26  ;;  %v4878_v1 = vpack.i.b16 %v6665_v12, %v6665_v12 }
 0x389   : > { %10531 = vst [vmem:[#allocation40_spill] sm:$0xff] %v9024_v51  ;;  %10532 = vst [vmem:[#allocation32_spill] sm:$0xff] %v9027_v17  ;;  %v6652_v41 = vcombine.high %v8944_v4, %v8944_v4  ;;  %v6532_v61 = vcombine.high %v3283_v63, %v3283_v63  ;;  %v4885_v26 = vpack.i.b16 %v6666_v16, %v6666_v16 }
 0x38a   : > { %10533 = vst [vmem:[#allocation29_spill] sm:$0xff] %v9030_v7  ;;  %v3389_v4 = vpack.i.b16 %v3388_v58, %v3388_v58  ;;  %v3481_v7 = vpack.i.b16 %v6545_v39, %v6545_v39  ;;  %v6551_v58 = vcombine.low %v9044_v49, %v9044_v49  ;;  %v6658_v16 = vcombine.high %v8921_v9, %v8921_v9  ;;  %v9072_v39 = vld [vmem:[%s10480_s17 + $0x20] sm:$0x88] }
 0x38b   : > { %3751 = vrot.lane.b32.xlu0 %v8664_v8, %s7400_s24  ;;  %3595 = vrot.lane.b32.xlu1 %v8679_v10, %s10513_s15  ;;  %v4745_v12 = vpack.i.b16 %v6652_v41, %v6652_v41  ;;  %v3320_v51 = vpack.i.b16 %v6532_v61, %v6532_v61  ;;  %v6538_v17 = vcombine.high %v8966_v50, %v8966_v50 }
 0x38c   : > { %v9078_v54 = vrot.slane %v3642_v53, %v7764_v37  ;;  %v9081_v9 = vrot.slane %v4878_v1, %v7790_v55  ;;  %v9084_v41 = vrot.slane %v4885_v26, %v7790_v55  ;;  %v9092_v50 = vrot.slane %v3389_v4, %v7756_v34 }
 0x38d   : > { %v9098_v1 = vrot.slane %v3481_v7, %v7762_v35  ;;  %v9100_v26 = vshrl.u32 %v6551_v58, 16  ;;  %v9110_v4 = vshrl.u32 %v6658_v16, 16 }
 0x38e   : > { %10535 = vst [vmem:[#allocation33_spill] sm:$0xff] %v9081_v9  ;;  %10536 = vst [vmem:[#allocation34_spill] sm:$0xff] %v9084_v41  ;;  %v9105_v9 = vrot.slane %v4745_v12, %v7764_v37 }
 0x38f   : > { %3826 = vrot.lane.b32.xlu0 %v8664_v8, %s7399_s19  ;;  %3670 = vrot.lane.b32.xlu1 %v8679_v10, %s7398_s30  ;;  %10538 = vst [vmem:[#allocation25_spill] sm:$0xff] %v9092_v50  ;;  %10539 = vst [vmem:[#allocation26_spill] sm:$0xff] %v9098_v1  ;;  %v4808_v12 = vpack.i.b16 %v9110_v4, %v9110_v4  ;;  %v9158_v50 = vld [vmem:[%s10480_s17] sm:$0x22] }
 0x390   : > { %10540 = vst [vmem:[#allocation41_spill] sm:$0xff] %v9105_v9 }
 0x393   : > { %3439 = vrot.lane.b32.xlu0 %v8662_v22, %s10514_s21  ;;  %3753 = vrot.lane.b32.xlu1 %v8683_v32, %s7400_s24 }
 0x397   : > { %3514 = vrot.lane.b32.xlu0 %v8662_v22, %s10515_s18  ;;  %3828 = vrot.lane.b32.xlu1 %v8683_v32, %s7399_s19  ;;  %s10517_s19 = smov 71  }
 0x39b   : > { %3597 = vrot.lane.b32.xlu0 %v8664_v8, %s10513_s15  ;;  %3441 = vrot.lane.b32.xlu1 %v8679_v10, %s10514_s21 }
 0x39f   : > { %3672 = vrot.lane.b32.xlu0 %v8664_v8, %s7398_s30  ;;  %3516 = vrot.lane.b32.xlu1 %v8679_v10, %s10515_s18 }
 0x3a3   : > { %3285 = vrot.lane.b32.xlu0 %v8662_v22, %s10408_s23  ;;  %3599 = vrot.lane.b32.xlu1 %v8683_v32, %s10513_s15  ;;  %s10528_s15 = smov 120  }
 0x3a7   : > { %3360 = vrot.lane.b32.xlu0 %v8662_v22, %s10516_s27  ;;  %3674 = vrot.lane.b32.xlu1 %v8683_v32, %s7398_s30  ;;  %s10537_s30 = smov 119  }
 0x3ab   : > { %3443 = vrot.lane.b32.xlu0 %v8664_v8, %s10514_s21  ;;  %3287 = vrot.lane.b32.xlu1 %v8679_v10, %s10408_s23  ;;  %s10521_s23 = smov 72  }
 0x3af   : > { %3518 = vrot.lane.b32.xlu0 %v8664_v8, %s10515_s18  ;;  %3362 = vrot.lane.b32.xlu1 %v8679_v10, %s10516_s27 }
 0x3b3   : > { %3131 = vrot.lane.b32.xlu0 %v8662_v22, %s10517_s19  ;;  %3445 = vrot.lane.b32.xlu1 %v8683_v32, %s10514_s21 }
 0x3b7   : > { %3206 = vrot.lane.b32.xlu0 %v8662_v22, %s10518_s22  ;;  %3520 = vrot.lane.b32.xlu1 %v8683_v32, %s10515_s18  ;;  %s10519_s18 = smov 64  }
 0x3bb   : > { %3289 = vrot.lane.b32.xlu0 %v8664_v8, %s10519_s18  ;;  %3133 = vrot.lane.b32.xlu1 %v8679_v10, %s10517_s19 }
 0x3bf   : > { %3364 = vrot.lane.b32.xlu0 %v8664_v8, %s10516_s27  ;;  %3208 = vrot.lane.b32.xlu1 %v8679_v10, %s10518_s22 }
 0x3c3   : > { %2977 = vrot.lane.b32.xlu0 %v8662_v22, %s10520_s1  ;;  %3291 = vrot.lane.b32.xlu1 %v8683_v32, %s10519_s18  ;;  %s10705_s18 = sld [smem:[#allocation67_spill]] }
 0x3c7   : > { %3052 = vrot.lane.b32.xlu0 %v8662_v22, %s10521_s23  ;;  %3366 = vrot.lane.b32.xlu1 %v8683_v32, %s10516_s27 }
 0x3cb   : > { %3135 = vrot.lane.b32.xlu0 %v8664_v8, %s10517_s19  ;;  %2979 = vrot.lane.b32.xlu1 %v8679_v10, %s10520_s1 }
 0x3cf   : > { %3210 = vrot.lane.b32.xlu0 %v8664_v8, %s10518_s22  ;;  %3054 = vrot.lane.b32.xlu1 %v8679_v10, %s10521_s23 }
 0x3d3   : > { %2981 = vrot.lane.b32.xlu0 %v8664_v8, %s10520_s1  ;;  %3137 = vrot.lane.b32.xlu1 %v8683_v32, %s10517_s19  ;;  %s7402_s19 = smov [#allocation9]  }
 0x3d7   : > { %3056 = vrot.lane.b32.xlu0 %v8664_v8, %s10521_s23  ;;  %3212 = vrot.lane.b32.xlu1 %v8683_v32, %s10518_s22  ;;  %s6748_s22 = sshll.u32 %s7519_s28, 10 }
 0x3d9   : > { %v8994_v25 = vpop.permute.xlu0 %4042  ;;  %v4039_v13 = vpop.permute.xlu1 %4038 }
 0x3db   : > { %4192 = vrot.lane.b32.xlu0 %v8662_v22, %s10528_s15  ;;  %2983 = vrot.lane.b32.xlu1 %v8683_v32, %s10520_s1 }
 0x3dd   : > { %v4116_v28 = vpop.permute.xlu0 %4115  ;;  %v4041_v31 = vpop.permute.xlu1 %4040 }
 0x3de   : > { %v9047_v47 = vsel %vm1735_vm14, %v4039_v13, %v4041_v31  ;;  %v9051_v59 = vsel %vm1735_vm14, %v4041_v31, %v8994_v25  ;;  %v3721_v13 = vpack.i.b16 %v3720_v18, %v3720_v18  ;;  %v6639_v31 = vcombine.low %v9039_v27, %v9039_v27 }
 0x3df   : > { %4196 = vrot.lane.b32.xlu0 %v8664_v8, %s10528_s15  ;;  %3058 = vrot.lane.b32.xlu1 %v8683_v32, %s10521_s23  ;;  %v9075_v18 = vrot.slane %v3313_v3, %v7756_v34  ;;  %v10545_v9 = vmul.bf16 %v8841_v5, %v9051_v59  ;;  %s10704_s23 = sshll.u32 %s7619_s26, 5 }
 0x3e0   : > { %v9095_v53 = vrot.slane %v3721_v13, %v7764_v37  ;;  %v4612_v3 = vpack.i.b16 %v6639_v31, %v6639_v31  ;;  %v9112_v13 = vshrl.u32 %v6538_v17, 16  ;;  %s10071_s0 = scalar_lea.vmem [#allocation11], %s10704_s23  ;;  %s7230_s23 = sshll.u32 %s7402_s19, 4  ;;  %s7231_s23 = int_to_ptr.vmem [resolvable:$false] %s7230_s23 }
 0x3e1   : > { %v3902_v63 = vpop.permute.xlu0 %3901  ;;  %v4114_v2 = vpop.permute.xlu1 %4113  ;;  %10534 = vst [vmem:[#allocation31_spill] sm:$0xff] %v9075_v18  ;;  %s6113_s27 = sshll.u32 %s10071_s0, 4  ;;  %s10147_s27 = int_to_ptr.vmem [resolvable:$true] %s6113_s27 }
 0x3e2   : > { %v4121_v61 = vsel %vm1812_vm12, %v4114_v2, %v4116_v28  ;;  %v6645_v2 = vcombine.low %v9072_v39, %v9072_v39  ;;  %v9145_v16 = vrot.slane %v4612_v3, %v7762_v35 }
 0x3e3   : > { %4269 = vrot.lane.b32.xlu0 %v8679_v10, %s10537_s30  ;;  %4194 = vrot.lane.b32.xlu1 %v8679_v10, %s10528_s15  ;;  %v9108_v10 = vrot.slane %v3320_v51, %v7756_v34  ;;  %v4172_v7 = vmul.bf16 %v8853_v40, %v4121_v61  ;;  %v9135_v40 = vld [vmem:[%s10480_s17] sm:$0x22]  ;;  %v3559_v51 = vpack.i.b16 %v9100_v26, %v9100_v26 }
 0x3e4   : > { %10543 = vst [vmem:[#allocation43_spill] sm:$0xff] %v9145_v16  ;;  %v6525_v26 = vcombine.low %v9135_v40, %v9135_v40 }
 0x3e5   : > { %v4045_v18 = vpop.permute.xlu0 %4044  ;;  %v4118_v41 = vpop.permute.xlu1 %4117  ;;  %10541 = vst [vmem:[#allocation42_spill] sm:$0xff] %v9108_v10  ;;  %v4784_v10 = vld [vmem:[%s10480_s17 + $0x38] sm:$0x11] }
 0x3e6   : > { %v9117_v31 = vsel %vm1735_vm14, %v8994_v25, %v4045_v18  ;;  %v9120_v58 = vsel %vm1735_vm14, %v4045_v18, 0  ;;  %v4122_v1 = vsel %vm1812_vm12, %v4116_v28, %v4118_v41  ;;  %v4909_v28 = vld [vmem:[%s10542_s3] sm:$0xff]  ;;  %v3916_v25 = vsel %vm1594_vm13, 0, %v3902_v63 }
 0x3e7   : > { %v4173_v17 = vmul.bf16 %v8869_v20, %v4122_v1  ;;  %4198 = vrot.lane.b32.xlu0 %v8683_v32, %s10528_s15  ;;  %4267 = vrot.lane.b32.xlu1 %v8662_v22, %s10537_s30  ;;  %v4964_v20 = vld [vmem:[%s10349_s8] sm:$0xff]  ;;  %v9147_v22 = vshrl.u32 %v6645_v2, 16  ;;  %v6670_v18 = vcombine.high %v4909_v28, %v4909_v28  ;;  %v3397_v2 = vpack.i.b16 %v9112_v13, %v9112_v13  ;;  %v4723_v28 = vld [vmem:[%s10480_s17 + $0x38] sm:$0x11]  ;;  %s10158_s15 = scalar_lea.hbm %s10705_s18, %s6748_s22 }
 0x3e8   : > { %v3956_v4 = vmul.bf16 %v8850_v30, %v3916_v25 }
 0x3e9   : > { %v3748_v61 = vpop.permute.xlu0 %3747  ;;  %v9149_v1 = vpop.permute.xlu1 %3903  ;;  %6728 = vmatprep.mubr.msk.bf16.mxu0 %vm5248_vm3, %v6670_v18  ;;  %6730 = vmatprep.mubr.msk.bf16.mxu1 %vm5248_vm3, %v6670_v18  ;;  %v7121_v18 = vcombine.low %v10545_v9, %v4173_v17  ;;  %v4674_v30 = vpack.i.b16 %v9147_v22, %v9147_v22  ;;  %v6659_v9 = vcombine.low %v4784_v10, %v4784_v10 }
 0x3ea   : > { %v3909_v3 = vsel %vm1594_vm13, %v3902_v63, %v9149_v1  ;;  %v10544_v63 = vmul.bf16 %v8832_v15, %v9047_v47  ;;  %v6660_v17 = vcombine.high %v4784_v10, %v4784_v10 }
 0x3eb   : > { %v3957_v16 = vmul.bf16 %v8881_v62, %v3909_v3  ;;  %4969 = vperm.xlu0 %6843, %v4964_v20   ;;  %4271 = vrot.lane.b32.xlu1 %v8664_v8, %s10537_s30  ;;  %v6519_v62 = vcombine.low %v9158_v50, %v9158_v50  ;;  %v6552_v8 = vcombine.high %v9044_v49, %v9044_v49 }
 0x3ec   : > { %v7120_v13 = vcombine.low %v10544_v63, %v4172_v7  ;;  %v6546_v7 = vcombine.high %v9005_v11, %v9005_v11  ;;  %v6653_v20 = vcombine.low %v4723_v28, %v4723_v28  ;;  %v6654_v3 = vcombine.high %v4723_v28, %v4723_v28  ;;  %5264 = vmatprep.subr.bf16.mxu0 %v7121_v18 }
 0x3ed   : > { %v6583_v25 = vcombine.low %v3956_v4, %v3957_v16  ;;  %v3823_v15 = vpop.permute.xlu0 %3822  ;;  %v4120_v47 = vpop.permute.xlu1 %4119  ;;  %v9199_v11 = vrot.slane %v3559_v51, %v7762_v35  ;;  %v3234_v28 = vshrl.u32 %v6525_v26, 16  ;;  %v7122_v63 = vcombine.low %v3956_v4, %v8691_v48 }
 0x3ee   : > { %v4123_v5 = vsel %vm1812_vm12, %v4118_v41, %v4120_v47  ;;  %v4128_v59 = vsel %vm1812_vm12, %v4120_v47, 0  ;;  %5265 = vmatpush1.bf16.msra.mxu0 %v7120_v13  ;;  %v3762_v41 = vsel %vm1434_vm9, 0, %v3748_v61  ;;  %v7123_v18 = vcombine.low %v3957_v16, %v8695_v60 }
 0x3ef   : > { %3972 = vst [vmem:[#allocation2 + $0x80] sm:$0xff] %v6583_v25  ;;  %v4174_v22 = vmul.bf16 %v8887_v36, %v4123_v5  ;;  %v4175_v49 = vmul.bf16 %v8902_v46, %v4128_v59  ;;  %4273 = vrot.lane.b32.xlu1 %v8683_v32, %s10537_s30  ;;  %v3566_v10 = vshrl.u32 %v6552_v8, 16  ;;  %v3159_v36 = vpack.i.b16 %v6519_v62, %v6519_v62  ;;  %s6096_s30 = sshll.u32 %s8713_s29, 4  ;;  %s10145_s30 = int_to_ptr.vmem [resolvable:$true] %s6096_s30 }
 0x3f0   : > { %v3488_v46 = vpack.i.b16 %v6546_v7, %v6546_v7  ;;  %v4752_v5 = vpack.i.b16 %v6653_v20, %v6653_v20  ;;  %5266 = vmatprep.subr.bf16.mxu0 %v7123_v18  ;;  %v4759_v51 = vpack.i.b16 %v6654_v3, %v6654_v3  ;;  %v4815_v13 = vshrl.u32 %v6659_v9, 16  ;;  %s7226_s24 = scalar_lea.vmem %s10145_s30, 1024  ;;  %p7233_p1 = scmp.lt.s32.totalorder %s10145_s30, %s7231_s23 }
 0x3f1   : > { %v3906_v25 = vpop.permute.xlu0 %3905  ;;  %v9204_v47 = vpop.permute.xlu1 %3749  ;;  %v9208_v26 = vshrl.u32 %v6660_v17, 16  ;;  %v3802_v59 = vmul.bf16 %v8872_v43, %v3762_v41  ;;  %v10546_v60 = vmul.bf16 %v8856_v0, %v9117_v31  ;;  %v10547_v4 = vmul.bf16 %v8862_v14, %v9120_v58  ;;  %v9236_v31 = vld [vmem:[%s10480_s17 + $0x8] sm:$0x44]  ;;  %v9261_v41 = vld [vmem:[%s10480_s17 + $0x20] sm:$0x44]  ;;  %p7227_p9 = scmp.ne.s32.totalorder %s10145_s30, %s7226_s24 }
 0x3f2   : > { %v3755_v32 = vsel %vm1434_vm9, %v3748_v61, %v9204_v47  ;;  %5267 = vmatpush1.bf16.msra.mxu0 %v7122_v63  ;;  %v3837_v61 = vsel %vm1511_vm5, 0, %v3823_v15  ;;  %v9220_v8 = vrot.slane %v4808_v12, %v7764_v37  ;;  %v3235_v7 = vpack.i.b16 %v3234_v28, %v3234_v28  ;;  %v9252_v17 = vld [vmem:[%s10480_s17 + $0x8] sm:$0x44] }
 0x3f3   : > { %v3803_v48 = vmul.bf16 %v8908_v52, %v3755_v32  ;;  %v7124_v16 = vcombine.low %v10546_v60, %v4174_v22  ;;  %v7125_v62 = vcombine.low %v10547_v4, %v4175_v49  ;;  %v3567_v20 = vpack.i.b16 %v3566_v10, %v3566_v10  ;;  %p7228_p13 = pnand %p7227_p9, %p10706_p11 }
 0x3f4   : > { %v9225_v52 = vrot.slane %v3397_v2, %v7756_v34  ;;  %v9228_v0 = vrot.slane %v4674_v30, %v7762_v35  ;;  %v9231_v14 = vrot.slane %v3159_v36, %v7790_v55  ;;  %v9241_v12 = vrot.slane %v3488_v46, %v7762_v35 }
 0x3f5   : > { %v6571_v3 = vcombine.low %v3802_v59, %v3803_v48  ;;  %v3594_v43 = vpop.permute.xlu0 %3593  ;;  %v9222_v9 = vpop.permute.xlu1 %3824  ;;  %5305 = vmatprep.subr.bf16.mxu1 %v7125_v62  ;;  %v9244_v2 = vrot.slane %v4752_v5, %v7764_v37  ;;  %v9247_v30 = vrot.slane %v4759_v51, %v7764_v37  ;;  %v3881_v22 = vmul.bf16 %v8884_v38, %v3837_v61  ;;  %v9282_v51 = vld [vmem:[%s10480_s17 + $0x20] sm:$0x44]  ;;  %p7229_p10 = pneg %p7228_p13 }
 0x3f6   : > { %10548 = vst [vmem:[#allocation44_spill] sm:$0xff] %v9228_v0  ;;  %v3830_v58 = vsel %vm1511_vm5, %v3823_v15, %v9222_v9  ;;  %5306 = vmatpush1.bf16.msra.mxu1 %v7124_v16  ;;  %v4816_v49 = vpack.i.b16 %v4815_v13, %v4815_v13  ;;  %v4824_v28 = vpack.i.b16 %v9208_v26, %v9208_v26  ;;  %v3608_v61 = vsel %vm1274_vm2, 0, %v3594_v43 }
 0x3f7   : > { %10549 = vst [vmem:[#allocation45_spill] sm:$0xff] %v9244_v2  ;;  %10550 = vst [vmem:[#allocation46_spill] sm:$0xff] %v9247_v30  ;;  %v3882_v15 = vmul.bf16 %v8924_v23, %v3830_v58  ;;  %v3910_v63 = vsel %vm1594_vm13, %v9149_v1, %v3906_v25  ;;  %v9266_v18 = vrot.slane %v3235_v7, %v7790_v55  ;;  %vm10618_vm12 = vcmask 588800  }
 0x3f8   : > { %3818 = vst [vmem:[#allocation2 + $0x1a0] sm:$0xff] %v6571_v3  ;;  %v9269_v38 = vrot.slane %v3567_v20, %v7762_v35  ;;  %v6533_v23 = vcombine.low %v9236_v31, %v9236_v31  ;;  %v6640_v5 = vcombine.high %v9039_v27, %v9039_v27  ;;  %v6520_v32 = vcombine.high %v9158_v50, %v9158_v50  ;;  %vm10620_vm14 = vmmov %vm10618_vm12 }
 0x3f9   : > { %v6577_v10 = vcombine.low %v3881_v22, %v3882_v15  ;;  %v3669_v36 = vpop.permute.xlu0 %3668  ;;  %v3908_v46 = vpop.permute.xlu1 %3907  ;;  %v6539_v1 = vcombine.low %v9252_v17, %v9252_v17  ;;  %v6627_v26 = vcombine.low %v9261_v41, %v9261_v41  ;;  %v6646_v60 = vcombine.high %v9072_v39, %v9072_v39  ;;  %vm10626_vm3 = vmmov %vm10618_vm12 }
 0x3fa   : > { %v3911_v13 = vsel %vm1594_vm13, %v3906_v25, %v3908_v46  ;;  %v6526_v27 = vcombine.high %v9135_v40, %v9135_v40  ;;  %v3958_v50 = vmul.bf16 %v8905_v42, %v3910_v63  ;;  %v7126_v4 = vcombine.low %v3802_v59, %v3881_v22 }
 0x3fb   : > { %3897 = vst [vmem:[#allocation2 + $0x98] sm:$0xff] %v6577_v10  ;;  %v3959_v16 = vmul.bf16 %v8930_v29, %v3911_v13  ;;  %v7127_v62 = vcombine.low %v3803_v48, %v3882_v15  ;;  %v9295_v25 = vrot.slane %v4816_v49, %v7764_v37  ;;  %v3327_v7 = vpack.i.b16 %v6533_v23, %v6533_v23 }
 0x3fc   : > { %v6633_v20 = vcombine.low %v9282_v51, %v9282_v51  ;;  %v4619_v42 = vpack.i.b16 %v6640_v5, %v6640_v5  ;;  %v3166_v40 = vpack.i.b16 %v6520_v32, %v6520_v32  ;;  %v3404_v63 = vshrl.u32 %v6539_v1, 16 }
 0x3fd   : > { %10551 = vst [vmem:[#allocation47_spill] sm:$0xff] %v9295_v25  ;;  %v6584_v39 = vcombine.low %v3958_v50, %v3959_v16  ;;  %v3752_v3 = vpop.permute.xlu0 %3751  ;;  %v9299_v58 = vpop.permute.xlu1 %3595  ;;  %5268 = vmatprep.subr.bf16.mxu0 %v7127_v62  ;;  %v9306_v59 = vrot.slane %v4824_v28, %v7764_v37  ;;  %v4486_v48 = vpack.i.b16 %v6627_v26, %v6627_v26  ;;  %v4681_v22 = vshrl.u32 %v6646_v60, 16  ;;  %v4597_v60 = vld [vmem:[%s10480_s17 + $0x28] sm:$0x88] }
 0x3fe   : > { %v9303_v29 = vsel %vm1274_vm2, %v3594_v43, %v9299_v58  ;;  %5269 = vmatpush1.bf16.msra.mxu0 %v7126_v4  ;;  %v3648_v15 = vmul.bf16 %v8911_v19, %v3608_v61  ;;  %v7128_v23 = vcombine.low %v3958_v50, %v8698_v45  ;;  %v3242_v10 = vshrl.u32 %v6526_v27, 16  ;;  %v9315_v43 = vld [vmem:[%s10480_s17] sm:$0x11] }
 0x3ff   : > { %10552 = vst [vmem:[#allocation48_spill] sm:$0xff] %v9306_v59  ;;  %3973 = vst [vmem:[#allocation2 + $0xa8] sm:$0xff] %v6584_v39  ;;  %v3649_v49 = vmul.bf16 %v8956_v33, %v9303_v29  ;;  %v3683_v46 = vsel %vm1351_vm15, 0, %v3669_v36  ;;  %v7129_v28 = vcombine.low %v3959_v16, %v8701_v56  ;;  %v9320_v5 = vrot.slane %v3327_v7, %v7756_v34  ;;  %v9345_v4 = vld [vmem:[%s10480_s17] sm:$0x11] }
 0x400   : > { %v4547_v19 = vshrl.u32 %v6633_v20, 16  ;;  %v9325_v45 = vrot.slane %v4619_v42, %v7762_v35  ;;  %v9328_v33 = vrot.slane %v3166_v40, %v7790_v55  ;;  %v3405_v26 = vpack.i.b16 %v3404_v63, %v3404_v63  ;;  %v4658_v20 = vld [vmem:[%s10480_s17 + $0x28] sm:$0x88] }
 0x401   : > { %10553 = vst [vmem:[#allocation49_spill] sm:$0xff] %v9320_v5  ;;  %v6559_v32 = vcombine.low %v3648_v15, %v3649_v49  ;;  %v3827_v1 = vpop.permute.xlu0 %3826  ;;  %v9322_v13 = vpop.permute.xlu1 %3670  ;;  %5307 = vmatprep.subr.bf16.mxu1 %v7129_v28  ;;  %v9336_v27 = vrot.slane %v4486_v48, %v7756_v34  ;;  %v6507_v50 = vcombine.low %v9315_v43, %v9315_v43 }
 0x402   : > { %v3676_v56 = vsel %vm1351_vm15, %v3669_v36, %v9322_v13  ;;  %v6534_v16 = vcombine.high %v9236_v31, %v9236_v31  ;;  %v3727_v62 = vmul.bf16 %v8927_v57, %v3683_v46  ;;  %5308 = vmatpush1.bf16.msra.mxu1 %v7128_v23  ;;  %v4682_v61 = vpack.i.b16 %v4681_v22, %v4681_v22 }
 0x403   : > { %10554 = vst [vmem:[#allocation50_spill] sm:$0xff] %v9336_v27  ;;  %3664 = vst [vmem:[#allocation2 + $0x180] sm:$0xff] %v6559_v32  ;;  %v3728_v36 = vmul.bf16 %v8972_v44, %v3676_v56  ;;  %v3243_v7 = vpack.i.b16 %v3242_v10, %v3242_v10  ;;  %v3756_v31 = vsel %vm1434_vm9, %v9204_v47, %v3752_v3 }
 0x404   : > { %v4548_v39 = vpack.i.b16 %v4547_v19, %v4547_v19  ;;  %v6641_v42 = vcombine.low %v4597_v60, %v4597_v60  ;;  %v6642_v40 = vcombine.high %v4597_v60, %v4597_v60  ;;  %v9355_v57 = vrot.slane %v3405_v26, %v7756_v34 }
 0x405   : > { %v6565_v63 = vcombine.low %v3727_v62, %v3728_v36  ;;  %v3440_v48 = vpop.permute.xlu0 %3439  ;;  %v3754_v28 = vpop.permute.xlu1 %3753  ;;  %v6513_v44 = vcombine.low %v9345_v4, %v9345_v4  ;;  %v6540_v22 = vcombine.high %v9252_v17, %v9252_v17  ;;  %v3005_v10 = vpack.i.b16 %v6507_v50, %v6507_v50 }
 0x406   : > { %10555 = vst [vmem:[#allocation51_spill] sm:$0xff] %v9355_v57  ;;  %v3757_v23 = vsel %vm1434_vm9, %v3752_v3, %v3754_v28  ;;  %v3334_v46 = vpack.i.b16 %v6534_v16, %v6534_v16  ;;  %v6647_v47 = vcombine.low %v4658_v20, %v4658_v20  ;;  %v9363_v19 = vmul.bf16 %v8949_v24, %v3756_v31 }
 0x407   : > { %3743 = vst [vmem:[#allocation2 + $0x138] sm:$0xff] %v6565_v63  ;;  %v3805_v32 = vmul.bf16 %v8992_v21, %v3757_v23  ;;  %v7130_v60 = vcombine.low %v3648_v15, %v3727_v62  ;;  %v7131_v26 = vcombine.low %v3649_v49, %v3728_v36  ;;  %v3831_v56 = vsel %vm1511_vm5, %v9222_v9, %v3827_v1  ;;  %v9386_v36 = vld [vmem:[%s10480_s17 + $0x8] sm:$0x22] }
 0x408   : > { %v4626_v27 = vpack.i.b16 %v6641_v42, %v6641_v42  ;;  %v4633_v57 = vpack.i.b16 %v6642_v40, %v6642_v40  ;;  %v6648_v5 = vcombine.high %v4658_v20, %v4658_v20  ;;  %v9370_v16 = vrot.slane %v4682_v61, %v7762_v35 }
 0x409   : > { %v6572_v17 = vcombine.low %v9363_v19, %v3805_v32  ;;  %v3515_v3 = vpop.permute.xlu0 %3514  ;;  %v3829_v50 = vpop.permute.xlu1 %3828  ;;  %5270 = vmatprep.subr.bf16.mxu0 %v7131_v26  ;;  %v9373_v24 = vrot.slane %v3243_v7, %v7790_v55  ;;  %v3080_v21 = vshrl.u32 %v6513_v44, 16  ;;  %v9377_v9 = vrot.slane %v4548_v39, %v7756_v34  ;;  %v10559_v7 = vld [vmem:[#allocation28_spill] sm:$0xff]  ;;  %v9399_v39 = vld [vmem:[%s10480_s17 + $0x8] sm:$0x22] }
 0x40a   : > { %10556 = vst [vmem:[#allocation52_spill] sm:$0xff] %v9370_v16  ;;  %v3832_v15 = vsel %vm1511_vm5, %v3827_v1, %v3829_v50  ;;  %5271 = vmatpush1.bf16.msra.mxu0 %v7130_v60  ;;  %v9379_v49 = vshrl.u32 %v6540_v22, 16  ;;  %v9381_v62 = vshrl.u32 %v6647_v47, 16  ;;  %v3883_v61 = vmul.bf16 %v8969_v6, %v3831_v56  ;;  %v9435_v60 = vld [vmem:[%s10480_s17 + $0x20] sm:$0x22] }
 0x40b   : > { %10557 = vst [vmem:[#allocation53_spill] sm:$0xff] %v9373_v24  ;;  %10558 = vst [vmem:[#allocation54_spill] sm:$0xff] %v9377_v9  ;;  %v3884_v20 = vmul.bf16 %v10559_v7, %v3832_v15  ;;  %v9391_v1 = vrot.slane %v3005_v10, %v7764_v37  ;;  %v9394_v31 = vrot.slane %v3334_v46, %v7756_v34  ;;  %v3454_v42 = vsel %vm1114_vm1, 0, %v3440_v48  ;;  %v10575_v24 = vld [vmem:[#allocation34_spill] sm:$0xff] }
 0x40c   : > { %3819 = vst [vmem:[#allocation2 + $0x158] sm:$0xff] %v6572_v17  ;;  %v9403_v40 = vrot.slane %v4626_v27, %v7762_v35  ;;  %v9406_v6 = vrot.slane %v4633_v57, %v7762_v35  ;;  %v9408_v63 = vshrl.u32 %v6648_v5, 16  ;;  %v3081_v23 = vpack.i.b16 %v3080_v21, %v3080_v21  ;;  %v9448_v21 = vld [vmem:[%s10480_s17 + $0x20] sm:$0x22] }
 0x40d   : > { %10560 = vst [vmem:[#allocation28_spill] sm:$0xff] %v9391_v1  ;;  %10561 = vst [vmem:[#allocation55_spill] sm:$0xff] %v9394_v31  ;;  %v6578_v28 = vcombine.low %v3883_v61, %v3884_v20  ;;  %v3598_v44 = vpop.permute.xlu0 %3597  ;;  %v9410_v22 = vpop.permute.xlu1 %3441  ;;  %v9414_v10 = vcombine.low %v9386_v36, %v9386_v36  ;;  %v9418_v46 = vcombine.high %v9261_v41, %v9261_v41  ;;  %v10565_v41 = vld [vmem:[#allocation30_spill] sm:$0xff]  ;;  %v3529_v15 = vsel %vm1191_vm0, 0, %v3515_v3 }
 0x40e   : > { %10562 = vst [vmem:[#allocation56_spill] sm:$0xff] %v9403_v40  ;;  %10563 = vst [vmem:[#allocation57_spill] sm:$0xff] %v9406_v6  ;;  %v3602_v27 = vsel %vm1274_vm2, %v9299_v58, %v3598_v44  ;;  %v9424_v5 = vsel %vm1114_vm1, %v3440_v48, %v9410_v22  ;;  %v9428_v57 = vcombine.high %v9315_v43, %v9315_v43  ;;  %v10566_v58 = vld [vmem:[#allocation35_spill] sm:$0xff]  ;;  %v10567_v48 = vld [vmem:[#allocation37_spill] sm:$0xff] }
 0x40f   : > { %10564 = vst [vmem:[#allocation58_spill] sm:$0xff] %v9424_v5  ;;  %v6527_v47 = vcombine.low %v9399_v39, %v9399_v39  ;;  %v4891_v26 = vmul.bf16 %v10565_v41, %v9303_v29  ;;  %v9440_v56 = vmul.bf16 %v10566_v58, %v3454_v42  ;;  %3898 = vst [vmem:[#allocation2 + $0xe8] sm:$0xff] %v6578_v28  ;;  %v10568_v43 = vld [vmem:[#allocation38_spill] sm:$0xff]  ;;  %v10573_v40 = vld [vmem:[#allocation36_spill] sm:$0xff] }
 0x410   : > { %v4892_v17 = vmul.bf16 %v10567_v48, %v3602_v27  ;;  %v3495_v50 = vmul.bf16 %v10568_v43, %v9424_v5  ;;  %v7132_v7 = vcombine.low %v9363_v19, %v3883_v61  ;;  %v7133_v9 = vcombine.low %v3805_v32, %v3884_v20  ;;  %v10570_v61 = vld [vmem:[#allocation27_spill] sm:$0xff] }
 0x411   : > { %v6634_v29 = vcombine.high %v9282_v51, %v9282_v51  ;;  %v3673_v41 = vpop.permute.xlu0 %3672  ;;  %v9455_v58 = vpop.permute.xlu1 %3516  ;;  %v6514_v48 = vcombine.high %v9345_v4, %v9345_v4  ;;  %v6621_v43 = vcombine.low %v9435_v60, %v9435_v60  ;;  %v3413_v51 = vpack.i.b16 %v9379_v49, %v9379_v49  ;;  %v10571_v4 = vld [vmem:[#allocation32_spill] sm:$0xff] }
 0x412   : > { %v6667_v42 = vcombine.low %v4891_v26, %v4892_v17  ;;  %v6547_v28 = vcombine.low %v9440_v56, %v3495_v50  ;;  %v9463_v1 = vsel %vm1191_vm0, %v3515_v3, %v9455_v58  ;;  %5309 = vmatprep.subr.bf16.mxu1 %v7133_v9  ;;  %v6615_v19 = vcombine.low %v9448_v21, %v9448_v21 }
 0x413   : > { %10569 = vst [vmem:[#allocation30_spill] sm:$0xff] %v9463_v1  ;;  %v3250_v32 = vshrl.u32 %v6527_v47, 16  ;;  %v3573_v20 = vmul.bf16 %v10570_v61, %v3529_v15  ;;  %v3574_v26 = vmul.bf16 %v10571_v4, %v9463_v1  ;;  %5310 = vmatpush1.bf16.msra.mxu1 %v7132_v7  ;;  %v4690_v3 = vpack.i.b16 %v9381_v62, %v9381_v62 }
 0x414   : > { %4907 = vst [vmem:[#allocation2 + $0x120] sm:$0xff] %v6667_v42  ;;  %3510 = vst [vmem:[#allocation2 + $0x148] sm:$0xff] %v6547_v28  ;;  %v4698_v9 = vpack.i.b16 %v9408_v63, %v9408_v63  ;;  %v9477_v49 = vrot.slane %v3081_v23, %v7764_v37  ;;  %v3173_v47 = vpack.i.b16 %v9414_v10, %v9414_v10  ;;  %v4555_v15 = vshrl.u32 %v6634_v29, 16  ;;  %v10574_v29 = vld [vmem:[#allocation33_spill] sm:$0xff] }
 0x415   : > { %v4493_v17 = vpack.i.b16 %v9418_v46, %v9418_v46  ;;  %v6553_v42 = vcombine.low %v3573_v20, %v3574_v26  ;;  %v3286_v28 = vpop.permute.xlu0 %3285  ;;  %v3600_v61 = vpop.permute.xlu1 %3599  ;;  %v3012_v7 = vpack.i.b16 %v9428_v57, %v9428_v57  ;;  %v3088_v62 = vshrl.u32 %v6514_v48, 16 }
 0x416   : > { %10572 = vst [vmem:[#allocation35_spill] sm:$0xff] %v9477_v49  ;;  %v4421_v4 = vshrl.u32 %v6621_v43, 16  ;;  %v3603_v63 = vsel %vm1274_vm2, %v3598_v44, %v3600_v61  ;;  %v4851_v23 = vsel %vm1274_vm2, %v3600_v61, 0  ;;  %v4360_v49 = vpack.i.b16 %v6615_v19, %v6615_v19 }
 0x417   : > { %v3251_v6 = vpack.i.b16 %v3250_v32, %v3250_v32  ;;  %v9488_v10 = vmul.bf16 %v10573_v40, %v3602_v27  ;;  %3589 = vst [vmem:[#allocation2 + $0x58] sm:$0xff] %v6553_v42  ;;  %v3651_v46 = vmul.bf16 %v9078_v54, %v3603_v63  ;;  %v4893_v31 = vmul.bf16 %v10574_v29, %v3603_v63 }
 0x418   : > { %v4894_v16 = vmul.bf16 %v10575_v24, %v4851_v23  ;;  %v3677_v57 = vsel %vm1351_vm15, %v9322_v13, %v3673_v41  ;;  %v7134_v48 = vcombine.low %v9440_v56, %v3573_v20  ;;  %v7135_v44 = vcombine.low %v3495_v50, %v3574_v26  ;;  %v10578_v56 = vld [vmem:[#allocation40_spill] sm:$0xff]  ;;  %v4471_v23 = vld [vmem:[%s10480_s17 + $0x28] sm:$0x44] }
 0x419   : > { %v4556_v43 = vpack.i.b16 %v4555_v15, %v4555_v15  ;;  %v6560_v19 = vcombine.low %v9488_v10, %v3651_v46  ;;  %v3361_v61 = vpop.permute.xlu0 %3360  ;;  %v3675_v40 = vpop.permute.xlu1 %3674  ;;  %v3089_v27 = vpack.i.b16 %v3088_v62, %v3088_v62  ;;  %v4422_v42 = vpack.i.b16 %v4421_v4, %v4421_v4 }
 0x41a   : > { %v6668_v32 = vcombine.low %v4893_v31, %v4894_v16  ;;  %v3678_v54 = vsel %vm1351_vm15, %v3673_v41, %v3675_v40  ;;  %5272 = vmatprep.subr.bf16.mxu0 %v7135_v44  ;;  %v9499_v63 = vrot.slane %v3413_v51, %v7756_v34  ;;  %v9502_v24 = vrot.slane %v4690_v3, %v7762_v35  ;;  %v9518_v51 = vld [vmem:[%s10480_s17 + $0x8] sm:$0x11] }
 0x41b   : > { %v9505_v13 = vrot.slane %v4698_v9, %v7762_v35  ;;  %v3729_v50 = vmul.bf16 %v10578_v56, %v3677_v57  ;;  %3665 = vst [vmem:[#allocation2 + $0x130] sm:$0xff] %v6560_v19  ;;  %v3730_v16 = vmul.bf16 %v9095_v53, %v3678_v54  ;;  %5273 = vmatpush1.bf16.msra.mxu0 %v7134_v48  ;;  %v3300_v35 = vsel %vm954_vm7, 0, %v3286_v28  ;;  %v10583_v48 = vld [vmem:[#allocation31_spill] sm:$0xff] }
 0x41c   : > { %10576 = vst [vmem:[#allocation37_spill] sm:$0xff] %v9502_v24  ;;  %4908 = vst [vmem:[#allocation2 + $0x188] sm:$0xff] %v6668_v32  ;;  %v9510_v31 = vrot.slane %v3173_v47, %v7790_v55  ;;  %v9513_v41 = vrot.slane %v4493_v17, %v7756_v34  ;;  %v9522_v20 = vrot.slane %v3012_v7, %v7764_v37  ;;  %v3375_v32 = vsel %vm1031_vm4, 0, %v3361_v61 }
 0x41d   : > { %10577 = vst [vmem:[#allocation38_spill] sm:$0xff] %v9505_v13  ;;  %v9525_v26 = vrot.slane %v4360_v49, %v7790_v55  ;;  %v9528_v53 = vrot.slane %v3251_v6, %v7790_v55  ;;  %v6566_v3 = vcombine.low %v3729_v50, %v3730_v16  ;;  %v3444_v9 = vpop.permute.xlu0 %3443  ;;  %v9530_v47 = vpop.permute.xlu1 %3287  ;;  %v9533_v17 = vrot.slane %v4556_v43, %v7756_v34  ;;  %v10585_v43 = vld [vmem:[#allocation42_spill] sm:$0xff] }
 0x41e   : > { %v9536_v15 = vrot.slane %v3089_v27, %v7764_v37  ;;  %v9539_v62 = vrot.slane %v4422_v42, %v7790_v55  ;;  %v9543_v49 = vsel %vm1114_vm1, %v9410_v22, %v3444_v9  ;;  %v9547_v6 = vsel %vm954_vm7, %v3286_v28, %v9530_v47 }
 0x41f   : > { %10579 = vst [vmem:[#allocation27_spill] sm:$0xff] %v9525_v26  ;;  %10581 = vst [vmem:[#allocation36_spill] sm:$0xff] %v9547_v6  ;;  %v6509_v7 = vcombine.low %v9518_v51, %v9518_v51  ;;  %v6616_v4 = vcombine.high %v9448_v21, %v9448_v21  ;;  %v9559_v22 = vmul.bf16 %v10583_v48, %v3300_v35  ;;  %v9568_v21 = vld [vmem:[%s10480_s17 + $0x8] sm:$0x11]  ;;  %vm10598_vm2 = vcmask 531456  }
 0x420   : > { %10580 = vst [vmem:[#allocation32_spill] sm:$0xff] %v9539_v62  ;;  %3744 = vst [vmem:[#allocation2 + $0x78] sm:$0xff] %v6566_v3  ;;  %v3341_v19 = vmul.bf16 %v10585_v43, %v9547_v6  ;;  %v7136_v40 = vcombine.low %v9488_v10, %v3729_v50  ;;  %v7137_v27 = vcombine.low %v3651_v46, %v3730_v16  ;;  %v10587_v46 = vld [vmem:[#allocation29_spill] sm:$0xff] }
 0x421   : > { %v6522_v42 = vcombine.high %v9386_v36, %v9386_v36  ;;  %v3519_v56 = vpop.permute.xlu0 %3518  ;;  %v9575_v35 = vpop.permute.xlu1 %3362  ;;  %v6629_v3 = vcombine.low %v4471_v23, %v4471_v23  ;;  %v6630_v48 = vcombine.high %v4471_v23, %v4471_v23  ;;  %v6515_v10 = vcombine.low %v9568_v21, %v9568_v21  ;;  %v10588_v16 = vld [vmem:[#allocation25_spill] sm:$0xff]  ;;  %vm10599_vm6 = vmmov %vm10598_vm2 }
 0x422   : > { %v6535_v54 = vcombine.low %v9559_v22, %v3341_v19  ;;  %v9579_v43 = vsel %vm1191_vm0, %v9455_v58, %v3519_v56  ;;  %v9583_v57 = vsel %vm1031_vm4, %v3361_v61, %v9575_v35  ;;  %5311 = vmatprep.subr.bf16.mxu1 %v7137_v27  ;;  %v6622_v36 = vcombine.high %v9435_v60, %v9435_v60  ;;  %vm10619_vm13 = vmmov %vm10598_vm2 }
 0x423   : > { %10586 = vst [vmem:[#allocation33_spill] sm:$0xff] %v9583_v57  ;;  %v3419_v23 = vmul.bf16 %v10588_v16, %v3375_v32  ;;  %v3420_v61 = vmul.bf16 %v9225_v52, %v9583_v57  ;;  %5312 = vmatpush1.bf16.msra.mxu1 %v7136_v40  ;;  %v3019_v27 = vpack.i.b16 %v6509_v7, %v6509_v7  ;;  %v3096_v16 = vshrl.u32 %v6515_v10, 16  ;;  %v10591_v7 = vld [vmem:[#allocation26_spill] sm:$0xff] }
 0x424   : > { %3356 = vst [vmem:[#allocation2 + $0x108] sm:$0xff] %v6535_v54  ;;  %v4367_v44 = vpack.i.b16 %v6616_v4, %v6616_v4  ;;  %v3180_v5 = vpack.i.b16 %v6522_v42, %v6522_v42  ;;  %v6528_v29 = vcombine.high %v9399_v39, %v9399_v39  ;;  %v4500_v50 = vpack.i.b16 %v6629_v3, %v6629_v3 }
 0x425   : > { %v6541_v60 = vcombine.low %v3419_v23, %v3420_v61  ;;  %v3132_v28 = vpop.permute.xlu0 %3131  ;;  %v3446_v62 = vpop.permute.xlu1 %3445  ;;  %v4507_v1 = vpack.i.b16 %v6630_v48, %v6630_v48  ;;  %v4429_v52 = vshrl.u32 %v6622_v36, 16  ;;  %v9606_v4 = vmul.bf16 %v10591_v7, %v9543_v49 }
 0x426   : > { %v9599_v32 = vsel %vm1114_vm1, %v3444_v9, %v3446_v62  ;;  %v9602_v54 = vsel %vm1114_vm1, %v3446_v62, 0  ;;  %v7138_v42 = vcombine.low %v9559_v22, %v3419_v23  ;;  %v7139_v62 = vcombine.low %v3341_v19, %v3420_v61 }
 0x427   : > { %10589 = vst [vmem:[#allocation34_spill] sm:$0xff] %v9599_v32  ;;  %10590 = vst [vmem:[#allocation40_spill] sm:$0xff] %v9602_v54  ;;  %v3497_v39 = vmul.bf16 %v9241_v12, %v9599_v32  ;;  %v9616_v3 = vrot.slane %v3019_v27, %v7764_v37  ;;  %v3258_v48 = vshrl.u32 %v6528_v29, 16  ;;  %v9620_v7 = vrot.slane %v4367_v44, %v7790_v55  ;;  %v4532_v29 = vld [vmem:[%s10480_s17 + $0x28] sm:$0x44] }
 0x428   : > { %3435 = vst [vmem:[#allocation2 + $0x90] sm:$0xff] %v6541_v60  ;;  %v9623_v12 = vrot.slane %v3180_v5, %v7790_v55  ;;  %5274 = vmatprep.subr.bf16.mxu0 %v7139_v62  ;;  %v3097_v19 = vpack.i.b16 %v3096_v16, %v3096_v16  ;;  %v4430_v23 = vpack.i.b16 %v4429_v52, %v4429_v52 }
 0x429   : > { %v6548_v10 = vcombine.low %v9606_v4, %v3497_v39  ;;  %v3207_v36 = vpop.permute.xlu0 %3206  ;;  %v3521_v60 = vpop.permute.xlu1 %3520  ;;  %v3575_v44 = vmul.bf16 %v9199_v11, %v9579_v43  ;;  %5275 = vmatpush1.bf16.msra.mxu0 %v7138_v42  ;;  %v9644_v16 = vrot.slane %v4500_v50, %v7756_v34  ;;  %v9647_v52 = vrot.slane %v4507_v1, %v7756_v34 }
 0x42a   : > { %v9626_v40 = vsel %vm1191_vm0, %v3519_v56, %v3521_v60  ;;  %v9629_v22 = vsel %vm1191_vm0, %v3521_v60, 0  ;;  %vm10594_vm0 = vcmask 580608   ;;  %v3259_v11 = vpack.i.b16 %v3258_v48, %v3258_v48 }
 0x42b   : > { %10592 = vst [vmem:[#allocation31_spill] sm:$0xff] %v9626_v40  ;;  %10593 = vst [vmem:[#allocation42_spill] sm:$0xff] %v9629_v22  ;;  %v3576_v5 = vmul.bf16 %v9269_v38, %v9626_v40  ;;  %v3146_v27 = vsel %vm10594_vm0, 0, %v3132_v28  ;;  %v6635_v38 = vcombine.low %v4532_v29, %v4532_v29  ;;  %v6636_v9 = vcombine.high %v4532_v29, %v4532_v29 }
 0x42c   : > { %3511 = vst [vmem:[#allocation2 + $0x100] sm:$0xff] %v6548_v10  ;;  %vm10595_vm1 = vmmov %vm10594_vm0  ;;  %v9660_v50 = vrot.slane %v3097_v19, %v7764_v37  ;;  %v9663_v1 = vrot.slane %v4430_v23, %v7790_v55  ;;  %v9668_v58 = vmul.bf16 %v9231_v14, %v3146_v27  ;;  %v4345_v19 = vld [vmem:[%s10480_s17 + $0x28] sm:$0x22]  ;;  %v3221_v23 = vsel %vm10598_vm2, 0, %v3207_v36 }
 0x42d   : > { %v6554_v62 = vcombine.low %v3575_v44, %v3576_v5  ;;  %v3290_v10 = vpop.permute.xlu0 %3289  ;;  %v9649_v60 = vpop.permute.xlu1 %3133  ;;  %v7140_v29 = vcombine.low %v9606_v4, %v3575_v44  ;;  %v7141_v32 = vcombine.low %v3497_v39, %v3576_v5  ;;  %v6510_v14 = vcombine.high %v9518_v51, %v9518_v51  ;;  %v10600_v5 = vld [vmem:[#allocation52_spill] sm:$0xff]  ;;  %vm10613_vm9 = vmmov %vm10594_vm0 }
 0x42e   : > { %v9653_v56 = vsel %vm954_vm7, %v9530_v47, %v3290_v10  ;;  %v9657_v42 = vsel %vm10595_vm1, %v3132_v28, %v9649_v60  ;;  %v4563_v47 = vshrl.u32 %v6635_v38, 16  ;;  %v4571_v2 = vshrl.u32 %v6636_v9, 16  ;;  %vm10624_vm5 = vmmov %vm10594_vm0 }
 0x42f   : > { %10596 = vst [vmem:[#allocation29_spill] sm:$0xff] %v9657_v42  ;;  %3590 = vst [vmem:[#allocation2 + $0xd8] sm:$0xff] %v6554_v62  ;;  %v3187_v28 = vmul.bf16 %v9328_v33, %v9657_v42  ;;  %v4406_v33 = vld [vmem:[%s10480_s17 + $0x28] sm:$0x22]  ;;  %5313 = vmatprep.subr.bf16.mxu1 %v7141_v32  ;;  %v9696_v51 = vrot.slane %v3259_v11, %v7790_v55  ;;  %v6617_v39 = vcombine.low %v4345_v19, %v4345_v19 }
 0x430   : > { %v3265_v44 = vmul.bf16 %v9266_v18, %v3221_v23  ;;  %5314 = vmatpush1.bf16.msra.mxu1 %v7140_v29  ;;  %v9705_v54 = vcombine.high %v4345_v19, %v4345_v19  ;;  %v6516_v32 = vcombine.high %v9568_v21, %v9568_v21  ;;  %v6623_v11 = vcombine.low %v4406_v33, %v4406_v33  ;;  %v10604_v19 = vld [vmem:[#allocation49_spill] sm:$0xff]  ;;  %v10605_v21 = vld [vmem:[#allocation55_spill] sm:$0xff]  ;;  %vm10625_vm11 = vmmov %vm10594_vm0 }
 0x431   : > { %v6523_v27 = vcombine.low %v9668_v58, %v3187_v28  ;;  %v3365_v62 = vpop.permute.xlu0 %3364  ;;  %v9682_v61 = vpop.permute.xlu1 %3208  ;;  %v4564_v59 = vpack.i.b16 %v4563_v47, %v4563_v47  ;;  %v4572_v18 = vpack.i.b16 %v4571_v2, %v4571_v2  ;;  %v6624_v29 = vcombine.high %v4406_v33, %v4406_v33  ;;  %v4190_v47 = vld [vmem:[%s10480_s17 + $0x20] sm:$0x11]  ;;  %vm10627_vm0 = vmmov %vm10598_vm2 }
 0x432   : > { %v9689_v40 = vsel %vm1031_vm4, %v9575_v35, %v3365_v62  ;;  %v9693_v4 = vsel %vm10599_vm6, %v3207_v36, %v9682_v61  ;;  %v10601_v35 = vld [vmem:[#allocation53_spill] sm:$0xff]  ;;  %v3026_v36 = vpack.i.b16 %v6510_v14, %v6510_v14  ;;  %v9717_v14 = vmul.bf16 %v10604_v19, %v9653_v56  ;;  %vm10628_vm1 = vmmov %vm10627_vm0 }
 0x433   : > { %3202 = vst [vmem:[#allocation2 + $0x160] sm:$0xff] %v6523_v27  ;;  %v3266_v25 = vmul.bf16 %v10601_v35, %v9693_v4  ;;  %v4374_v35 = vpack.i.b16 %v6617_v39, %v6617_v39  ;;  %v7142_v48 = vcombine.low %v9668_v58, %v3265_v44  ;;  %v4381_v33 = vpack.i.b16 %v9705_v54, %v9705_v54 }
 0x434   : > { %v9727_v39 = vrot.slane %v3026_v36, %v7764_v37  ;;  %v4437_v0 = vshrl.u32 %v6623_v11, 16  ;;  %v9742_v58 = vrot.slane %v4564_v59, %v7756_v34  ;;  %v4445_v54 = vshrl.u32 %v6624_v29, 16 }
 0x435   : > { %v6529_v30 = vcombine.low %v3265_v44, %v3266_v25  ;;  %v2978_v22 = vpop.permute.xlu0 %2977  ;;  %v3292_v9 = vpop.permute.xlu1 %3291  ;;  %v9754_v59 = vrot.slane %v4572_v18, %v7756_v34  ;;  %v9757_v11 = vrot.slane %v4374_v35, %v7790_v55  ;;  %v6603_v29 = vcombine.low %v4190_v47, %v4190_v47  ;;  %v9771_v34 = vld [vmem:[%s10480_s17 + $0x20] sm:$0x11]  ;;  %v10616_v18 = vld [vmem:[#allocation50_spill] sm:$0xff] }
 0x436   : > { %v9710_v23 = vsel %vm954_vm7, %v3290_v10, %v3292_v9  ;;  %v9713_v27 = vsel %vm954_vm7, %v3292_v9, 0  ;;  %v7143_v9 = vcombine.low %v3187_v28, %v3266_v25  ;;  %v10610_v28 = vld [vmem:[#allocation51_spill] sm:$0xff]  ;;  %v9766_v6 = vcombine.high %v4190_v47, %v4190_v47 }
 0x437   : > { %10602 = vst [vmem:[#allocation25_spill] sm:$0xff] %v9710_v23  ;;  %10603 = vst [vmem:[#allocation26_spill] sm:$0xff] %v9713_v27  ;;  %v3343_v38 = vmul.bf16 %v10605_v21, %v9710_v23  ;;  %v3104_v21 = vshrl.u32 %v6516_v32, 16  ;;  %v3421_v44 = vmul.bf16 %v10610_v28, %v9689_v40  ;;  %v4438_v23 = vpack.i.b16 %v4437_v0, %v4437_v0 }
 0x438   : > { %3281 = vst [vmem:[#allocation2 + $0x40] sm:$0xff] %v6529_v30  ;;  %5276 = vmatprep.subr.bf16.mxu0 %v7143_v9  ;;  %10612 = vst [vmem:[#allocation49_spill] sm:$0xff] %v9757_v11  ;;  %v4220_v24 = vpack.i.b16 %v6603_v29, %v6603_v29  ;;  %v9783_v35 = vrot.slane %v4381_v33, %v7790_v55  ;;  %v10622_v29 = vld [vmem:[#allocation35_spill] sm:$0xff] }
 0x439   : > { %v6536_v30 = vcombine.low %v9717_v14, %v3343_v38  ;;  %v3053_v19 = vpop.permute.xlu0 %3052  ;;  %v3367_v57 = vpop.permute.xlu1 %3366  ;;  %5277 = vmatpush1.bf16.msra.mxu0 %v7142_v48  ;;  %v9801_v33 = vrot.slane %v4438_v23, %v7790_v55  ;;  %v4227_v23 = vpack.i.b16 %v9766_v6, %v9766_v6 }
 0x43a   : > { %v9736_v10 = vsel %vm1031_vm4, %v3365_v62, %v3367_v57  ;;  %v9739_v25 = vsel %vm1031_vm4, %v3367_v57, 0  ;;  %vm10611_vm4 = vcmask 596992   ;;  %v4446_v62 = vpack.i.b16 %v4445_v54, %v4445_v54 }
 0x43b   : > { %10608 = vst [vmem:[#allocation52_spill] sm:$0xff] %v9736_v10  ;;  %10609 = vst [vmem:[#allocation53_spill] sm:$0xff] %v9739_v25  ;;  %v3422_v36 = vmul.bf16 %v9499_v63, %v9736_v10  ;;  %v2992_v57 = vsel %vm10611_vm4, 0, %v2978_v22  ;;  %v3105_v63 = vpack.i.b16 %v3104_v21, %v3104_v21  ;;  %v10617_v21 = vld [vmem:[#allocation28_spill] sm:$0xff]  ;;  %v3067_v47 = vsel %vm10618_vm12, 0, %v3053_v19 }
 0x43c   : > { %3357 = vst [vmem:[#allocation2 + $0x110] sm:$0xff] %v6536_v30  ;;  %vm10614_vm10 = vmmov %vm10611_vm4  ;;  %v3032_v0 = vmul.bf16 %v10617_v21, %v2992_v57  ;;  %v7144_v54 = vcombine.low %v9717_v14, %v3421_v44  ;;  %v4191_v57 = vld [vmem:[%s10480_s17 + $0x28] sm:$0x11]  ;;  %v3111_v21 = vmul.bf16 %v10622_v29, %v3067_v47 }
 0x43d   : > { %v6542_v9 = vcombine.low %v3421_v44, %v3422_v36  ;;  %v3136_v30 = vpop.permute.xlu0 %3135  ;;  %v2980_v28 = vpop.permute.xlu1 %2979  ;;  %v7145_v10 = vcombine.low %v3343_v38, %v3422_v36  ;;  %v9798_v14 = vrot.slane %v3105_v63, %v7764_v37  ;;  %v10621_v44 = vld [vmem:[#allocation54_spill] sm:$0xff]  ;;  %v9814_v63 = vrot.slane %v4220_v24, %v7764_v37  ;;  %vm10623_vm15 = vmmov %vm10611_vm4 }
 0x43e   : > { %v9761_v32 = vsel %vm10613_vm9, %v9649_v60, %v3136_v30  ;;  %v9764_v48 = vsel %vm10614_vm10, %v2978_v22, %v2980_v28  ;;  %v9818_v36 = vcombine.low %v4191_v57, %v4191_v57  ;;  %v4962_v60 = vld [vmem:[#allocation2 + $0x120] sm:$0xff]  ;;  %vm10633_vm2 = vmmov %vm10611_vm4  ;;  %vm10651_vm10 = vcmask 982016  }
 0x43f   : > { %10615 = vst [vmem:[#allocation55_spill] sm:$0xff] %v9764_v48  ;;  %3436 = vst [vmem:[#allocation2 + $0x118] sm:$0xff] %v6542_v9  ;;  %v3033_v22 = vmul.bf16 %v9522_v20, %v9764_v48  ;;  %v6609_v9 = vcombine.low %v9771_v34, %v9771_v34  ;;  %5315 = vmatprep.subr.bf16.mxu1 %v7145_v10  ;;  %v9811_v10 = vrot.slane %v4446_v62, %v7790_v55 }
 0x440   : > { %5316 = vmatpush1.bf16.msra.mxu1 %v7144_v54  ;;  %v9826_v55 = vmul.bf16 %v9510_v31, %v9761_v32  ;;  %v6723_v54 = vcombine.low %v4962_v60, %v4962_v60  ;;  %vm10635_vm6 = vmmov %vm10633_vm2 }
 0x441   : > { %v6511_v27 = vcombine.low %v3032_v0, %v3033_v22  ;;  %v3211_v2 = vpop.permute.xlu0 %3210  ;;  %v3055_v25 = vpop.permute.xlu1 %3054  ;;  %v9822_v13 = vshrl.u32 %v6609_v9, 16  ;;  %vm10641_vm4 = vmmov %vm10626_vm3 }
 0x442   : > { %v9792_v20 = vsel %vm10619_vm13, %v9682_v61, %v3211_v2  ;;  %v9795_v38 = vsel %vm10620_vm14, %v3053_v19, %v3055_v25  ;;  %v9820_v61 = vcombine.high %v4191_v57, %v4191_v57  ;;  %v7146_v57 = vcombine.low %v3032_v0, %v3111_v21  ;;  %v10629_v0 = vld [vmem:[#allocation32_spill] sm:$0xff]  ;;  %vm10642_vm9 = vmmov %vm10626_vm3 }
 0x443   : > { %3048 = vst [vmem:[#allocation2 + $0xb0] sm:$0xff] %v6511_v27  ;;  %v3112_v19 = vmul.bf16 %v9536_v15, %v9795_v38  ;;  %v3267_v42 = vmul.bf16 %v9528_v53, %v9792_v20  ;;  %v10638_v53 = vld [vmem:[#allocation39_spill] sm:$0xff]  ;;  %vm10652_vm12 = vmmov %vm10651_vm10 }
 0x444   : > { %vm10658_vm13 = vmmov %vm10651_vm10 }
 0x445   : > { %v6517_v47 = vcombine.low %v3111_v21, %v3112_v19  ;;  %v2982_v27 = vpop.permute.xlu0 %2981  ;;  %v3138_v29 = vpop.permute.xlu1 %3137  ;;  %v7147_v9 = vcombine.low %v3033_v22, %v3112_v19  ;;  %v4234_v21 = vpack.i.b16 %v9818_v36, %v9818_v36  ;;  %v6610_v19 = vcombine.high %v9771_v34, %v9771_v34  ;;  %v10636_v22 = vld [vmem:[#allocation30_spill] sm:$0xff]  ;;  %vm10659_vm14 = vmmov %vm10651_vm10 }
 0x446   : > { %v9829_v24 = vsel %vm10623_vm15, %v2980_v28, %v2982_v27  ;;  %v9832_v15 = vsel %vm10624_vm5, %v3136_v30, %v3138_v29  ;;  %v9835_v6 = vsel %vm10625_vm11, %v3138_v29, 0  ;;  %v6724_v29 = vcombine.high %v4962_v60, %v4962_v60  ;;  %v10631_v30 = vld [vmem:[#allocation41_spill] sm:$0xff] }
 0x447   : > { %3127 = vst [vmem:[#allocation2 + $0x10] sm:$0xff] %v6517_v47  ;;  %v3189_v31 = vmul.bf16 %v9623_v12, %v9832_v15  ;;  %5278 = vmatprep.subr.bf16.mxu0 %v7147_v9  ;;  %v9889_v36 = vmul.bf16 %v9616_v3, %v9829_v24  ;;  %v7149_v3 = vcombine.low %v9826_v55, %v3267_v42  ;;  %vm10662_vm15 = vcmask 973824  }
 0x448   : > { %5279 = vmatpush1.bf16.msra.mxu0 %v7146_v57  ;;  %v10630_v57 = vmul.bf16 %v9220_v8, %v9579_v43  ;;  %vm10673_vm5 = vmmov %vm10662_vm15 }
 0x449   : > { %v6524_v47 = vcombine.low %v9826_v55, %v3189_v31  ;;  %v3057_v62 = vpop.permute.xlu0 %3056  ;;  %v3213_v48 = vpop.permute.xlu1 %3212  ;;  %6727 = vmatprep.subr.msk.bf16.mxu0 %vm2890_vm8, %v6724_v29  ;;  %v10632_v29 = vmul.bf16 %v10631_v30, %v9543_v49  ;;  %v10637_v49 = vmul.bf16 %v10587_v46, %v10636_v22  ;;  %v10644_v46 = vmul.bf16 %v9325_v45, %v9653_v56  ;;  %vm10687_vm11 = vmmov %vm10673_vm5 }
 0x44a   : > { %v9851_v26 = vsel %vm10626_vm3, %v3055_v25, %v3057_v62  ;;  %v9854_v12 = vsel %vm10627_vm0, %v3211_v2, %v3213_v48  ;;  %v9857_v28 = vsel %vm10628_vm1, %v3213_v48, 0  ;;  %v9871_v48 = vrot.slane %v4227_v23, %v7764_v37  ;;  %v4266_v23 = vld [vmem:[%s10480_s17 + $0x28] sm:$0x11] }
 0x44b   : > { %3203 = vst [vmem:[#allocation2 + $0x128] sm:$0xff] %v6524_v47  ;;  %v3268_v60 = vmul.bf16 %v9696_v51, %v9854_v12  ;;  %v5253_v25 = vsel %vm2890_vm8, %v6723_v54, 0  ;;  %v7148_v2 = vcombine.low %v10632_v29, %v10630_v57  ;;  %v6611_v57 = vcombine.low %v4266_v23, %v4266_v23 }
 0x44c   : > { %5285 = vmatpush2.bf16.msra.mxu0 %v5253_v25  ;;  %v6612_v11 = vcombine.high %v4266_v23, %v4266_v23  ;;  %v4296_v45 = vpack.i.b16 %v9822_v13, %v9822_v13  ;;  %v10646_v23 = vld [vmem:[#allocation33_spill] sm:$0xff]  ;;  %v10653_v13 = vmul.bf16 %v9533_v17, %v9792_v20 }
 0x44d   : > { %v6530_v9 = vcombine.low %v3267_v42, %v3268_v60  ;;  %v4193_v51 = vpop.permute.xlu0 %4192  ;;  %v2984_v47 = vpop.permute.xlu1 %2983  ;;  %5286 = vmatprep.subr.bf16.mxu0 %v7148_v2  ;;  %v7150_v30 = vcombine.low %v3189_v31, %v3268_v60  ;;  %v3113_v42 = vmul.bf16 %v9660_v50, %v9851_v26  ;;  %v10643_v31 = vmul.bf16 %v10600_v5, %v9689_v40 }
 0x44e   : > { %v9892_v34 = vsel %vm10633_vm2, %v2982_v27, %v2984_v47  ;;  %v9895_v54 = vsel %vm10635_vm6, %v2984_v47, 0  ;;  %v4241_v27 = vpack.i.b16 %v9820_v61, %v9820_v61  ;;  %v4303_v47 = vshrl.u32 %v6610_v19, 16  ;;  %v10645_v19 = vld [vmem:[#allocation44_spill] sm:$0xff] }
 0x44f   : > { %10634 = vst [vmem:[#allocation51_spill] sm:$0xff] %v9892_v34  ;;  %3282 = vst [vmem:[#allocation2 + $0x178] sm:$0xff] %v6530_v9  ;;  %v3035_v8 = vmul.bf16 %v9727_v39, %v9892_v34  ;;  %v10639_v34 = vld [vmem:[#allocation58_spill] sm:$0xff]  ;;  %5317 = vmatprep.subr.bf16.mxu1 %v7150_v30  ;;  %v7152_v22 = vcombine.low %v10644_v46, %v10643_v31  ;;  %v9934_v60 = vrot.slane %v4234_v21, %v7764_v37  ;;  %vm5439_vm6 = vcmask 130048  }
 0x450   : > { %v10640_v43 = vmul.bf16 %v10638_v53, %v10639_v34  ;;  %5318 = vmatpush1.bf16.msra.mxu1 %v7149_v3  ;;  %v9937_v40 = vrot.slane %v4241_v27, %v7764_v37  ;;  %v4304_v56 = vpack.i.b16 %v4303_v47, %v4303_v47  ;;  %v10647_v34 = vmul.bf16 %v10645_v19, %v10646_v23  ;;  %v4963_v31 = vld [vmem:[#allocation2 + $0x188] sm:$0xff] }
 0x451   : > { %v6512_v9 = vcombine.low %v9889_v36, %v3035_v8  ;;  %v4197_v29 = vpop.permute.xlu0 %4196  ;;  %v3059_v39 = vpop.permute.xlu1 %3058  ;;  %v4311_v21 = vshrl.u32 %v6611_v57, 16  ;;  %v10654_v47 = vmul.bf16 %v9513_v41, %v9761_v32  ;;  %v7155_v57 = vcombine.low %v9889_v36, %v3113_v42  ;;  %v10656_v32 = vld [vmem:[#allocation29_spill] sm:$0xff] }
 0x452   : > { %v7151_v25 = vcombine.low %v10640_v43, %v10637_v49  ;;  %v9916_v61 = vsel %vm10641_vm4, %v3057_v62, %v3059_v39  ;;  %v9919_v55 = vsel %vm10642_vm9, %v3059_v39, 0  ;;  %v10648_v49 = vld [vmem:[#allocation43_spill] sm:$0xff]  ;;  %v10649_v43 = vld [vmem:[#allocation36_spill] sm:$0xff]  ;;  %v4309_v19 = vrot.slane %v4304_v56, %v7764_v37 }
 0x453   : > { %3049 = vst [vmem:[#allocation2 + $0xd0] sm:$0xff] %v6512_v9  ;;  %v3114_v53 = vmul.bf16 %v9798_v14, %v9916_v61  ;;  %v4454_v50 = vmul.bf16 %v9801_v33, %v9916_v61  ;;  %v4455_v62 = vmul.bf16 %v9811_v10, %v9919_v55  ;;  %v10650_v3 = vmul.bf16 %v10648_v49, %v10649_v43  ;;  %v10668_v43 = vld [vmem:[#allocation42_spill] sm:$0xff] }
 0x454   : > { %5287 = vmatpush2.bf16.msra.mxu0 %v7151_v25  ;;  %v7154_v39 = vcombine.low %v10654_v47, %v10653_v13  ;;  %v4319_v25 = vshrl.u32 %v6612_v11, 16  ;;  %v10655_v41 = vmul.bf16 %v10621_v44, %v9693_v4  ;;  %v10657_v11 = vmul.bf16 %v10616_v18, %v10656_v32  ;;  %v10680_v32 = vld [vmem:[#allocation38_spill] sm:$0xff] }
 0x455   : > { %5288 = vmatprep.subr.bf16.mxu0 %v7152_v22  ;;  %v6518_v5 = vcombine.low %v3113_v42, %v3114_v53  ;;  %v4270_v14 = vpop.permute.xlu0 %4269  ;;  %v4195_v2 = vpop.permute.xlu1 %4194  ;;  %v7153_v30 = vcombine.low %v10650_v3, %v10647_v34  ;;  %v4312_v42 = vpack.i.b16 %v4311_v21, %v4311_v21  ;;  %v10663_v34 = vmul.bf16 %v10629_v0, %v9795_v38  ;;  %v10670_v3 = vld [vmem:[#allocation46_spill] sm:$0xff] }
 0x456   : > { %v4200_v9 = vsel %vm10651_vm10, %v4193_v51, %v4195_v2  ;;  %v4201_v27 = vsel %vm10652_vm12, %v4195_v2, %v4197_v29  ;;  %v7156_v51 = vcombine.low %v3035_v8, %v3114_v53  ;;  %v4301_v2 = vrot.slane %v4296_v45, %v7764_v37 }
 0x457   : > { %3128 = vst [vmem:[#allocation2 + $0x48] sm:$0xff] %v6518_v5  ;;  %v4247_v46 = vmul.bf16 %v9814_v63, %v4200_v9  ;;  %v4248_v22 = vmul.bf16 %v9871_v48, %v4201_v27  ;;  %v7157_v63 = vcombine.low %v10657_v11, %v10655_v41  ;;  %v6726_v48 = vcombine.high %v4963_v31, %v4963_v31  ;;  %v10681_v11 = vld [vmem:[#allocation53_spill] sm:$0xff] }
 0x458   : > { %5289 = vmatpush2.bf16.msra.mxu0 %v7153_v30  ;;  %5319 = vmatprep.subr.bf16.mxu1 %v7156_v51  ;;  %v6725_v5 = vcombine.low %v4963_v31, %v4963_v31  ;;  %v10660_v53 = vmul.bf16 %v9663_v1, %v9851_v26  ;;  %v10661_v45 = vmul.bf16 %v9620_v7, %v9829_v24  ;;  %v10664_v26 = vld [vmem:[#allocation27_spill] sm:$0xff]  ;;  %v10671_v30 = vld [vmem:[#allocation40_spill] sm:$0xff]  ;;  %v10678_v51 = vld [vmem:[#allocation34_spill] sm:$0xff] }
 0x459   : > { %5290 = vmatprep.subr.bf16.mxu0 %v7154_v39  ;;  %v4199_v17 = vpop.permute.xlu0 %4198  ;;  %v4268_v20 = vpop.permute.xlu1 %4267  ;;  %5320 = vmatpush1.bf16.msra.mxu1 %v7155_v57  ;;  %v4320_v56 = vpack.i.b16 %v4319_v25, %v4319_v25  ;;  %v10665_v1 = vld [vmem:[#allocation55_spill] sm:$0xff]  ;;  %v10672_v21 = vmul.bf16 %v10670_v3, %v10671_v30  ;;  %v4317_v13 = vrot.slane %v4312_v42, %v7764_v37  ;;  %v10677_v57 = vld [vmem:[#allocation45_spill] sm:$0xff] }
 0x45a   : > { %v4202_v36 = vsel %vm10658_vm13, %v4197_v29, %v4199_v17  ;;  %v4207_v8 = vsel %vm10659_vm14, %v4199_v17, 0  ;;  %v7158_v4 = vcombine.low %v10661_v45, %v10660_v53  ;;  %6729 = vmatprep.subr.msk.bf16.mxu1 %vm2890_vm8, %v6726_v48  ;;  %v4275_v29 = vsel %vm10662_vm15, %v4268_v20, %v4270_v14  ;;  %v10674_v39 = vld [vmem:[#allocation47_spill] sm:$0xff]  ;;  %v10684_v48 = vld [vmem:[#allocation26_spill] sm:$0xff]  ;;  %v10688_v45 = vld [vmem:[#allocation37_spill] sm:$0xff] }
 0x45b   : > { %v4249_v44 = vmul.bf16 %v9934_v60, %v4202_v36  ;;  %v4250_v18 = vmul.bf16 %v9937_v40, %v4207_v8  ;;  %v10666_v49 = vmul.bf16 %v10664_v26, %v10665_v1  ;;  %v5259_v24 = vsel %vm2890_vm8, %v6725_v5, 0  ;;  %v10667_v60 = vld [vmem:[#allocation48_spill] sm:$0xff]  ;;  %v10675_v25 = vld [vmem:[#allocation31_spill] sm:$0xff]  ;;  %vm10686_vm8 = vmmov %vm10673_vm5 }
 0x45c   : > { %5291 = vmatpush2.bf16.msra.mxu0 %v7157_v63  ;;  %v10669_v40 = vmul.bf16 %v10667_v60, %v10668_v43  ;;  %v4326_v47 = vmul.bf16 %v4301_v2, %v4275_v29  ;;  %v4325_v0 = vrot.slane %v4320_v56, %v7764_v37  ;;  %v10676_v31 = vmul.bf16 %v10674_v39, %v10675_v25  ;;  %v10683_v63 = vld [vmem:[#allocation57_spill] sm:$0xff]  ;;  %v10691_v29 = vld [vmem:[#allocation56_spill] sm:$0xff] }
 0x45d   : > { %5292 = vmatprep.subr.bf16.mxu0 %v7158_v4  ;;  %v4272_v23 = vpop.permute.xlu1 %4271  ;;  %v7159_v7 = vcombine.low %v10666_v49, %v10663_v34  ;;  %5326 = vmatpush2.bf16.msra.mxu1 %v5259_v24  ;;  %v10679_v17 = vmul.bf16 %v10677_v57, %v10678_v51  ;;  %v10685_v5 = vmul.bf16 %v10683_v63, %v10684_v48  ;;  %v10689_v4 = vld [vmem:[#allocation52_spill] sm:$0xff]  ;;  %v10692_v34 = vld [vmem:[#allocation25_spill] sm:$0xff]  ;;  %vm5937_vm13 = vcmask 1040384  }
 0x45e   : > { %v7160_v9 = vcombine.low %v10672_v21, %v10669_v40  ;;  %v4276_v27 = vsel %vm10673_vm5, %v4270_v14, %v4272_v23  ;;  %v10682_v14 = vmul.bf16 %v10680_v32, %v10681_v11  ;;  %v7163_v42 = vcombine.low %v4247_v46, %v4326_v47  ;;  %v7115_v46 = vld [vmem:[%s10542_s3] sm:$0xff] }
 0x45f   : > { %v4327_v38 = vmul.bf16 %v4309_v19, %v4276_v27  ;;  %v7161_v20 = vcombine.low %v10679_v17, %v10676_v31  ;;  %v10690_v56 = vmul.bf16 %v10688_v45, %v10689_v4  ;;  %v10693_v26 = vmul.bf16 %v10691_v29, %v10692_v34  ;;  %v4966_v51 = vld [vmem:[%s10351_s10] sm:$0xff] }
 0x460   : > { %5293 = vmatpush2.bf16.msra.mxu0 %v7159_v7  ;;  %5327 = vmatprep.subr.bf16.mxu1 %v7160_v9  ;;  %v7162_v2 = vcombine.low %v10685_v5, %v10682_v14  ;;  %v10694_v49 = vmul.bf16 %v9754_v59, %v9857_v28  ;;  %v10696_v24 = vmul.bf16 %v9742_v58, %v9854_v12  ;;  %v10700_v58 = vld [vmem:[#allocation49_spill] sm:$0xff]  ;;  %v10701_v28 = vld [vmem:[#allocation51_spill] sm:$0xff]  ;;  %vm5954_vm14 = vcmask 1041408  }
 0x461   : > { %v4274_v41 = vpop.permute.xlu1 %4273  ;;  %5328 = vmatpush2.bf16.msra.mxu1 %v7161_v20  ;;  %v7164_v53 = vcombine.low %v4248_v22, %v4327_v38  ;;  %v7165_v1 = vcombine.low %v10693_v26, %v10690_v56  ;;  %v6669_v22 = vcombine.low %v7115_v46, %v7115_v46  ;;  %v10697_v60 = vmul.bf16 %v9644_v16, %v9832_v15  ;;  %v5431_v17 = vld [vmem:[%s10352_s11] sm:$0xff] }
 0x462   : > { %v4277_v19 = vsel %vm10686_vm8, %v4272_v23, %v4274_v41  ;;  %v4282_v37 = vsel %vm10687_vm11, %v4274_v41, 0  ;;  %5329 = vmatprep.subr.bf16.mxu1 %v7162_v2  ;;  %v10695_v23 = vmul.bf16 %v9647_v52, %v9835_v6  ;;  %v10698_v52 = vmul.bf16 %v9783_v35, %v9895_v54  ;;  %v4965_v2 = vld [vmem:[%s10350_s9] sm:$0xff] }
 0x463   : > { %v4328_v36 = vmul.bf16 %v4317_v13, %v4277_v19  ;;  %v4329_v8 = vmul.bf16 %v4325_v0, %v4282_v37  ;;  %5294 = vmatprep.subr.bf16.mxu0 %v7164_v53  ;;  %v7167_v43 = vcombine.low %v10697_v60, %v10696_v24  ;;  %v10699_v6 = vmov 0  }
 0x464   : > { %v7166_v7 = vcombine.low %v10695_v23, %v10694_v49  ;;  %5295 = vmatpush2.bf16.msra.mxu0 %v7163_v42  ;;  %v7168_v59 = vcombine.low %v10698_v52, %v4455_v62  ;;  %v10702_v12 = vmul.bf16 %v10700_v58, %v10701_v28  ;;  %v7116_v58 = vld [vmem:[%s8713_s29 + $0x20] sm:$0xff]  ;;  %vm5971_vm15 = vcmask 1042432  }
 0x465   : > { %5330 = vmatpush2.bf16.msra.mxu1 %v7165_v1  ;;  %v7170_v15 = vcombine.low %v4250_v18, %v4329_v8  ;;  %v7171_v40 = vcombine.low %v4249_v44, %v4328_v36 }
 0x466   : > { %5331 = vmatprep.subr.bf16.mxu1 %v7166_v7  ;;  %v7169_v16 = vcombine.low %v10702_v12, %v4454_v50  ;;  %v4970_v55 = vpop.permute.xlu0 %4969  ;;  %v7117_v12 = vld [vmem:[%s8713_s29 + $0x30] sm:$0xff] }
 0x467   : > { %5297 = vmatmul.mubr.bf16.vlgmr.msra.gmra.mxu0 %v6669_v22 }
 0x468   : > { %5475 = vmatprep.mubr.bf16.mxu0 %v10699_v6 }
 0x469   : > { %5332 = vmatpush2.bf16.msra.mxu1 %v7167_v43 }
 0x46a   : > { %5333 = vmatprep.subr.bf16.mxu1 %v7168_v59 }
 0x46d   : > { %5334 = vmatpush2.bf16.msra.mxu1 %v7169_v16 }
 0x46e   : > { %5335 = vmatprep.subr.bf16.mxu1 %v7170_v15  ;;  %v7118_v15 = vld [vmem:[%s8713_s29 + $0x28] sm:$0xff] }
 0x471   : > { %5336 = vmatpush2.bf16.msra.mxu1 %v7171_v40 }
 0x474   : > { %5338 = vmatmul.mubr.bf16.vlgmr.msra.gmra.mxu1 %v6669_v22 }
 0x475   : > { %5516 = vmatprep.mubr.bf16.mxu1 %v10699_v6 }
 0x527   : > { %v5298_v35 = vpop.f32.mrf.mxu0 }
 0x528   : > { %v5299_v30 = vadd.f32 %v5298_v35, %v4970_v55  ;;  %v7119_v35 = vld [vmem:[%s8713_s29 + $0x38] sm:$0xff] }
 0x529   : > { %v5300_v10 = vpop.f32.mrf.mxu0 }
 0x52a   : > { %v5301_v3 = vadd.f32 %v5300_v10, %v4970_v55  ;;  %v5352_v21 = vmul.f32 %v5299_v30, %v5299_v30 }
 0x52b   : > { %v5302_v54 = vpop.f32.mrf.mxu0 }
 0x52c   : > { %v5353_v33 = vmul.f32 %v5301_v3, %v5301_v3  ;;  %v5346_v9 = vadd.f32 %v5301_v3, %v5299_v30  ;;  %v5426_v54 = vld [vmem:[%s10703_s4] sm:$0xf] }
 0x52d   : > { %v5303_v62 = vpop.f32.mrf.mxu0 }
 0x52e   : > { %v5356_v27 = vadd.f32 %v5353_v33, %v5352_v21 }
 0x534   : > { %v5339_v61 = vpop.f32.mrf.mxu1 }
 0x535   : > { %v5340_v50 = vadd.f32 %v5339_v61, %v4970_v55 }
 0x536   : > { %v5341_v18 = vpop.f32.mrf.mxu1 }
 0x537   : > { %v5347_v13 = vadd.f32 %v5346_v9, %v5340_v50  ;;  %v5354_v44 = vmul.f32 %v5340_v50, %v5340_v50  ;;  %v5342_v47 = vadd.f32 %v5341_v18, %v4970_v55 }
 0x538   : > { %v5343_v38 = vpop.f32.mrf.mxu1 }
 0x539   : > { %v5355_v0 = vmul.f32 %v5342_v47, %v5342_v47  ;;  %v5348_v39 = vadd.f32 %v5347_v13, %v5342_v47  ;;  %v5357_v25 = vadd.f32 %v5356_v27, %v5354_v44 }
 0x53a   : > { %v5344_v31 = vpop.f32.mrf.mxu1 }
 0x53b   : > { %5349 = vadd.xlane.f32.xlu1 %v5348_v39  ;;  %v5358_v57 = vadd.f32 %v5357_v25, %v5355_v0 }
 0x53d   : > { %5359 = vadd.xlane.f32.xlu0 %v5358_v57 }
 0x54c   : > { %5383 = vperm.xlu1 %6844, %v4966_v51  }
 0x550   : > { %5436 = vperm.xlu1 %6844, %v5431_v17  }
 0x5c4   : > { %v5350_v20 = vpop.xlane.xlu1 %5349 }
 0x5c5   : > { %v5351_v41 = vmul.f32 0.001953125, %v5350_v20 }
 0x5c6   : > { %v5360_v32 = vpop.xlane.xlu0 %5359 }
 0x5c7   : > { %v5361_v11 = vmul.f32 0.001953125, %v5360_v32  ;;  %v5362_v14 = vmul.f32 %v5351_v41, %v5351_v41  ;;  %v5368_v36 = vsub.f32 %v5299_v30, %v5351_v41  ;;  %v5369_v8 = vsub.f32 %v5301_v3, %v5351_v41 }
 0x5c8   : > { %v5370_v42 = vsub.f32 %v5340_v50, %v5351_v41  ;;  %v5371_v53 = vsub.f32 %v5342_v47, %v5351_v41  ;;  %v5384_v26 = vpop.permute.xlu1 %5383  ;;  %v5433_v41 = vld [vmem:[%s10354_s13] sm:$0xff] }
 0x5c9   : > { %v5363_v63 = vsub.f32 %v5361_v11, %v5362_v14 }
 0x5cb   : > { %v5364_v48 = vmax.f32 %v5363_v63, 0.0 }
 0x5cc   : > { %v5437_v55 = vpop.permute.xlu1 %5436 }
 0x5cd   : > { %v5365_v5 = vadd.f32 1e-05, %v5364_v48 }
 0x5cf   : > { %7109 = vrsqrt.f32 %v5365_v5 }
 0x5dc   : > { %v7110_v19 = vpop.eup %7109 }
 0x5dd   : > { %v5367_v37 = vmul.f32 %v7110_v19, %v4965_v2 }
 0x5df   : > { %5374 = vperm.xlu0 %6843, %v5367_v37   ;;  %v5432_v37 = vld [vmem:[%s10353_s12] sm:$0xff] }
 0x65a   : > { %v5375_v45 = vpop.permute.xlu0 %5374 }
 0x65b   : > { %v5377_v4 = vmul.f32 %v5375_v45, %v5368_v36  ;;  %v5378_v56 = vmul.f32 %v5375_v45, %v5369_v8  ;;  %v5379_v29 = vmul.f32 %v5375_v45, %v5370_v42  ;;  %v5380_v34 = vmul.f32 %v5375_v45, %v5371_v53 }
 0x65d   : > { %v5386_v1 = vadd.f32 %v5384_v26, %v5377_v4  ;;  %v5387_v49 = vadd.f32 %v5384_v26, %v5378_v56  ;;  %v5388_v23 = vadd.f32 %v5384_v26, %v5379_v29  ;;  %v5389_v7 = vadd.f32 %v5384_v26, %v5380_v34 }
 0x65f   : > { %v5394_v46 = vmul.f32 0.01, %v5386_v1  ;;  %v5396_v22 = vmul.f32 0.01, %v5388_v23  ;;  %vm5391_vm3 = vcmp.ge.f32.partialorder %v5387_v49, 0.0  ;;  %vm5393_vm0 = vcmp.ge.f32.partialorder %v5389_v7, 0.0 }
 0x660   : > { %v5395_v24 = vmul.f32 0.01, %v5387_v49  ;;  %v5397_v60 = vmul.f32 0.01, %v5389_v7  ;;  %vm5390_vm1 = vcmp.ge.f32.partialorder %v5386_v1, 0.0  ;;  %vm5392_vm2 = vcmp.ge.f32.partialorder %v5388_v23, 0.0 }
 0x661   : > { %v5398_v43 = vsel %vm5390_vm1, %v5386_v1, %v5394_v46  ;;  %v5400_v52 = vsel %vm5392_vm2, %v5388_v23, %v5396_v22 }
 0x662   : > { %v5399_v59 = vsel %vm5391_vm3, %v5387_v49, %v5395_v24  ;;  %v5401_v6 = vsel %vm5393_vm0, %v5389_v7, %v5397_v60  ;;  %5418 = vst [vmem:[%s8713_s29] sm:$0xff] %v5398_v43  ;;  %v5427_v28 = vpack.c.bf16 %v7116_v58, %v5398_v43  ;;  %5420 = vst [vmem:[%s8713_s29 + $0x10] sm:$0xff] %v5400_v52 }
 0x663   : > { %v5429_v16 = vpack.c.bf16 %v7117_v12, %v5400_v52  ;;  %5419 = vst [vmem:[%s8713_s29 + $0x8] sm:$0xff] %v5399_v59  ;;  %v5428_v40 = vpack.c.bf16 %v7118_v15, %v5399_v59  ;;  %5421 = vst [vmem:[%s8713_s29 + $0x18] sm:$0xff] %v5401_v6  ;;  %v5430_v10 = vpack.c.bf16 %v7119_v35, %v5401_v6  ;;  %s6058_s29 = sand.u32 1, %s7519_s28  }
 0x664   : > { %s10168_s21 = scalar_lea.sflag [#allocation10], %s6058_s29 }
 0x665   : > { %5457 = vmatprep.subr.bf16.mxu0 %v5428_v40  ;;  %5498 = vmatprep.subr.bf16.mxu1 %v5430_v10 }
 0x666   : > { %5458 = vmatpush1.bf16.msra.mxu0 %v5427_v28  ;;  %5499 = vmatpush1.bf16.msra.mxu1 %v5429_v16 }
 0x669   : > { %6731 = vmatmul.mubr.msk.bf16.vlgmr.msra.gmra.mxu0 %vm5439_vm6, %v5426_v54  ;;  %6732 = vmatmul.mubr.msk.bf16.vlgmr.msra.gmra.mxu1 %vm5439_vm6, %v5426_v54 }
 0x729   : > { %v5477_v62 = vpop.f32.mrf.mxu0  ;;  %v5518_v3 = vpop.f32.mrf.mxu1 }
 0x72a   : > { %v5478_v30 = vadd.f32 %v5477_v62, %v5437_v55  ;;  %v5519_v21 = vadd.f32 %v5518_v3, %v5437_v55 }
 0x72b   : > { %v5479_v33 = vpop.f32.mrf.mxu0  ;;  %v5520_v61 = vpop.f32.mrf.mxu1 }
 0x72c   : > { %v5480_v9 = vadd.f32 %v5479_v33, %v5437_v55  ;;  %v5531_v27 = vmul.f32 %v5478_v30, %v5478_v30  ;;  %v5521_v47 = vadd.f32 %v5520_v61, %v5437_v55  ;;  %v5533_v39 = vmul.f32 %v5519_v21, %v5519_v21 }
 0x72d   : > { %v5481_v50 = vpop.f32.mrf.mxu0  ;;  %v5522_v18 = vpop.f32.mrf.mxu1 }
 0x72e   : > { %v5525_v13 = vadd.f32 %v5480_v9, %v5478_v30  ;;  %v5532_v44 = vmul.f32 %v5480_v9, %v5480_v9  ;;  %v5534_v57 = vmul.f32 %v5521_v47, %v5521_v47 }
 0x72f   : > { %v5482_v38 = vpop.f32.mrf.mxu0  ;;  %v5523_v0 = vpop.f32.mrf.mxu1 }
 0x730   : > { %v5535_v25 = vadd.f32 %v5532_v44, %v5531_v27  ;;  %v5526_v31 = vadd.f32 %v5525_v13, %v5519_v21 }
 0x732   : > { %v5527_v51 = vadd.f32 %v5526_v31, %v5521_v47  ;;  %v5536_v17 = vadd.f32 %v5535_v25, %v5533_v39 }
 0x734   : > { %5528 = vadd.xlane.f32.xlu0 %v5527_v51  ;;  %v5537_v20 = vadd.f32 %v5536_v17, %v5534_v57 }
 0x736   : > { %5538 = vadd.xlane.f32.xlu1 %v5537_v20 }
 0x747   : > { %5562 = vperm.xlu1 %6844, %v5433_v41  }
 0x7bd   : > { %v5529_v32 = vpop.xlane.xlu0 %5528 }
 0x7be   : > { %v5530_v11 = vmul.f32 0.001953125, %v5529_v32 }
 0x7bf   : > { %v5539_v14 = vpop.xlane.xlu1 %5538 }
 0x7c0   : > { %v5540_v63 = vmul.f32 0.001953125, %v5539_v14  ;;  %v5541_v48 = vmul.f32 %v5530_v11, %v5530_v11  ;;  %v5547_v42 = vsub.f32 %v5478_v30, %v5530_v11  ;;  %v5548_v53 = vsub.f32 %v5480_v9, %v5530_v11 }
 0x7c1   : > { %v5549_v45 = vsub.f32 %v5519_v21, %v5530_v11  ;;  %v5550_v4 = vsub.f32 %v5521_v47, %v5530_v11 }
 0x7c2   : > { %v5542_v5 = vsub.f32 %v5540_v63, %v5541_v48 }
 0x7c3   : > { %v5563_v49 = vpop.permute.xlu1 %5562 }
 0x7c4   : > { %v5543_v2 = vmax.f32 %v5542_v5, 0.0 }
 0x7c6   : > { %v5544_v19 = vadd.f32 1e-05, %v5543_v2 }
 0x7c8   : > { %7111 = vrsqrt.f32 %v5544_v19 }
 0x7d5   : > { %v7112_v36 = vpop.eup %7111 }
 0x7d6   : > { %v5546_v8 = vmul.f32 %v7112_v36, %v5432_v37 }
 0x7d8   : > { %5553 = vperm.xlu0 %6843, %v5546_v8  }
 0x853   : > { %v5554_v56 = vpop.permute.xlu0 %5553 }
 0x854   : > { %v5556_v29 = vmul.f32 %v5554_v56, %v5547_v42  ;;  %v5557_v34 = vmul.f32 %v5554_v56, %v5548_v53  ;;  %v5558_v26 = vmul.f32 %v5554_v56, %v5549_v45  ;;  %v5559_v1 = vmul.f32 %v5554_v56, %v5550_v4 }
 0x856   : > { %v5565_v23 = vadd.f32 %v5563_v49, %v5556_v29  ;;  %v5566_v7 = vadd.f32 %v5563_v49, %v5557_v34  ;;  %v5567_v46 = vadd.f32 %v5563_v49, %v5558_v26  ;;  %v5568_v22 = vadd.f32 %v5563_v49, %v5559_v1 }
 0x858   : > { %vm5570_vm4 = vcmp.ge.f32.partialorder %v5566_v7, 0.0  ;;  %v5574_v24 = vmul.f32 0.01, %v5566_v7  ;;  %vm5569_vm9 = vcmp.ge.f32.partialorder %v5565_v23, 0.0  ;;  %v5573_v60 = vmul.f32 0.01, %v5565_v23 }
 0x859   : > { %vm5572_vm10 = vcmp.ge.f32.partialorder %v5568_v22, 0.0  ;;  %v5576_v43 = vmul.f32 0.01, %v5568_v22  ;;  %vm5571_vm12 = vcmp.ge.f32.partialorder %v5567_v46, 0.0  ;;  %v5575_v52 = vmul.f32 0.01, %v5567_v46 }
 0x85a   : > { %v5578_v59 = vsel %vm5570_vm4, %v5566_v7, %v5574_v24  ;;  %v5577_v6 = vsel %vm5569_vm9, %v5565_v23, %v5573_v60 }
 0x85b   : > { %5617 = vxpose.xlu1.b32.start.end [1/1] (short) %v5578_v59, 128  ;;  %5582 = vst [vmem:[%s10071_s0 + $0x8] sm:$0xff] %v5578_v59  ;;  %5585 = vxpose.xlu0.b32.start.end [1/1] (short) %v5577_v6, 128  ;;  %5581 = vst [vmem:[%s10071_s0] sm:$0xff] %v5577_v6  ;;  %v5580_v58 = vsel %vm5572_vm10, %v5568_v22, %v5576_v43  ;;  %v5579_v28 = vsel %vm5571_vm12, %v5567_v46, %v5575_v52 }
 0x85c   : > { %5584 = vst [vmem:[%s10071_s0 + $0x18] sm:$0xff] %v5580_v58  ;;  %5583 = vst [vmem:[%s10071_s0 + $0x10] sm:$0xff] %v5579_v28  ;;  %s7232_s0 = scalar_lea.vmem %s7231_s23, 2048 }
 0x85d   : > { %p7234_p2 = scmp.lt.s32.totalorder %s7232_s0, %s7226_s24 }
 0x85f   : > { %p7235_p0 = por %p7234_p2, %p7233_p1 }
 0x861   : > { %p7236_p3 = pnand %p7235_p0, %p7229_p10 }
 0x898   : > { %5681 = vxpose.xlu1.b32.start.end [1/1] (short) %v5580_v58, 128  ;;  %5649 = vxpose.xlu0.b32.start.end [1/1] (short) %v5579_v28, 128 }
 0x8d7   : > { %v5633_v12 = vpop.trf.xlu1  ;;  %v5601_v16 = vpop.trf.xlu0 }
 0x8db   : > { %v5634_v15 = vpop.trf.xlu1  ;;  %v5602_v40 = vpop.trf.xlu0 }
 0x8df   : > { %v5635_v35 = vpop.trf.xlu1  ;;  %v5603_v10 = vpop.trf.xlu0 }
 0x8e3   : > { %v5636_v54 = vpop.trf.xlu1  ;;  %v5604_v55 = vpop.trf.xlu0 }
 0x8e7   : > { %v5637_v62 = vpop.trf.xlu1  ;;  %v5605_v3 = vpop.trf.xlu0 }
 0x8eb   : > { %v5638_v30 = vpop.trf.xlu1  ;;  %v5606_v33 = vpop.trf.xlu0 }
 0x8ef   : > { %v10077_v61 = vpop.trf.xlu1  ;;  %v10079_v21 = vpop.trf.xlu0 }
 0x8f3   : > { %v10081_v9 = vpop.trf.xlu1  ;;  %v10083_v50 = vpop.trf.xlu0 }
 0x8f7   : > { %v5641_v18 = vpop.trf.xlu1  ;;  %v5609_v27 = vpop.trf.xlu0 }
 0x8f8   : > { %v5713_v47 = vmax.f32 %v5601_v16, %v5609_v27  ;;  %v5721_v37 = vmax.f32 %v5633_v12, %v5641_v18 }
 0x8fb   : > { %v5642_v13 = vpop.trf.xlu1  ;;  %v5610_v44 = vpop.trf.xlu0 }
 0x8fc   : > { %v5714_v38 = vmax.f32 %v5602_v40, %v5610_v44  ;;  %v5722_v2 = vmax.f32 %v5634_v15, %v5642_v13 }
 0x8fe   : > { %v5745_v0 = vmax.f32 %v5713_v47, %v5714_v38  ;;  %v5749_v26 = vmax.f32 %v5721_v37, %v5722_v2 }
 0x8ff   : > { %v5643_v39 = vpop.trf.xlu1  ;;  %v5611_v25 = vpop.trf.xlu0 }
 0x900   : > { %v5777_v31 = vrot.slane %v5745_v0, 1  ;;  %v5715_v20 = vmax.f32 %v5603_v10, %v5611_v25  ;;  %v5723_v19 = vmax.f32 %v5635_v35, %v5643_v39  ;;  %v5781_v28 = vrot.slane %v5749_v26, 1 }
 0x902   : > { %v5809_v17 = vmax.f32 %v5745_v0, %v5777_v31  ;;  %v5813_v18 = vmax.f32 %v5749_v26, %v5781_v28 }
 0x903   : > { %v5644_v57 = vpop.trf.xlu1  ;;  %v5612_v51 = vpop.trf.xlu0 }
 0x904   : > { %v5716_v41 = vmax.f32 %v5604_v55, %v5612_v51  ;;  %v5841_v63 = vrot.slane %v5809_v17, 1  ;;  %v5724_v48 = vmax.f32 %v5636_v54, %v5644_v57  ;;  %v5873_v36 = vrot.slane %v5809_v17, 2 }
 0x905   : > { %v5905_v60 = vrot.slane %v5809_v17, 3 }
 0x906   : > { %v5746_v32 = vmax.f32 %v5715_v20, %v5716_v41  ;;  %v5938_v45 = vsel %vm5937_vm13, %v5809_v17, %v5841_v63  ;;  %v5750_v4 = vmax.f32 %v5723_v19, %v5724_v48  ;;  %v5877_v63 = vrot.slane %v5813_v18, 2 }
 0x907   : > { %v5645_v11 = vpop.trf.xlu1  ;;  %v5613_v14 = vpop.trf.xlu0  ;;  %v5955_v24 = vsel %vm5954_vm14, %v5938_v45, %v5873_v36 }
 0x908   : > { %v5778_v5 = vrot.slane %v5746_v32, 1  ;;  %v5717_v56 = vmax.f32 %v5605_v3, %v5613_v14  ;;  %v5782_v43 = vrot.slane %v5750_v4, 1  ;;  %v5725_v6 = vmax.f32 %v5637_v62, %v5645_v11 }
 0x909   : > { %v5972_v12 = vsel %vm5971_vm15, %v5955_v24, %v5905_v60 }
 0x90a   : > { %v5810_v8 = vmax.f32 %v5746_v32, %v5778_v5  ;;  %v5814_v55 = vmax.f32 %v5750_v4, %v5782_v43 }
 0x90b   : > { %v5646_v42 = vpop.trf.xlu1  ;;  %v5614_v53 = vpop.trf.xlu0 }
 0x90c   : > { %v5718_v29 = vmax.f32 %v5606_v33, %v5614_v53  ;;  %v5842_v34 = vrot.slane %v5810_v8, 1  ;;  %v5874_v1 = vrot.slane %v5810_v8, 2  ;;  %v5726_v7 = vmax.f32 %v5638_v30, %v5646_v42 }
 0x90d   : > { %v5906_v52 = vrot.slane %v5810_v8, 3  ;;  %v5846_v39 = vrot.slane %v5814_v55, 1  ;;  %v5878_v41 = vrot.slane %v5814_v55, 2 }
 0x90e   : > { %v5747_v49 = vmax.f32 %v5717_v56, %v5718_v29  ;;  %v5939_v23 = vsel %vm5937_vm13, %v5810_v8, %v5842_v34  ;;  %v5751_v15 = vmax.f32 %v5725_v6, %v5726_v7  ;;  %v5910_v29 = vrot.slane %v5814_v55, 3 }
 0x90f   : > { %v5647_v46 = vpop.trf.xlu1  ;;  %v5615_v22 = vpop.trf.xlu0  ;;  %v5956_v58 = vsel %vm5954_vm14, %v5939_v23, %v5874_v1  ;;  %v5943_v32 = vsel %vm5937_vm13, %v5814_v55, %v5846_v39 }
 0x910   : > { %v5779_v59 = vrot.slane %v5747_v49, 1  ;;  %v5973_v16 = vsel %vm5971_vm15, %v5956_v58, %v5906_v52  ;;  %v5727_v3 = vmax.f32 %v10077_v61, %v5647_v46  ;;  %v5719_v30 = vmax.f32 %v10079_v21, %v5615_v22 }
 0x911   : > { %v6004_v10 = vcombine.low %v5972_v12, %v5973_v16  ;;  %v5783_v27 = vrot.slane %v5751_v15, 1  ;;  %v5845_v61 = vrot.slane %v5813_v18, 1  ;;  %v5960_v56 = vsel %vm5954_vm14, %v5943_v32, %v5878_v41 }
 0x912   : > { %v5811_v40 = vmax.f32 %v5747_v49, %v5779_v59  ;;  %v5909_v46 = vrot.slane %v5813_v18, 3  ;;  %v5977_v43 = vsel %vm5971_vm15, %v5960_v56, %v5910_v29 }
 0x913   : > { %v5648_v35 = vpop.trf.xlu1  ;;  %v5616_v54 = vpop.trf.xlu0  ;;  %6020 = vxpose.xlu0.b32.start [1/8] (short) (narrow) %v6004_v10, 8  ;;  %v5815_v21 = vmax.f32 %v5751_v15, %v5783_v27  ;;  %v5942_v48 = vsel %vm5937_vm13, %v5813_v18, %v5845_v61 }
 0x914   : > { %v5728_v33 = vmax.f32 %v10081_v9, %v5648_v35  ;;  %v5720_v62 = vmax.f32 %v10083_v50, %v5616_v54  ;;  %v5843_v13 = vrot.slane %v5811_v40, 1  ;;  %v5875_v57 = vrot.slane %v5811_v40, 2 }
 0x915   : > { %v5847_v19 = vrot.slane %v5815_v21, 1  ;;  %v5907_v37 = vrot.slane %v5811_v40, 3  ;;  %v5879_v49 = vrot.slane %v5815_v21, 2  ;;  %v5959_v7 = vsel %vm5954_vm14, %v5942_v48, %v5877_v63 }
 0x916   : > { %v5752_v44 = vmax.f32 %v5727_v3, %v5728_v33  ;;  %v5748_v47 = vmax.f32 %v5719_v30, %v5720_v62  ;;  %v5940_v9 = vsel %vm5937_vm13, %v5811_v40, %v5843_v13  ;;  %v5976_v6 = vsel %vm5971_vm15, %v5959_v7, %v5909_v46 }
 0x917   : > { %v10095_v38 = vpop.trf.xlu1  ;;  %v10097_v0 = vpop.trf.xlu0  ;;  %v5957_v2 = vsel %vm5954_vm14, %v5940_v9, %v5875_v57  ;;  %v5944_v22 = vsel %vm5937_vm13, %v5815_v21, %v5847_v19  ;;  %v6006_v58 = vcombine.low %v5976_v6, %v5977_v43  ;;  %v5911_v12 = vrot.slane %v5815_v21, 3 }
 0x918   : > { %v5784_v25 = vrot.slane %v5752_v44, 1  ;;  %v5780_v31 = vrot.slane %v5748_v47, 1  ;;  %v5974_v26 = vsel %vm5971_vm15, %v5957_v2, %v5907_v37  ;;  %v5961_v28 = vsel %vm5954_vm14, %v5944_v22, %v5879_v49 }
 0x919   : > { %v5978_v35 = vsel %vm5971_vm15, %v5961_v28, %v5911_v12 }
 0x91a   : > { %v5816_v51 = vmax.f32 %v5752_v44, %v5784_v25  ;;  %v5812_v17 = vmax.f32 %v5748_v47, %v5780_v31 }
 0x91b   : > { %v10100_v50 = vpop.trf.xlu1  ;;  %v5666_v20 = vpop.trf.xlu0 }
 0x91c   : > { %v5848_v11 = vrot.slane %v5816_v51, 1  ;;  %v5844_v14 = vrot.slane %v5812_v17, 1  ;;  %v5876_v5 = vrot.slane %v5812_v17, 2  ;;  %v5908_v36 = vrot.slane %v5812_v17, 3 }
 0x91d   : > { %v5880_v45 = vrot.slane %v5816_v51, 2  ;;  %v5912_v59 = vrot.slane %v5816_v51, 3 }
 0x91e   : > { %v5941_v8 = vsel %vm5937_vm13, %v5812_v17, %v5844_v14  ;;  %v5945_v34 = vsel %vm5937_vm13, %v5816_v51, %v5848_v11 }
 0x91f   : > { %v10106_v42 = vpop.trf.xlu1  ;;  %v5667_v53 = vpop.trf.xlu0  ;;  %v5958_v4 = vsel %vm5954_vm14, %v5941_v8, %v5876_v5  ;;  %v5962_v52 = vsel %vm5954_vm14, %v5945_v34, %v5880_v45 }
 0x920   : > { %v5975_v1 = vsel %vm5971_vm15, %v5958_v4, %v5908_v36  ;;  %v5979_v40 = vsel %vm5971_vm15, %v5962_v52, %v5912_v59 }
 0x921   : > { %v6005_v23 = vcombine.low %v5974_v26, %v5975_v1  ;;  %v6007_v10 = vcombine.low %v5978_v35, %v5979_v40 }
 0x923   : > { %v5700_v24 = vpop.trf.xlu1  ;;  %v5668_v60 = vpop.trf.xlu0  ;;  %6021 = vxpose.xlu0.b32.cont [2/8] (short) (narrow) %v6005_v23, 8 }
 0x927   : > { %v10119_v16 = vpop.trf.xlu1  ;;  %v5669_v15 = vpop.trf.xlu0  ;;  %6022 = vxpose.xlu0.b32.cont [3/8] (short) (narrow) %v6006_v58, 8 }
 0x92b   : > { %v10123_v54 = vpop.trf.xlu1  ;;  %v5670_v55 = vpop.trf.xlu0  ;;  %6023 = vxpose.xlu0.b32.cont [4/8] (short) (narrow) %v6007_v10, 8 }
 0x92f   : > { %v10125_v3 = vpop.trf.xlu1  ;;  %v10127_v30 = vpop.trf.xlu0 }
 0x933   : > { %v10129_v33 = vpop.trf.xlu1  ;;  %v10131_v62 = vpop.trf.xlu0 }
 0x937   : > { %v5705_v18 = vpop.trf.xlu1  ;;  %v5673_v27 = vpop.trf.xlu0 }
 0x938   : > { %v5729_v47 = vmax.f32 %v10097_v0, %v5673_v27  ;;  %v5737_v2 = vmax.f32 %v10095_v38, %v5705_v18 }
 0x93b   : > { %v5706_v13 = vpop.trf.xlu1  ;;  %v5674_v44 = vpop.trf.xlu0 }
 0x93c   : > { %v5730_v39 = vmax.f32 %v5666_v20, %v5674_v44  ;;  %v5738_v48 = vmax.f32 %v10100_v50, %v5706_v13 }
 0x93e   : > { %v5753_v25 = vmax.f32 %v5729_v47, %v5730_v39  ;;  %v10153_v38 = vmax.f32 %v5737_v2, %v5738_v48 }
 0x93f   : > { %v5707_v31 = vpop.trf.xlu1  ;;  %v5675_v61 = vpop.trf.xlu0 }
 0x940   : > { %v5785_v57 = vrot.slane %v5753_v25, 1  ;;  %v5731_v17 = vmax.f32 %v5667_v53, %v5675_v61  ;;  %v5739_v5 = vmax.f32 %v10106_v42, %v5707_v31 }
 0x942   : > { %v10134_v51 = vmax.f32 %v5753_v25, %v5785_v57 }
 0x943   : > { %v5708_v21 = vpop.trf.xlu1  ;;  %v5676_v9 = vpop.trf.xlu0 }
 0x944   : > { %v5732_v41 = vmax.f32 %v5668_v60, %v5676_v9  ;;  %v5849_v63 = vrot.slane %v10134_v51, 1  ;;  %v5740_v0 = vmax.f32 %v5700_v24, %v5708_v21  ;;  %v5881_v19 = vrot.slane %v10134_v51, 2 }
 0x945   : > { %v5913_v7 = vrot.slane %v10134_v51, 3 }
 0x946   : > { %v5754_v32 = vmax.f32 %v5731_v17, %v5732_v41  ;;  %v5946_v53 = vsel %vm5937_vm13, %v10134_v51, %v5849_v63  ;;  %v5758_v45 = vmax.f32 %v5739_v5, %v5740_v0 }
 0x947   : > { %v10136_v11 = vpop.trf.xlu1  ;;  %v5677_v14 = vpop.trf.xlu0  ;;  %v5963_v23 = vsel %vm5954_vm14, %v5946_v53, %v5881_v19 }
 0x948   : > { %v5786_v20 = vrot.slane %v5754_v32, 1  ;;  %v5733_v4 = vmax.f32 %v5669_v15, %v5677_v14  ;;  %v5790_v46 = vrot.slane %v5758_v45, 1 }
 0x94a   : > { %v5818_v37 = vmax.f32 %v5754_v32, %v5786_v20 }
 0x94b   : > { %v5710_v36 = vpop.trf.xlu1  ;;  %v5678_v8 = vpop.trf.xlu0 }
 0x94c   : > { %v5734_v56 = vmax.f32 %v5670_v55, %v5678_v8  ;;  %v5850_v50 = vrot.slane %v5818_v37, 1  ;;  %v5882_v42 = vrot.slane %v5818_v37, 2  ;;  %v5742_v26 = vmax.f32 %v10123_v54, %v5710_v36 }
 0x94d   : > { %v5914_v22 = vrot.slane %v5818_v37, 3 }
 0x94e   : > { %v5755_v29 = vmax.f32 %v5733_v4, %v5734_v56  ;;  %v5947_v34 = vsel %vm5937_vm13, %v5818_v37, %v5850_v50 }
 0x94f   : > { %v10162_v1 = vpop.trf.xlu1  ;;  %v10164_v49 = vpop.trf.xlu0 }
 0x950   : > { %v5787_v24 = vrot.slane %v5755_v29, 1 }
 0x951   : > { %7239 = shalt.err (!%p7236_p3)
}
 0x952   : > { %s7240_s29 = scalar_lea.hbm %s10158_s15, 1024  ;;  %s7244_s1 = scalar_lea.hbm %s10705_s18, 2048 }
 0x953   : > { %p7241_p12 = scmp.ne.s32.totalorder %s10158_s15, %s7240_s29  ;;  %p7245_p6 = scmp.lt.s32.totalorder %s10158_s15, %s10705_s18 }
 0x954   : > { %p7246_p4 = scmp.lt.s32.totalorder %s7244_s1, %s7240_s29 }
 0x955   : > { %p7242_p5 = pnand %p7241_p12, %p10706_p11 }
 0x956   : > { %p7247_p8 = por %p7246_p4, %p7245_p6 }
 0x957   : > { %p7243_p7 = pneg %p7242_p5 }
 0x959   : > { %p7248_p9 = pnand %p7247_p8, %p7243_p7 }
 0x95b   : > { %7251 = shalt.err (!%p7248_p9)
}
 0x95c   : > { %s7403_s24 = smov 512   ;;  %s7404_s23 = smov 32   ;;  %v5741_v60 = vmax.f32 %v10119_v16, %v10136_v11  ;;  %v5964_v43 = vsel %vm5954_vm14, %v5947_v34, %v5882_v42  ;;  %v5789_v52 = vrot.slane %v10153_v38, 1  ;;  %v5980_v59 = vsel %vm5971_vm15, %v5963_v23, %v5913_v7  ;;  %v10208_v12 = vpop.trf.xlu1  ;;  %v10210_v15 = vpop.trf.xlu0 }
 0x95d   : > { %6757 = dma.vmem_to_hbm [thread:$0]  (%p10706_p11), %s10145_s30, 1024, %s10158_s15, %s10168_s21, %s7403_s24, %s7403_s24, %s7404_s23   ;;  %v5981_v6 = vsel %vm5971_vm15, %v5964_v43, %v5914_v22  ;;  %v10206_v28 = vmax.f32 %v5755_v29, %v5787_v24  ;;  %v10217_v40 = vmax.f32 %v5758_v45, %v5790_v46 }
 0x95e   : > { %s6747_s3 = sshll.u32 %s7519_s28, 9  ;;  %s10707_s22 = sld [smem:[#allocation66_spill]]  ;;  %v10204_v58 = vmax.f32 %v5741_v60, %v5742_v26  ;;  %v6008_v16 = vcombine.low %v5980_v59, %v5981_v6 }
 0x95f   : > { %s6083_s30 = sshll.u32 %s8668_s14, 4  ;;  %s10708_s19 = sld [smem:[#allocation68_spill]]  ;;  %s6084_s30 = int_to_ptr.vmem [resolvable:$true] %s6083_s30 }
 0x960   : > { %s6054_s23 = scalar_lea.sflag [#allocation5], %s7619_s26  ;;  %s7252_s0 = scalar_lea.vmem %s6084_s30, 512 }
 0x961   : > { %p7253_p13 = scmp.ne.s32.totalorder %s6084_s30, %s7252_s0  ;;  %s7405_s14 = smov [#allocation8]  }
 0x962   : > { %s7256_s29 = sshll.u32 %s7405_s14, 4  ;;  %s7257_s29 = int_to_ptr.vmem [resolvable:$false] %s7256_s29 }
 0x963   : > { %p7254_p10 = pnand %p7253_p13, %p10706_p11  ;;  %s7258_s4 = scalar_lea.vmem %s7257_s29, 1024 }
 0x964   : > { %s10201_s2 = scalar_lea.hbm %s10707_s22, %s6747_s3  ;;  %p7259_p2 = scmp.lt.s32.totalorder %s6084_s30, %s7257_s29 }
 0x965   : > { %s10215_s24 = scalar_lea.hbm %s10708_s19, %s6747_s3  ;;  %p7255_p1 = pneg %p7254_p10 }
 0x966   : > { %p7260_p0 = scmp.lt.s32.totalorder %s7258_s4, %s7252_s0 }
 0x968   : > { %p7261_p3 = por %p7260_p0, %p7259_p2 }
 0x96a   : > { %p7262_p12 = pnand %p7261_p3, %p7255_p1 }
 0x96c   : > { %7265 = shalt.err (!%p7262_p12)
}
 0x96d   : > { %s7266_s3 = scalar_lea.hbm %s10201_s2, 512  ;;  %s7270_s14 = scalar_lea.hbm %s10707_s22, 1024 }
 0x96e   : > { %p7267_p5 = scmp.ne.s32.totalorder %s10201_s2, %s7266_s3  ;;  %p7271_p4 = scmp.lt.s32.totalorder %s10201_s2, %s10707_s22 }
 0x96f   : > { %p7272_p8 = scmp.lt.s32.totalorder %s7270_s14, %s7266_s3 }
 0x970   : > { %p7268_p7 = pnand %p7267_p5, %p10706_p11 }
 0x971   : > { %p7273_p9 = por %p7272_p8, %p7271_p4 }
 0x972   : > { %p7269_p6 = pneg %p7268_p7 }
 0x974   : > { %p7274_p13 = pnand %p7273_p9, %p7269_p6 }
 0x976   : > { %7277 = shalt.err (!%p7274_p13)
}
 0x977   : > { %6756 = dma.vmem_to_hbm [thread:$0]  (%p10706_p11), %s6084_s30, 512, %s10201_s2, %s6054_s23   ;;  %v5743_v35 = vmax.f32 %v10125_v3, %v10162_v1  ;;  %v5735_v10 = vmax.f32 %v10127_v30, %v10164_v49  ;;  %v5744_v54 = vmax.f32 %v10129_v33, %v10208_v12  ;;  %6024 = vxpose.xlu0.b32.cont [5/8] (short) (narrow) %v6008_v16, 8  ;;  %v5736_v55 = vmax.f32 %v10131_v62, %v10210_v15 }
 0x978   : > { %s7278_s4 = scalar_lea.vmem %s10147_s27, 512  ;;  %s7406_s5 = smov [#allocation11]  }
 0x979   : > { %p7279_p10 = scmp.ne.s32.totalorder %s10147_s27, %s7278_s4  ;;  %s7282_s6 = sshll.u32 %s7406_s5, 4  ;;  %s7283_s6 = int_to_ptr.vmem [resolvable:$false] %s7282_s6 }
 0x97a   : > { %s7284_s2 = scalar_lea.vmem %s7283_s6, 1024  ;;  %p7285_p0 = scmp.lt.s32.totalorder %s10147_s27, %s7283_s6 }
 0x97b   : > { %p7280_p1 = pnand %p7279_p10, %p10706_p11  ;;  %p7286_p3 = scmp.lt.s32.totalorder %s7284_s2, %s7278_s4 }
 0x97d   : > { %p7281_p2 = pneg %p7280_p1  ;;  %p7287_p12 = por %p7286_p3, %p7285_p0 }
 0x97f   : > { %p7288_p5 = pnand %p7287_p12, %p7281_p2 }
 0x981   : > { %7291 = shalt.err (!%p7288_p5)
}
 0x982   : > { %s7292_s30 = scalar_lea.hbm %s10215_s24, 512  ;;  %s7296_s29 = scalar_lea.hbm %s10708_s19, 1024 }
 0x983   : > { %p7293_p7 = scmp.ne.s32.totalorder %s10215_s24, %s7292_s30  ;;  %p7297_p8 = scmp.lt.s32.totalorder %s10215_s24, %s10708_s19 }
 0x984   : > { %p7298_p9 = scmp.lt.s32.totalorder %s7296_s29, %s7292_s30 }
 0x985   : > { %p7294_p6 = pnand %p7293_p7, %p10706_p11 }
 0x986   : > { %p7299_p13 = por %p7298_p9, %p7297_p8 }
 0x987   : > { %p7295_p4 = pneg %p7294_p6 }
 0x989   : > { %p7300_p10 = pnand %p7299_p13, %p7295_p4 }
 0x98b   : > { %7303 = shalt.err (!%p7300_p10)
}
 0x98c   : > { %6758 = dma.vmem_to_hbm [thread:$0]  (%p10706_p11), %s10147_s27, 512, %s10215_s24, %s10168_s21   ;;  %v5821_v3 = vmax.f32 %v10153_v38, %v5789_v52  ;;  %v5791_v30 = vrot.slane %v10204_v58, 1  ;;  %v5851_v33 = vrot.slane %v10206_v28, 1  ;;  %v5760_v62 = vmax.f32 %v5743_v35, %v5744_v54 }
 0x98d   : > { %v5756_v18 = vmax.f32 %v5735_v10, %v5736_v55  ;;  %v5854_v27 = vrot.slane %v10217_v40, 1  ;;  %v5883_v39 = vrot.slane %v10206_v28, 2  ;;  %v5886_v21 = vrot.slane %v10217_v40, 2  ;;  %s6312_s27 = sshll.u32 %s7619_s26, 3  ;;  %s6743_s21 = sshll.u32 %s7519_s28, 7 }
 0x98e   : > { %v5792_v13 = vrot.slane %v5760_v62, 1  ;;  %v5853_v47 = vrot.slane %v5821_v3, 1  ;;  %v5823_v25 = vmax.f32 %v10204_v58, %v5791_v30  ;;  %v5948_v31 = vsel %vm5937_vm13, %v10206_v28, %v5851_v33  ;;  %s605_s24 = scalar_lea.vmem [#allocation12], %s6312_s27  ;;  %s10709_s5 = sld [smem:[#allocation69_spill]] }
 0x98f   : > { %v5788_v44 = vrot.slane %v5756_v18, 1  ;;  %v5951_v9 = vsel %vm5937_vm13, %v10217_v40, %v5854_v27  ;;  %v5885_v41 = vrot.slane %v5821_v3, 2  ;;  %v5965_v14 = vsel %vm5954_vm14, %v5948_v31, %v5883_v39  ;;  %s6126_s1 = sshll.u32 %s605_s24, 4  ;;  %s6069_s2 = scalar_lea.sflag [#allocation13], %s7619_s26  ;;  %s6127_s1 = int_to_ptr.vmem [resolvable:$true] %s6126_s1 }
 0x990   : > { %v5824_v61 = vmax.f32 %v5760_v62, %v5792_v13  ;;  %v5950_v32 = vsel %vm5937_vm13, %v5821_v3, %v5853_v47  ;;  %v5855_v63 = vrot.slane %v5823_v25, 1  ;;  %v5915_v0 = vrot.slane %v10206_v28, 3  ;;  %s7304_s30 = scalar_lea.vmem %s6127_s1, 128  ;;  %s7407_s23 = smov [#allocation12]  }
 0x991   : > { %v5820_v57 = vmax.f32 %v5756_v18, %v5788_v44  ;;  %v5968_v19 = vsel %vm5954_vm14, %v5951_v9, %v5886_v21  ;;  %v5918_v37 = vrot.slane %v10217_v40, 3  ;;  %v5887_v45 = vrot.slane %v5823_v25, 2  ;;  %p7305_p1 = scmp.ne.s32.totalorder %s6127_s1, %s7304_s30  ;;  %s7308_s0 = sshll.u32 %s7407_s23, 4  ;;  %s7309_s0 = int_to_ptr.vmem [resolvable:$false] %s7308_s0 }
 0x992   : > { %v5856_v51 = vrot.slane %v5824_v61, 1  ;;  %v5888_v5 = vrot.slane %v5824_v61, 2  ;;  %v5982_v8 = vsel %vm5971_vm15, %v5965_v14, %v5915_v0  ;;  %v5967_v56 = vsel %vm5954_vm14, %v5950_v32, %v5885_v41  ;;  %s7310_s28 = scalar_lea.vmem %s7309_s0, 256  ;;  %p7311_p3 = scmp.lt.s32.totalorder %s6127_s1, %s7309_s0 }
 0x993   : > { %v5852_v17 = vrot.slane %v5820_v57, 1  ;;  %v5884_v11 = vrot.slane %v5820_v57, 2  ;;  %v5916_v20 = vrot.slane %v5820_v57, 3  ;;  %v5917_v50 = vrot.slane %v5821_v3, 3  ;;  %p7306_p2 = pnand %p7305_p1, %p10706_p11  ;;  %p7312_p12 = scmp.lt.s32.totalorder %s7310_s28, %s7304_s30 }
 0x994   : > { %v5953_v36 = vsel %vm5937_vm13, %v5824_v61, %v5856_v51  ;;  %v5952_v38 = vsel %vm5937_vm13, %v5823_v25, %v5855_v63  ;;  %v5985_v42 = vsel %vm5971_vm15, %v5968_v19, %v5918_v37  ;;  %v5920_v34 = vrot.slane %v5824_v61, 3  ;;  %s10301_s6 = scalar_lea.hbm %s10709_s5, %s6743_s21 }
 0x995   : > { %v5949_v48 = vsel %vm5937_vm13, %v5820_v57, %v5852_v17  ;;  %v5970_v29 = vsel %vm5954_vm14, %v5953_v36, %v5888_v5  ;;  %v5984_v26 = vsel %vm5971_vm15, %v5967_v56, %v5917_v50  ;;  %v5969_v49 = vsel %vm5954_vm14, %v5952_v38, %v5887_v45  ;;  %p7307_p0 = pneg %p7306_p2  ;;  %p7313_p5 = por %p7312_p12, %p7311_p3 }
 0x996   : > { %v5966_v2 = vsel %vm5954_vm14, %v5949_v48, %v5884_v11  ;;  %v6010_v1 = vcombine.low %v5984_v26, %v5985_v42  ;;  %v5919_v23 = vrot.slane %v5823_v25, 3  ;;  %v5987_v7 = vsel %vm5971_vm15, %v5970_v29, %v5920_v34 }
 0x997   : > { %v5983_v53 = vsel %vm5971_vm15, %v5966_v2, %v5916_v20  ;;  %p7314_p7 = pnand %p7313_p5, %p7307_p0 }
 0x998   : > { %v6009_v4 = vcombine.low %v5982_v8, %v5983_v53  ;;  %v5986_v46 = vsel %vm5971_vm15, %v5969_v49, %v5919_v23 }
 0x999   : > { %v6011_v22 = vcombine.low %v5986_v46, %v5987_v7 }
 0x99a   : > { %6025 = vxpose.xlu0.b32.cont [6/8] (short) (narrow) %v6009_v4, 8 }
 0x99e   : > { %6026 = vxpose.xlu0.b32.cont [7/8] (short) (narrow) %v6010_v1, 8 }
 0x9a2   : > { %6027 = vxpose.xlu0.b32.end [8/8] (short) (narrow) %v6011_v22, 8 }
 0xa02   : > { %v6036_v24 = vpop.trf.xlu0 }
 0xa03   : > { %6052 = vst.msk [vmem:[%s605_s24] sm:$0xff] %vm954_vm7, %v6036_v24 }
 0xa04   : > { %7317 = shalt.err (!%p7314_p7)
}
 0xa05   : > { %s7318_s29 = scalar_lea.hbm %s10301_s6, 128  ;;  %s7322_s15 = scalar_lea.hbm %s10709_s5, 256 }
 0xa06   : > { %p7319_p6 = scmp.ne.s32.totalorder %s10301_s6, %s7318_s29  ;;  %p7323_p9 = scmp.lt.s32.totalorder %s10301_s6, %s10709_s5 }
 0xa07   : > { %p7324_p13 = scmp.lt.s32.totalorder %s7322_s15, %s7318_s29 }
 0xa08   : > { %p7320_p4 = pnand %p7319_p6, %p10706_p11 }
 0xa09   : > { %p7325_p10 = por %p7324_p13, %p7323_p9 }
 0xa0a   : > { %p7321_p8 = pneg %p7320_p4 }
 0xa0c   : > { %p7326_p1 = pnand %p7325_p10, %p7321_p8 }
 0xa0e   : > { %7329 = shalt.err (!%p7326_p1)
}
 0xa0f   : > { %6759 = dma.vmem_to_hbm [thread:$0]  (%p10706_p11), %s6127_s1, 128, %s10301_s6, %s6069_s2  }
 0xa10 PF: > { %s10710_s24 = sld [smem:[#allocation19_spill]] }
 0xa11   : > { %s10711_s14 = sld [smem:[#allocation22_spill]] }
 0xa12   : > { %s10712_s4 = sld [smem:[#allocation21_spill]] }
 0xa16   : > { %s6138_s30 = sand.u32 1, %s10710_s24  }
 0xa17   : > { %p10713_p2 = scmp.ne.s32.totalorder %s10711_s14, 0  ;;  %s6139_s23 = scalar_lea.sflag [#allocation5], %s6138_s30 }
 0xa18   : > { %p10714_p0 = scmp.ge.s32.totalorder %s10712_s4, 2 }
 0xa1a   : > { %p6773_p3 = pnand %p10714_p0, %p10713_p2 }
 0xa1c   : > { %p6774_p12 = pneg %p6773_p3 }
 0xa1e   : > { %7355 = dma.done.wait (%p6774_p12), %s6139_s23, 512  }
 0xa1f   : > { %7357 = vsyncadd (%p6774_p12), %s6139_s23, 4294966784  ;;  %s10715_s0 = sadd.s32 4294967294, %s10712_s4  }
 0xa20   : > { %s6147_s28 = sand.u32 1, %s10715_s0  }
 0xa21   : > { %s6148_s29 = scalar_lea.sflag [#allocation10], %s6147_s28 }
 0xa22   : > { %7359 = dma.done.wait (%p6774_p12), %s6148_s29, 1536  }
 0xa23   : > { %7361 = vsyncadd (%p6774_p12), %s6148_s29, 4294965760  ;;  %s6166_s20 = scalar_lea.sflag [#allocation13], %s6138_s30 }
 0xa24   : > { %7363 = dma.done.wait (%p6774_p12), %s6166_s20, 128  }
 0xa25   : > { %7365 = vsyncadd (%p6774_p12), %s6166_s20, 4294967168  ;;  %s10716_s27 = sld [smem:[#allocation23_spill]]  ;;  %s10719_s24 = smov %s7372_s25 }
 0xa26   : > { %s10717_s1 = sld [smem:[#allocation20_spill]] }
 0xa27   : > { %s10718_s26 = sld [smem:[#allocation24_spill]] }
 0xa2b   : > { %p38_p11 = scmp.ge.s32.totalorder %s10716_s27, 4  }
 0xa2c   : > { %s10720_s25 = smov %s10717_s1 }
 0xa2d   :  { %40 = sbr.rel (!%p38_p11) target bundleno = 22 (0x16), region = 174 }
 0xa32   :  { %6171 = vsyncpa [#allocation4], 1 }
 0xa33   :  { %6173 = vsyncpa [#allocation4 + $0x1], 1 }
 0xa34   :  { %6174 = vsyncpa [#allocation7], 1 }
 0xa35   :  { %6175 = vsyncpa [#allocation5], 1 }
 0xa36   :  { %6177 = vsyncpa [#allocation5 + $0x1], 1 }
 0xa37   :  { %6178 = vsyncpa [#allocation10], 1 }
 0xa38   :  { %6180 = vsyncpa [#allocation10 + $0x1], 1 }
 0xa39   :  { %6181 = vsyncpa [#allocation13], 1 }
 0xa3a   :  { %6183 = vsyncpa [#allocation13 + $0x1], 1 }

</bundles_post_ra>
